<compile_context>
chip_gen: v7x
topology: tpu7x:2x2x1
jax: 0.10.0
libtpu: 0.0.40
codegen_flags: <defaults>
</compile_context>

<pallas_src>
import functools
import jax
import jax.numpy as jnp
from jax.experimental import pallas as pl
from jax.experimental.pallas import tpu as pltpu

# ----------------------------- model config ---------------------------------
D_MODEL = 32
NUM_HEADS = 2
D_KV = 16
D_FF = 64
NUM_LAYERS = 2
VOCAB = 64          # args.rulenum
MASK_ID = 0         # args.mask_id
NUM_BUCKETS = 8
MAX_DISTANCE = 16
LN_EPS = 1e-6
NEG_INF = -1e9
HD = NUM_HEADS * D_KV

# static offsets into the packed per-head input-projection slab: (36, D, D_KV)
ENC_QKV = 0                                            # idx = l*6 + s*2 + h  (s: q,k,v)
DEC_QKV = ENC_QKV + NUM_LAYERS * 3 * NUM_HEADS         # 12
DEC_CQ = DEC_QKV + NUM_LAYERS * 3 * NUM_HEADS          # 24, idx = l*2 + h
DEC_CKV = DEC_CQ + NUM_LAYERS * NUM_HEADS              # 28, idx = l*4 + s*2 + h (s: k,v)
N_PROJ_IN = DEC_CKV + NUM_LAYERS * 2 * NUM_HEADS       # 36

# static offsets into the packed per-head output-projection slab: (12, D_KV, D)
ENC_WO = 0                                             # idx = l*2 + h
DEC_WO = ENC_WO + NUM_LAYERS * NUM_HEADS               # 4
DEC_CO = DEC_WO + NUM_LAYERS * NUM_HEADS               # 8
N_PROJ_OUT = DEC_CO + NUM_LAYERS * NUM_HEADS           # 12


# --------------------------- fused Pallas kernel -----------------------------

def _myt5_kernel(x_ref, bias_enc_ref, bias_dec_ref, bias_cross_ref,
                 proj_in_ref, proj_out_ref, ff_wi_ref, ff_wo_ref,
                 lm_w_ref, onehot_ref, loss_ref, *, B, Te, Td):
    f32 = jnp.float32
    H, DKV = NUM_HEADS, D_KV

    def rms(x):  # T5 LayerNorm minus the gain (gains folded into weights host-side)
        return x * jax.lax.rsqrt(jnp.mean(x * x, axis=-1, keepdims=True) + LN_EPS)

    def mm(a, b):
        return jnp.dot(a, b, preferred_element_type=f32)

    def project_heads(x2d, idx_fn, T):
        # x2d: (B*T, D) -> head-major stack (H*B, T, D_KV); each matmul output
        # starts at lane 0 (weights are per-head on a leading axis).
        parts = [mm(x2d, proj_in_ref[idx_fn(h)]).reshape(B, T, DKV) for h in range(H)]
        return jnp.concatenate(parts, axis=0)

    def out_project(ctx, idx_fn, T):
        # ctx: (H*B, T, D_KV) head-major -> (B*T, D); leading-axis slices only.
        out = mm(ctx[0:B].reshape(B * T, DKV), proj_out_ref[idx_fn(0)])
        for h in range(1, H):
            out = out + mm(ctx[h * B:(h + 1) * B].reshape(B * T, DKV),
                           proj_out_ref[idx_fn(h)])
        return out

    def attention(q, k, v, bias):
        # q: (H*B, Tq, D_KV), k/v: (H*B, Tk, D_KV), bias: (H*B, Tq, Tk).
        # T5 attention has NO 1/sqrt(d) scaling.
        s = jnp.einsum('bqd,bkd->bqk', q, k, preferred_element_type=f32) + bias
        m = jnp.max(s, axis=-1, keepdims=True)
        p = jnp.exp(s - m)
        p = p * pl.reciprocal(jnp.sum(p, axis=-1, keepdims=True), approx=True)
        return jnp.einsum('bqk,bkd->bqd', p, v, preferred_element_type=f32)

    def ffn(x, slab_idx):
        return mm(jnp.maximum(mm(x, ff_wi_ref[slab_idx]), 0.0), ff_wo_ref[slab_idx])

    bias_enc = bias_enc_ref[...]      # (H*B, Te, Te)
    bias_dec = bias_dec_ref[...]      # (H*B, Td, Td)
    bias_cross = bias_cross_ref[...]  # (H*B, Td, Te)

    # ------------------------------- encoder ---------------------------------
    h_enc = x_ref[0:B * Te, :]                                     # (B*Te, D)
    for l in range(NUM_LAYERS):
        x = rms(h_enc)
        q = project_heads(x, lambda h, l=l: ENC_QKV + l * 6 + 0 * H + h, Te)
        k = project_heads(x, lambda h, l=l: ENC_QKV + l * 6 + 1 * H + h, Te)
        v = project_heads(x, lambda h, l=l: ENC_QKV + l * 6 + 2 * H + h, Te)
        ctx = attention(q, k, v, bias_enc)
        h_enc = h_enc + out_project(ctx, lambda h, l=l: ENC_WO + l * H + h, Te)
        h_enc = h_enc + ffn(rms(h_enc), l)
    enc_n = rms(h_enc)   # final encoder LN (gain folded into cross K/V weights)

    # cross-attention K/V for ALL decoder layers, computed once (h_enc is fixed)
    k_cross = [project_heads(enc_n, lambda h, l=l: DEC_CKV + l * 4 + 0 * H + h, Te)
               for l in range(NUM_LAYERS)]
    v_cross = [project_heads(enc_n, lambda h, l=l: DEC_CKV + l * 4 + 1 * H + h, Te)
               for l in range(NUM_LAYERS)]

    # ------------------------------- decoder ---------------------------------
    h_dec = x_ref[B * Te:B * Te + B * Td, :]                       # (B*Td, D)
    for l in range(NUM_LAYERS):
        # self-attention (causal + pad mask + rel-pos bias, pre-combined host-side)
        x = rms(h_dec)
        q = project_heads(x, lambda h, l=l: DEC_QKV + l * 6 + 0 * H + h, Td)
        k = project_heads(x, lambda h, l=l: DEC_QKV + l * 6 + 1 * H + h, Td)
        v = project_heads(x, lambda h, l=l: DEC_QKV + l * 6 + 2 * H + h, Td)
        ctx = attention(q, k, v, bias_dec)
        h_dec = h_dec + out_project(ctx, lambda h, l=l: DEC_WO + l * H + h, Td)

        # cross-attention (encoder pad mask only; zero rel-pos bias)
        x = rms(h_dec)
        qc = project_heads(x, lambda h, l=l: DEC_CQ + l * H + h, Td)
        ctx = attention(qc, k_cross[l], v_cross[l], bias_cross)
        h_dec = h_dec + out_project(ctx, lambda h, l=l: DEC_CO + l * H + h, Td)

        # feed-forward
        h_dec = h_dec + ffn(rms(h_dec), NUM_LAYERS + l)
    h_out = rms(h_dec)   # final decoder LN; gain and D_MODEL**-0.5 folded into lm_w

    # ------------------- tied lm_head + masked cross-entropy -----------------
    logits = jax.lax.dot_general(h_out, lm_w_ref[...], (((1,), (1,)), ((), ())),
                                 preferred_element_type=f32)        # (B*Td, V)
    m = jnp.max(logits, axis=-1, keepdims=True)
    lse = jnp.log(jnp.sum(jnp.exp(logits - m), axis=-1, keepdims=True)) + m
    oh = onehot_ref[...]                                            # masked one-hot
    picked = jnp.sum(logits * oh, axis=-1, keepdims=True)           # 0 on ignored rows
    valid = jnp.sum(oh, axis=-1, keepdims=True)                     # 1 if counted
    total = jnp.sum(lse * valid - picked)
    count = jnp.sum(valid)
    # guard the all-masked degenerate case (torch would return NaN there)
    loss_ref[0, 0] = total / jnp.maximum(count, 1.0)


# ------------------------ plain-JAX glue (setup only) ------------------------

def _relative_position_bucket(rel_pos, bidirectional, num_buckets, max_distance):
    ret = jnp.zeros_like(rel_pos)
    n = rel_pos
    if bidirectional:
        num_buckets //= 2
        ret = ret + (n > 0).astype(jnp.int32) * num_buckets
        n = jnp.abs(n)
    else:
        n = -jnp.minimum(n, 0)
    max_exact = num_buckets // 2
    is_small = n < max_exact
    val_if_large = max_exact + (
        jnp.log(jnp.maximum(n, 1).astype(jnp.float32) / max_exact)
        / jnp.log(max_distance / max_exact)
        * (num_buckets - max_exact)
    ).astype(jnp.int32)
    val_if_large = jnp.minimum(val_if_large, num_buckets - 1)
    return ret + jnp.where(is_small, n, val_if_large)


def compute_position_bias(table, q_len, k_len, bidirectional):
    context = jnp.arange(q_len)[:, None]
    memory = jnp.arange(k_len)[None, :]
    buckets = _relative_position_bucket(memory - context, bidirectional,
                                        NUM_BUCKETS, MAX_DISTANCE)
    bias = jnp.take(table, buckets, axis=0)          # (q, k, H)
    return jnp.transpose(bias, (2, 0, 1))            # (H, q, k)


def pack_params(p):
    """Fold LN gains into weights and pack everything into a few VMEM slabs."""
    L, H, DKV, D = NUM_LAYERS, NUM_HEADS, D_KV, D_MODEL

    def heads_in(w):    # (L, D, H*DKV) -> (L, H, D, DKV)
        return jnp.transpose(w.reshape(L, D, H, DKV), (0, 2, 1, 3))

    def heads_out(w):   # (L, H*DKV, D) -> (L, H, DKV, D)
        return w.reshape(L, H, DKV, D)

    def fold(w, g):     # fold per-feature RMSNorm gain g (L, D) into (L, D, *) weight
        return w * g[:, :, None]

    enc_qkv = jnp.stack([heads_in(fold(p['enc_wq'], p['enc_ln1'])),
                         heads_in(fold(p['enc_wk'], p['enc_ln1'])),
                         heads_in(fold(p['enc_wv'], p['enc_ln1']))], axis=1)
    dec_qkv = jnp.stack([heads_in(fold(p['dec_wq'], p['dec_ln1'])),
                         heads_in(fold(p['dec_wk'], p['dec_ln1'])),
                         heads_in(fold(p['dec_wv'], p['dec_ln1']))], axis=1)
    dec_cq = heads_in(fold(p['dec_cq'], p['dec_ln2']))
    enc_lnf = jnp.broadcast_to(p['enc_ln_f'][None, :], (L, D))
    dec_ckv = jnp.stack([heads_in(fold(p['dec_ck'], enc_lnf)),
                         heads_in(fold(p['dec_cv'], enc_lnf))], axis=1)

    proj_in = jnp.concatenate([
        enc_qkv.reshape(-1, D, DKV), dec_qkv.reshape(-1, D, DKV),
        dec_cq.reshape(-1, D, DKV), dec_ckv.reshape(-1, D, DKV)], axis=0)
    assert proj_in.shape[0] == N_PROJ_IN

    proj_out = jnp.concatenate([
        heads_out(p['enc_wo']).reshape(-1, DKV, D),
        heads_out(p['dec_wo']).reshape(-1, DKV, D),
        heads_out(p['dec_co']).reshape(-1, DKV, D)], axis=0)
    assert proj_out.shape[0] == N_PROJ_OUT

    ff_wi = jnp.concatenate([fold(p['enc_wi'], p['enc_ln2']),
                             fold(p['dec_wi'], p['dec_ln3'])], axis=0)   # (4, D, DFF)
    ff_wo = jnp.concatenate([p['enc_wo_ff'], p['dec_wo_ff']], axis=0)    # (4, DFF, D)

    # tied lm_head: fold final decoder LN gain and d_model**-0.5 into the weight
    lm_w = p['embed'] * (p['dec_ln_f'] * (D_MODEL ** -0.5))[None, :]     # (V, D)

    return dict(embed=p['embed'], enc_rel_bias=p['enc_rel_bias'],
                dec_rel_bias=p['dec_rel_bias'], proj_in=proj_in,
                proj_out=proj_out, ff_wi=ff_wi, ff_wo=ff_wo, lm_w=lm_w)


def myt5_forward(packed, inputnl, inputrule):
    inputRes = inputrule[:, 1:]           # targets
    dec_in = inputrule[:, :-1]            # shifted decoder inputs
    B, Te = inputnl.shape
    Td = dec_in.shape[1]
    HB = NUM_HEADS * B

    # token embedding gather (tiny table) stays in plain JAX; one activation slab
    embed = packed['embed']
    enc_x = jnp.take(embed, inputnl, axis=0).reshape(B * Te, D_MODEL)
    dec_x = jnp.take(embed, dec_in, axis=0).reshape(B * Td, D_MODEL)
    x_all = jnp.concatenate([enc_x, dec_x], axis=0)               # (B*(Te+Td), D)

    # pre-combined attention biases (rel-pos + masks), head-major (h, b) ordering
    enc_rel = compute_position_bias(packed['enc_rel_bias'], Te, Te, True)    # (H,Te,Te)
    dec_rel = compute_position_bias(packed['dec_rel_bias'], Td, Td, False)   # (H,Td,Td)
    nlmask = (inputnl != MASK_ID).astype(jnp.float32)
    rulemask = (dec_in != MASK_ID).astype(jnp.float32)
    enc_keymask = (1.0 - nlmask) * NEG_INF                                    # (B, Te)
    causal = jnp.tril(jnp.ones((Td, Td), jnp.float32))
    dec_selfmask = (1.0 - causal[None] * rulemask[:, None, :]) * NEG_INF      # (B,Td,Td)

    bias_enc = (enc_rel[:, None, :, :]
                + enc_keymask[None, :, None, :]).reshape(HB, Te, Te)
    bias_dec = (dec_rel[:, None, :, :]
                + dec_selfmask[None, :, :, :]).reshape(HB, Td, Td)
    bias_cross = jnp.broadcast_to(enc_keymask[None, :, None, :],
                                  (NUM_HEADS, B, Td, Te)).reshape(HB, Td, Te)

    # masked one-hot targets: folds gather + ignore_index + valid count host-side
    tgt = inputRes.astype(jnp.int32)
    onehot = (jax.nn.one_hot(tgt, VOCAB, dtype=jnp.float32)
              * (tgt != MASK_ID).astype(jnp.float32)[..., None]).reshape(B * Td, VOCAB)

    inputs = (x_all, bias_enc, bias_dec, bias_cross,
              packed['proj_in'], packed['proj_out'], packed['ff_wi'],
              packed['ff_wo'], packed['lm_w'], onehot)
    vmem = pl.BlockSpec(memory_space=pltpu.MemorySpace.VMEM)
    loss = pl.pallas_call(
        functools.partial(_myt5_kernel, B=B, Te=Te, Td=Td),
        out_shape=jax.ShapeDtypeStruct((1, 1), jnp.float32),
        in_specs=[vmem] * len(inputs),
        out_specs=pl.BlockSpec(memory_space=pltpu.MemorySpace.SMEM),
    )(*inputs)
    return loss[0, 0]


# ------------------------------ parameter init -------------------------------

def init_params(key):
    keys = iter(jax.random.split(key, 64))

    def nrm(shape, scale=0.05):
        return scale * jax.random.normal(next(keys), shape, jnp.float32)

    L = NUM_LAYERS
    return dict(
        embed=nrm((VOCAB, D_MODEL), scale=1.0),   # shared enc/dec/lm_head weight (tied)
        enc_rel_bias=nrm((NUM_BUCKETS, NUM_HEADS)),
        dec_rel_bias=nrm((NUM_BUCKETS, NUM_HEADS)),
        # encoder stack
        enc_ln1=jnp.ones((L, D_MODEL), jnp.float32),
        enc_wq=nrm((L, D_MODEL, HD)), enc_wk=nrm((L, D_MODEL, HD)),
        enc_wv=nrm((L, D_MODEL, HD)), enc_wo=nrm((L, HD, D_MODEL)),
        enc_ln2=jnp.ones((L, D_MODEL), jnp.float32),
        enc_wi=nrm((L, D_MODEL, D_FF)), enc_wo_ff=nrm((L, D_FF, D_MODEL)),
        enc_ln_f=jnp.ones((D_MODEL,), jnp.float32),
        # decoder stack
        dec_ln1=jnp.ones((L, D_MODEL), jnp.float32),
        dec_wq=nrm((L, D_MODEL, HD)), dec_wk=nrm((L, D_MODEL, HD)),
        dec_wv=nrm((L, D_MODEL, HD)), dec_wo=nrm((L, HD, D_MODEL)),
        dec_ln2=jnp.ones((L, D_MODEL), jnp.float32),
        dec_cq=nrm((L, D_MODEL, HD)), dec_ck=nrm((L, D_MODEL, HD)),
        dec_cv=nrm((L, D_MODEL, HD)), dec_co=nrm((L, HD, D_MODEL)),
        dec_ln3=jnp.ones((L, D_MODEL), jnp.float32),
        dec_wi=nrm((L, D_MODEL, D_FF)), dec_wo_ff=nrm((L, D_FF, D_MODEL)),
        dec_ln_f=jnp.ones((D_MODEL,), jnp.float32),
    )


# ---------------------------------- main --------------------------------------

if __name__ == "__main__":
    root = jax.random.PRNGKey(0)
    pkey, k_nl, k_rule = jax.random.split(root, 3)
    params = init_params(pkey)
    packed = pack_params(params)      # one-time host-side fold + pack

    B, S_NL, S_RULE = 2, 8, 9         # decoder length becomes 8 after the shift
    inputnl = jax.random.randint(k_nl, (B, S_NL), 1, VOCAB, dtype=jnp.int32)
    inputrule = jax.random.randint(k_rule, (B, S_RULE), 1, VOCAB, dtype=jnp.int32)
    # introduce padding (= mask_id) so masking / ignore_index paths are exercised
    inputnl = inputnl.at[:, -2:].set(MASK_ID)
    inputrule = inputrule.at[:, -2:].set(MASK_ID)

    loss = jax.jit(myt5_forward)(packed, inputnl, inputrule)
    loss = jax.block_until_ready(loss)
    assert bool(jnp.isfinite(loss)), "loss is not finite"
    print("KERNEL_OK")
</pallas_src>

<mosaic_0001>
module attributes {stable_mosaic.version = 11 : i64} {
  func.func @_myt5_kernel(%arg0: memref<32x32xf32, #tpu.memory_space<vmem>>, %arg1: memref<4x8x8xf32, #tpu.memory_space<vmem>>, %arg2: memref<4x8x8xf32, #tpu.memory_space<vmem>>, %arg3: memref<4x8x8xf32, #tpu.memory_space<vmem>>, %arg4: memref<36x32x16xf32, #tpu.memory_space<vmem>>, %arg5: memref<12x16x32xf32, #tpu.memory_space<vmem>>, %arg6: memref<4x32x64xf32, #tpu.memory_space<vmem>>, %arg7: memref<4x64x32xf32, #tpu.memory_space<vmem>>, %arg8: memref<64x32xf32, #tpu.memory_space<vmem>>, %arg9: memref<16x64xf32, #tpu.memory_space<vmem>>, %arg10: memref<1x1xf32, #tpu.memory_space<smem>>) attributes {dimension_semantics = [], scalar_prefetch = 0 : i64, scratch_operands = 0 : i64, tpu.core_type = #tpu.core_type<tc>} {
    %c0 = arith.constant 0 : index
    %c0_0 = arith.constant 0 : index
    %c0_1 = arith.constant 0 : index
    %0 = vector.load %arg1[%c0, %c0_0, %c0_1] : memref<4x8x8xf32, #tpu.memory_space<vmem>>, vector<4x8x8xf32>
    %c0_2 = arith.constant 0 : index
    %c0_3 = arith.constant 0 : index
    %c0_4 = arith.constant 0 : index
    %1 = vector.load %arg2[%c0_2, %c0_3, %c0_4] : memref<4x8x8xf32, #tpu.memory_space<vmem>>, vector<4x8x8xf32>
    %c0_5 = arith.constant 0 : index
    %c0_6 = arith.constant 0 : index
    %c0_7 = arith.constant 0 : index
    %2 = vector.load %arg3[%c0_5, %c0_6, %c0_7] : memref<4x8x8xf32, #tpu.memory_space<vmem>>, vector<4x8x8xf32>
    %c0_8 = arith.constant 0 : index
    %c0_9 = arith.constant 0 : index
    %3 = vector.load %arg0[%c0_8, %c0_9] : memref<32x32xf32, #tpu.memory_space<vmem>>, vector<16x32xf32>
    %4 = arith.mulf %3, %3 : vector<16x32xf32>
    %cst = arith.constant dense<0.000000e+00> : vector<16xf32>
    %5 = vector.multi_reduction <add>, %4, %cst [1] : vector<16x32xf32> to vector<16xf32>
    %6 = vector.shape_cast %5 : vector<16xf32> to vector<16x1xf32>
    %cst_10 = arith.constant 3.200000e+01 : f32
    %7 = vector.broadcast %cst_10 : f32 to vector<16x1xf32>
    %8 = arith.divf %6, %7 : vector<16x1xf32>
    %cst_11 = arith.constant 9.99999997E-7 : f32
    %9 = vector.broadcast %cst_11 : f32 to vector<16x1xf32>
    %10 = arith.addf %8, %9 : vector<16x1xf32>
    %11 = math.rsqrt %10 : vector<16x1xf32>
    %12 = vector.broadcast %11 : vector<16x1xf32> to vector<16x32xf32>
    %13 = arith.mulf %3, %12 : vector<16x32xf32>
    %c0_12 = arith.constant 0 : index
    %c0_13 = arith.constant 0 : index
    %c0_14 = arith.constant 0 : index
    %14 = vector.load %arg4[%c0_12, %c0_13, %c0_14] : memref<36x32x16xf32, #tpu.memory_space<vmem>>, vector<1x32x16xf32>
    %15 = vector.shape_cast %14 : vector<1x32x16xf32> to vector<32x16xf32>
    %cst_15 = arith.constant dense<0.000000e+00> : vector<16x16xf32>
    %16 = tpu.matmul %13, %15, %cst_15 {dimension_numbers = #tpu.dot_dimension_numbers<[1], [0], [0], [1], [0, 0, 1, 1], [], []>} : vector<16x32xf32>, vector<32x16xf32>, vector<16x16xf32> -> vector<16x16xf32>
    %17 = vector.shape_cast %16 : vector<16x16xf32> to vector<2x8x16xf32>
    %c1 = arith.constant 1 : index
    %c0_16 = arith.constant 0 : index
    %c0_17 = arith.constant 0 : index
    %18 = vector.load %arg4[%c1, %c0_16, %c0_17] : memref<36x32x16xf32, #tpu.memory_space<vmem>>, vector<1x32x16xf32>
    %19 = vector.shape_cast %18 : vector<1x32x16xf32> to vector<32x16xf32>
    %cst_18 = arith.constant dense<0.000000e+00> : vector<16x16xf32>
    %20 = tpu.matmul %13, %19, %cst_18 {dimension_numbers = #tpu.dot_dimension_numbers<[1], [0], [0], [1], [0, 0, 1, 1], [], []>} : vector<16x32xf32>, vector<32x16xf32>, vector<16x16xf32> -> vector<16x16xf32>
    %21 = vector.shape_cast %20 : vector<16x16xf32> to vector<2x8x16xf32>
    %22 = tpu.concatenate %17, %21 in 0 : vector<2x8x16xf32>, vector<2x8x16xf32> -> vector<4x8x16xf32>
    %c2 = arith.constant 2 : index
    %c0_19 = arith.constant 0 : index
    %c0_20 = arith.constant 0 : index
    %23 = vector.load %arg4[%c2, %c0_19, %c0_20] : memref<36x32x16xf32, #tpu.memory_space<vmem>>, vector<1x32x16xf32>
    %24 = vector.shape_cast %23 : vector<1x32x16xf32> to vector<32x16xf32>
    %cst_21 = arith.constant dense<0.000000e+00> : vector<16x16xf32>
    %25 = tpu.matmul %13, %24, %cst_21 {dimension_numbers = #tpu.dot_dimension_numbers<[1], [0], [0], [1], [0, 0, 1, 1], [], []>} : vector<16x32xf32>, vector<32x16xf32>, vector<16x16xf32> -> vector<16x16xf32>
    %26 = vector.shape_cast %25 : vector<16x16xf32> to vector<2x8x16xf32>
    %c3 = arith.constant 3 : index
    %c0_22 = arith.constant 0 : index
    %c0_23 = arith.constant 0 : index
    %27 = vector.load %arg4[%c3, %c0_22, %c0_23] : memref<36x32x16xf32, #tpu.memory_space<vmem>>, vector<1x32x16xf32>
    %28 = vector.shape_cast %27 : vector<1x32x16xf32> to vector<32x16xf32>
    %cst_24 = arith.constant dense<0.000000e+00> : vector<16x16xf32>
    %29 = tpu.matmul %13, %28, %cst_24 {dimension_numbers = #tpu.dot_dimension_numbers<[1], [0], [0], [1], [0, 0, 1, 1], [], []>} : vector<16x32xf32>, vector<32x16xf32>, vector<16x16xf32> -> vector<16x16xf32>
    %30 = vector.shape_cast %29 : vector<16x16xf32> to vector<2x8x16xf32>
    %31 = tpu.concatenate %26, %30 in 0 : vector<2x8x16xf32>, vector<2x8x16xf32> -> vector<4x8x16xf32>
    %c4 = arith.constant 4 : index
    %c0_25 = arith.constant 0 : index
    %c0_26 = arith.constant 0 : index
    %32 = vector.load %arg4[%c4, %c0_25, %c0_26] : memref<36x32x16xf32, #tpu.memory_space<vmem>>, vector<1x32x16xf32>
    %33 = vector.shape_cast %32 : vector<1x32x16xf32> to vector<32x16xf32>
    %cst_27 = arith.constant dense<0.000000e+00> : vector<16x16xf32>
    %34 = tpu.matmul %13, %33, %cst_27 {dimension_numbers = #tpu.dot_dimension_numbers<[1], [0], [0], [1], [0, 0, 1, 1], [], []>} : vector<16x32xf32>, vector<32x16xf32>, vector<16x16xf32> -> vector<16x16xf32>
    %35 = vector.shape_cast %34 : vector<16x16xf32> to vector<2x8x16xf32>
    %c5 = arith.constant 5 : index
    %c0_28 = arith.constant 0 : index
    %c0_29 = arith.constant 0 : index
    %36 = vector.load %arg4[%c5, %c0_28, %c0_29] : memref<36x32x16xf32, #tpu.memory_space<vmem>>, vector<1x32x16xf32>
    %37 = vector.shape_cast %36 : vector<1x32x16xf32> to vector<32x16xf32>
    %cst_30 = arith.constant dense<0.000000e+00> : vector<16x16xf32>
    %38 = tpu.matmul %13, %37, %cst_30 {dimension_numbers = #tpu.dot_dimension_numbers<[1], [0], [0], [1], [0, 0, 1, 1], [], []>} : vector<16x32xf32>, vector<32x16xf32>, vector<16x16xf32> -> vector<16x16xf32>
    %39 = vector.shape_cast %38 : vector<16x16xf32> to vector<2x8x16xf32>
    %40 = tpu.concatenate %35, %39 in 0 : vector<2x8x16xf32>, vector<2x8x16xf32> -> vector<4x8x16xf32>
    "tpu.trace_start"() <{level = 10 : i32, message = "bqd,bkd->bqk"}> : () -> ()
    %cst_31 = arith.constant dense<0.000000e+00> : vector<4x8x8xf32>
    %41 = tpu.matmul %22, %31, %cst_31 {dimension_numbers = #tpu.dot_dimension_numbers<[2], [2], [1], [1], [0, 0, 0, 1, 1, 1], [0], [0]>} : vector<4x8x16xf32>, vector<4x8x16xf32>, vector<4x8x8xf32> -> vector<4x8x8xf32>
    "tpu.trace_stop"() : () -> ()
    %42 = arith.addf %41, %0 : vector<4x8x8xf32>
    %cst_32 = arith.constant dense<0xFF800000> : vector<4x8xf32>
    %43 = vector.multi_reduction <maximumf>, %42, %cst_32 [2] : vector<4x8x8xf32> to vector<4x8xf32>
    %44 = vector.shape_cast %43 : vector<4x8xf32> to vector<4x8x1xf32>
    %45 = vector.broadcast %44 : vector<4x8x1xf32> to vector<4x8x8xf32>
    %46 = arith.subf %42, %45 : vector<4x8x8xf32>
    %47 = math.exp %46 : vector<4x8x8xf32>
    %cst_33 = arith.constant dense<0.000000e+00> : vector<4x8xf32>
    %48 = vector.multi_reduction <add>, %47, %cst_33 [2] : vector<4x8x8xf32> to vector<4x8xf32>
    %49 = vector.shape_cast %48 : vector<4x8xf32> to vector<4x8x1xf32>
    %50 = tpu.reciprocal %49 {approx = true} : vector<4x8x1xf32> -> vector<4x8x1xf32>
    %51 = vector.broadcast %50 : vector<4x8x1xf32> to vector<4x8x8xf32>
    %52 = arith.mulf %47, %51 : vector<4x8x8xf32>
    "tpu.trace_start"() <{level = 10 : i32, message = "bqk,bkd->bqd"}> : () -> ()
    %cst_34 = arith.constant dense<0.000000e+00> : vector<4x8x16xf32>
    %53 = tpu.matmul %52, %40, %cst_34 {dimension_numbers = #tpu.dot_dimension_numbers<[2], [1], [1], [2], [0, 0, 0, 1, 1, 2], [0], [0]>} : vector<4x8x8xf32>, vector<4x8x16xf32>, vector<4x8x16xf32> -> vector<4x8x16xf32>
    "tpu.trace_stop"() : () -> ()
    %54 = vector.extract_strided_slice %53 {offsets = [0, 0, 0], sizes = [2, 8, 16], strides = [1, 1, 1]} : vector<4x8x16xf32> to vector<2x8x16xf32>
    %55 = vector.shape_cast %54 : vector<2x8x16xf32> to vector<16x16xf32>
    %c0_35 = arith.constant 0 : index
    %c0_36 = arith.constant 0 : index
    %c0_37 = arith.constant 0 : index
    %56 = vector.load %arg5[%c0_35, %c0_36, %c0_37] : memref<12x16x32xf32, #tpu.memory_space<vmem>>, vector<1x16x32xf32>
    %57 = vector.shape_cast %56 : vector<1x16x32xf32> to vector<16x32xf32>
    %cst_38 = arith.constant dense<0.000000e+00> : vector<16x32xf32>
    %58 = tpu.matmul %55, %57, %cst_38 {dimension_numbers = #tpu.dot_dimension_numbers<[1], [0], [0], [1], [0, 0, 1, 1], [], []>} : vector<16x16xf32>, vector<16x32xf32>, vector<16x32xf32> -> vector<16x32xf32>
    %59 = vector.extract_strided_slice %53 {offsets = [2, 0, 0], sizes = [2, 8, 16], strides = [1, 1, 1]} : vector<4x8x16xf32> to vector<2x8x16xf32>
    %60 = vector.shape_cast %59 : vector<2x8x16xf32> to vector<16x16xf32>
    %c1_39 = arith.constant 1 : index
    %c0_40 = arith.constant 0 : index
    %c0_41 = arith.constant 0 : index
    %61 = vector.load %arg5[%c1_39, %c0_40, %c0_41] : memref<12x16x32xf32, #tpu.memory_space<vmem>>, vector<1x16x32xf32>
    %62 = vector.shape_cast %61 : vector<1x16x32xf32> to vector<16x32xf32>
    %cst_42 = arith.constant dense<0.000000e+00> : vector<16x32xf32>
    %63 = tpu.matmul %60, %62, %cst_42 {dimension_numbers = #tpu.dot_dimension_numbers<[1], [0], [0], [1], [0, 0, 1, 1], [], []>} : vector<16x16xf32>, vector<16x32xf32>, vector<16x32xf32> -> vector<16x32xf32>
    %64 = arith.addf %58, %63 : vector<16x32xf32>
    %65 = arith.addf %3, %64 : vector<16x32xf32>
    %66 = arith.mulf %65, %65 : vector<16x32xf32>
    %cst_43 = arith.constant dense<0.000000e+00> : vector<16xf32>
    %67 = vector.multi_reduction <add>, %66, %cst_43 [1] : vector<16x32xf32> to vector<16xf32>
    %68 = vector.shape_cast %67 : vector<16xf32> to vector<16x1xf32>
    %cst_44 = arith.constant 3.200000e+01 : f32
    %69 = vector.broadcast %cst_44 : f32 to vector<16x1xf32>
    %70 = arith.divf %68, %69 : vector<16x1xf32>
    %cst_45 = arith.constant 9.99999997E-7 : f32
    %71 = vector.broadcast %cst_45 : f32 to vector<16x1xf32>
    %72 = arith.addf %70, %71 : vector<16x1xf32>
    %73 = math.rsqrt %72 : vector<16x1xf32>
    %74 = vector.broadcast %73 : vector<16x1xf32> to vector<16x32xf32>
    %75 = arith.mulf %65, %74 : vector<16x32xf32>
    %c0_46 = arith.constant 0 : index
    %c0_47 = arith.constant 0 : index
    %c0_48 = arith.constant 0 : index
    %76 = vector.load %arg6[%c0_46, %c0_47, %c0_48] : memref<4x32x64xf32, #tpu.memory_space<vmem>>, vector<1x32x64xf32>
    %77 = vector.shape_cast %76 : vector<1x32x64xf32> to vector<32x64xf32>
    %cst_49 = arith.constant dense<0.000000e+00> : vector<16x64xf32>
    %78 = tpu.matmul %75, %77, %cst_49 {dimension_numbers = #tpu.dot_dimension_numbers<[1], [0], [0], [1], [0, 0, 1, 1], [], []>} : vector<16x32xf32>, vector<32x64xf32>, vector<16x64xf32> -> vector<16x64xf32>
    %cst_50 = arith.constant 0.000000e+00 : f32
    %79 = vector.broadcast %cst_50 : f32 to vector<16x64xf32>
    %80 = arith.maximumf %78, %79 : vector<16x64xf32>
    %c0_51 = arith.constant 0 : index
    %c0_52 = arith.constant 0 : index
    %c0_53 = arith.constant 0 : index
    %81 = vector.load %arg7[%c0_51, %c0_52, %c0_53] : memref<4x64x32xf32, #tpu.memory_space<vmem>>, vector<1x64x32xf32>
    %82 = vector.shape_cast %81 : vector<1x64x32xf32> to vector<64x32xf32>
    %cst_54 = arith.constant dense<0.000000e+00> : vector<16x32xf32>
    %83 = tpu.matmul %80, %82, %cst_54 {dimension_numbers = #tpu.dot_dimension_numbers<[1], [0], [0], [1], [0, 0, 1, 1], [], []>} : vector<16x64xf32>, vector<64x32xf32>, vector<16x32xf32> -> vector<16x32xf32>
    %84 = arith.addf %65, %83 : vector<16x32xf32>
    %85 = arith.mulf %84, %84 : vector<16x32xf32>
    %cst_55 = arith.constant dense<0.000000e+00> : vector<16xf32>
    %86 = vector.multi_reduction <add>, %85, %cst_55 [1] : vector<16x32xf32> to vector<16xf32>
    %87 = vector.shape_cast %86 : vector<16xf32> to vector<16x1xf32>
    %cst_56 = arith.constant 3.200000e+01 : f32
    %88 = vector.broadcast %cst_56 : f32 to vector<16x1xf32>
    %89 = arith.divf %87, %88 : vector<16x1xf32>
    %cst_57 = arith.constant 9.99999997E-7 : f32
    %90 = vector.broadcast %cst_57 : f32 to vector<16x1xf32>
    %91 = arith.addf %89, %90 : vector<16x1xf32>
    %92 = math.rsqrt %91 : vector<16x1xf32>
    %93 = vector.broadcast %92 : vector<16x1xf32> to vector<16x32xf32>
    %94 = arith.mulf %84, %93 : vector<16x32xf32>
    %c6 = arith.constant 6 : index
    %c0_58 = arith.constant 0 : index
    %c0_59 = arith.constant 0 : index
    %95 = vector.load %arg4[%c6, %c0_58, %c0_59] : memref<36x32x16xf32, #tpu.memory_space<vmem>>, vector<1x32x16xf32>
    %96 = vector.shape_cast %95 : vector<1x32x16xf32> to vector<32x16xf32>
    %cst_60 = arith.constant dense<0.000000e+00> : vector<16x16xf32>
    %97 = tpu.matmul %94, %96, %cst_60 {dimension_numbers = #tpu.dot_dimension_numbers<[1], [0], [0], [1], [0, 0, 1, 1], [], []>} : vector<16x32xf32>, vector<32x16xf32>, vector<16x16xf32> -> vector<16x16xf32>
    %98 = vector.shape_cast %97 : vector<16x16xf32> to vector<2x8x16xf32>
    %c7 = arith.constant 7 : index
    %c0_61 = arith.constant 0 : index
    %c0_62 = arith.constant 0 : index
    %99 = vector.load %arg4[%c7, %c0_61, %c0_62] : memref<36x32x16xf32, #tpu.memory_space<vmem>>, vector<1x32x16xf32>
    %100 = vector.shape_cast %99 : vector<1x32x16xf32> to vector<32x16xf32>
    %cst_63 = arith.constant dense<0.000000e+00> : vector<16x16xf32>
    %101 = tpu.matmul %94, %100, %cst_63 {dimension_numbers = #tpu.dot_dimension_numbers<[1], [0], [0], [1], [0, 0, 1, 1], [], []>} : vector<16x32xf32>, vector<32x16xf32>, vector<16x16xf32> -> vector<16x16xf32>
    %102 = vector.shape_cast %101 : vector<16x16xf32> to vector<2x8x16xf32>
    %103 = tpu.concatenate %98, %102 in 0 : vector<2x8x16xf32>, vector<2x8x16xf32> -> vector<4x8x16xf32>
    %c8 = arith.constant 8 : index
    %c0_64 = arith.constant 0 : index
    %c0_65 = arith.constant 0 : index
    %104 = vector.load %arg4[%c8, %c0_64, %c0_65] : memref<36x32x16xf32, #tpu.memory_space<vmem>>, vector<1x32x16xf32>
    %105 = vector.shape_cast %104 : vector<1x32x16xf32> to vector<32x16xf32>
    %cst_66 = arith.constant dense<0.000000e+00> : vector<16x16xf32>
    %106 = tpu.matmul %94, %105, %cst_66 {dimension_numbers = #tpu.dot_dimension_numbers<[1], [0], [0], [1], [0, 0, 1, 1], [], []>} : vector<16x32xf32>, vector<32x16xf32>, vector<16x16xf32> -> vector<16x16xf32>
    %107 = vector.shape_cast %106 : vector<16x16xf32> to vector<2x8x16xf32>
    %c9 = arith.constant 9 : index
    %c0_67 = arith.constant 0 : index
    %c0_68 = arith.constant 0 : index
    %108 = vector.load %arg4[%c9, %c0_67, %c0_68] : memref<36x32x16xf32, #tpu.memory_space<vmem>>, vector<1x32x16xf32>
    %109 = vector.shape_cast %108 : vector<1x32x16xf32> to vector<32x16xf32>
    %cst_69 = arith.constant dense<0.000000e+00> : vector<16x16xf32>
    %110 = tpu.matmul %94, %109, %cst_69 {dimension_numbers = #tpu.dot_dimension_numbers<[1], [0], [0], [1], [0, 0, 1, 1], [], []>} : vector<16x32xf32>, vector<32x16xf32>, vector<16x16xf32> -> vector<16x16xf32>
    %111 = vector.shape_cast %110 : vector<16x16xf32> to vector<2x8x16xf32>
    %112 = tpu.concatenate %107, %111 in 0 : vector<2x8x16xf32>, vector<2x8x16xf32> -> vector<4x8x16xf32>
    %c10 = arith.constant 10 : index
    %c0_70 = arith.constant 0 : index
    %c0_71 = arith.constant 0 : index
    %113 = vector.load %arg4[%c10, %c0_70, %c0_71] : memref<36x32x16xf32, #tpu.memory_space<vmem>>, vector<1x32x16xf32>
    %114 = vector.shape_cast %113 : vector<1x32x16xf32> to vector<32x16xf32>
    %cst_72 = arith.constant dense<0.000000e+00> : vector<16x16xf32>
    %115 = tpu.matmul %94, %114, %cst_72 {dimension_numbers = #tpu.dot_dimension_numbers<[1], [0], [0], [1], [0, 0, 1, 1], [], []>} : vector<16x32xf32>, vector<32x16xf32>, vector<16x16xf32> -> vector<16x16xf32>
    %116 = vector.shape_cast %115 : vector<16x16xf32> to vector<2x8x16xf32>
    %c11 = arith.constant 11 : index
    %c0_73 = arith.constant 0 : index
    %c0_74 = arith.constant 0 : index
    %117 = vector.load %arg4[%c11, %c0_73, %c0_74] : memref<36x32x16xf32, #tpu.memory_space<vmem>>, vector<1x32x16xf32>
    %118 = vector.shape_cast %117 : vector<1x32x16xf32> to vector<32x16xf32>
    %cst_75 = arith.constant dense<0.000000e+00> : vector<16x16xf32>
    %119 = tpu.matmul %94, %118, %cst_75 {dimension_numbers = #tpu.dot_dimension_numbers<[1], [0], [0], [1], [0, 0, 1, 1], [], []>} : vector<16x32xf32>, vector<32x16xf32>, vector<16x16xf32> -> vector<16x16xf32>
    %120 = vector.shape_cast %119 : vector<16x16xf32> to vector<2x8x16xf32>
    %121 = tpu.concatenate %116, %120 in 0 : vector<2x8x16xf32>, vector<2x8x16xf32> -> vector<4x8x16xf32>
    "tpu.trace_start"() <{level = 10 : i32, message = "bqd,bkd->bqk"}> : () -> ()
    %cst_76 = arith.constant dense<0.000000e+00> : vector<4x8x8xf32>
    %122 = tpu.matmul %103, %112, %cst_76 {dimension_numbers = #tpu.dot_dimension_numbers<[2], [2], [1], [1], [0, 0, 0, 1, 1, 1], [0], [0]>} : vector<4x8x16xf32>, vector<4x8x16xf32>, vector<4x8x8xf32> -> vector<4x8x8xf32>
    "tpu.trace_stop"() : () -> ()
    %123 = arith.addf %122, %0 : vector<4x8x8xf32>
    %cst_77 = arith.constant dense<0xFF800000> : vector<4x8xf32>
    %124 = vector.multi_reduction <maximumf>, %123, %cst_77 [2] : vector<4x8x8xf32> to vector<4x8xf32>
    %125 = vector.shape_cast %124 : vector<4x8xf32> to vector<4x8x1xf32>
    %126 = vector.broadcast %125 : vector<4x8x1xf32> to vector<4x8x8xf32>
    %127 = arith.subf %123, %126 : vector<4x8x8xf32>
    %128 = math.exp %127 : vector<4x8x8xf32>
    %cst_78 = arith.constant dense<0.000000e+00> : vector<4x8xf32>
    %129 = vector.multi_reduction <add>, %128, %cst_78 [2] : vector<4x8x8xf32> to vector<4x8xf32>
    %130 = vector.shape_cast %129 : vector<4x8xf32> to vector<4x8x1xf32>
    %131 = tpu.reciprocal %130 {approx = true} : vector<4x8x1xf32> -> vector<4x8x1xf32>
    %132 = vector.broadcast %131 : vector<4x8x1xf32> to vector<4x8x8xf32>
    %133 = arith.mulf %128, %132 : vector<4x8x8xf32>
    "tpu.trace_start"() <{level = 10 : i32, message = "bqk,bkd->bqd"}> : () -> ()
    %cst_79 = arith.constant dense<0.000000e+00> : vector<4x8x16xf32>
    %134 = tpu.matmul %133, %121, %cst_79 {dimension_numbers = #tpu.dot_dimension_numbers<[2], [1], [1], [2], [0, 0, 0, 1, 1, 2], [0], [0]>} : vector<4x8x8xf32>, vector<4x8x16xf32>, vector<4x8x16xf32> -> vector<4x8x16xf32>
    "tpu.trace_stop"() : () -> ()
    %135 = vector.extract_strided_slice %134 {offsets = [0, 0, 0], sizes = [2, 8, 16], strides = [1, 1, 1]} : vector<4x8x16xf32> to vector<2x8x16xf32>
    %136 = vector.shape_cast %135 : vector<2x8x16xf32> to vector<16x16xf32>
    %c2_80 = arith.constant 2 : index
    %c0_81 = arith.constant 0 : index
    %c0_82 = arith.constant 0 : index
    %137 = vector.load %arg5[%c2_80, %c0_81, %c0_82] : memref<12x16x32xf32, #tpu.memory_space<vmem>>, vector<1x16x32xf32>
    %138 = vector.shape_cast %137 : vector<1x16x32xf32> to vector<16x32xf32>
    %cst_83 = arith.constant dense<0.000000e+00> : vector<16x32xf32>
    %139 = tpu.matmul %136, %138, %cst_83 {dimension_numbers = #tpu.dot_dimension_numbers<[1], [0], [0], [1], [0, 0, 1, 1], [], []>} : vector<16x16xf32>, vector<16x32xf32>, vector<16x32xf32> -> vector<16x32xf32>
    %140 = vector.extract_strided_slice %134 {offsets = [2, 0, 0], sizes = [2, 8, 16], strides = [1, 1, 1]} : vector<4x8x16xf32> to vector<2x8x16xf32>
    %141 = vector.shape_cast %140 : vector<2x8x16xf32> to vector<16x16xf32>
    %c3_84 = arith.constant 3 : index
    %c0_85 = arith.constant 0 : index
    %c0_86 = arith.constant 0 : index
    %142 = vector.load %arg5[%c3_84, %c0_85, %c0_86] : memref<12x16x32xf32, #tpu.memory_space<vmem>>, vector<1x16x32xf32>
    %143 = vector.shape_cast %142 : vector<1x16x32xf32> to vector<16x32xf32>
    %cst_87 = arith.constant dense<0.000000e+00> : vector<16x32xf32>
    %144 = tpu.matmul %141, %143, %cst_87 {dimension_numbers = #tpu.dot_dimension_numbers<[1], [0], [0], [1], [0, 0, 1, 1], [], []>} : vector<16x16xf32>, vector<16x32xf32>, vector<16x32xf32> -> vector<16x32xf32>
    %145 = arith.addf %139, %144 : vector<16x32xf32>
    %146 = arith.addf %84, %145 : vector<16x32xf32>
    %147 = arith.mulf %146, %146 : vector<16x32xf32>
    %cst_88 = arith.constant dense<0.000000e+00> : vector<16xf32>
    %148 = vector.multi_reduction <add>, %147, %cst_88 [1] : vector<16x32xf32> to vector<16xf32>
    %149 = vector.shape_cast %148 : vector<16xf32> to vector<16x1xf32>
    %cst_89 = arith.constant 3.200000e+01 : f32
    %150 = vector.broadcast %cst_89 : f32 to vector<16x1xf32>
    %151 = arith.divf %149, %150 : vector<16x1xf32>
    %cst_90 = arith.constant 9.99999997E-7 : f32
    %152 = vector.broadcast %cst_90 : f32 to vector<16x1xf32>
    %153 = arith.addf %151, %152 : vector<16x1xf32>
    %154 = math.rsqrt %153 : vector<16x1xf32>
    %155 = vector.broadcast %154 : vector<16x1xf32> to vector<16x32xf32>
    %156 = arith.mulf %146, %155 : vector<16x32xf32>
    %c1_91 = arith.constant 1 : index
    %c0_92 = arith.constant 0 : index
    %c0_93 = arith.constant 0 : index
    %157 = vector.load %arg6[%c1_91, %c0_92, %c0_93] : memref<4x32x64xf32, #tpu.memory_space<vmem>>, vector<1x32x64xf32>
    %158 = vector.shape_cast %157 : vector<1x32x64xf32> to vector<32x64xf32>
    %cst_94 = arith.constant dense<0.000000e+00> : vector<16x64xf32>
    %159 = tpu.matmul %156, %158, %cst_94 {dimension_numbers = #tpu.dot_dimension_numbers<[1], [0], [0], [1], [0, 0, 1, 1], [], []>} : vector<16x32xf32>, vector<32x64xf32>, vector<16x64xf32> -> vector<16x64xf32>
    %cst_95 = arith.constant 0.000000e+00 : f32
    %160 = vector.broadcast %cst_95 : f32 to vector<16x64xf32>
    %161 = arith.maximumf %159, %160 : vector<16x64xf32>
    %c1_96 = arith.constant 1 : index
    %c0_97 = arith.constant 0 : index
    %c0_98 = arith.constant 0 : index
    %162 = vector.load %arg7[%c1_96, %c0_97, %c0_98] : memref<4x64x32xf32, #tpu.memory_space<vmem>>, vector<1x64x32xf32>
    %163 = vector.shape_cast %162 : vector<1x64x32xf32> to vector<64x32xf32>
    %cst_99 = arith.constant dense<0.000000e+00> : vector<16x32xf32>
    %164 = tpu.matmul %161, %163, %cst_99 {dimension_numbers = #tpu.dot_dimension_numbers<[1], [0], [0], [1], [0, 0, 1, 1], [], []>} : vector<16x64xf32>, vector<64x32xf32>, vector<16x32xf32> -> vector<16x32xf32>
    %165 = arith.addf %146, %164 : vector<16x32xf32>
    %166 = arith.mulf %165, %165 : vector<16x32xf32>
    %cst_100 = arith.constant dense<0.000000e+00> : vector<16xf32>
    %167 = vector.multi_reduction <add>, %166, %cst_100 [1] : vector<16x32xf32> to vector<16xf32>
    %168 = vector.shape_cast %167 : vector<16xf32> to vector<16x1xf32>
    %cst_101 = arith.constant 3.200000e+01 : f32
    %169 = vector.broadcast %cst_101 : f32 to vector<16x1xf32>
    %170 = arith.divf %168, %169 : vector<16x1xf32>
    %cst_102 = arith.constant 9.99999997E-7 : f32
    %171 = vector.broadcast %cst_102 : f32 to vector<16x1xf32>
    %172 = arith.addf %170, %171 : vector<16x1xf32>
    %173 = math.rsqrt %172 : vector<16x1xf32>
    %174 = vector.broadcast %173 : vector<16x1xf32> to vector<16x32xf32>
    %175 = arith.mulf %165, %174 : vector<16x32xf32>
    %c28 = arith.constant 28 : index
    %c0_103 = arith.constant 0 : index
    %c0_104 = arith.constant 0 : index
    %176 = vector.load %arg4[%c28, %c0_103, %c0_104] : memref<36x32x16xf32, #tpu.memory_space<vmem>>, vector<1x32x16xf32>
    %177 = vector.shape_cast %176 : vector<1x32x16xf32> to vector<32x16xf32>
    %cst_105 = arith.constant dense<0.000000e+00> : vector<16x16xf32>
    %178 = tpu.matmul %175, %177, %cst_105 {dimension_numbers = #tpu.dot_dimension_numbers<[1], [0], [0], [1], [0, 0, 1, 1], [], []>} : vector<16x32xf32>, vector<32x16xf32>, vector<16x16xf32> -> vector<16x16xf32>
    %179 = vector.shape_cast %178 : vector<16x16xf32> to vector<2x8x16xf32>
    %c29 = arith.constant 29 : index
    %c0_106 = arith.constant 0 : index
    %c0_107 = arith.constant 0 : index
    %180 = vector.load %arg4[%c29, %c0_106, %c0_107] : memref<36x32x16xf32, #tpu.memory_space<vmem>>, vector<1x32x16xf32>
    %181 = vector.shape_cast %180 : vector<1x32x16xf32> to vector<32x16xf32>
    %cst_108 = arith.constant dense<0.000000e+00> : vector<16x16xf32>
    %182 = tpu.matmul %175, %181, %cst_108 {dimension_numbers = #tpu.dot_dimension_numbers<[1], [0], [0], [1], [0, 0, 1, 1], [], []>} : vector<16x32xf32>, vector<32x16xf32>, vector<16x16xf32> -> vector<16x16xf32>
    %183 = vector.shape_cast %182 : vector<16x16xf32> to vector<2x8x16xf32>
    %184 = tpu.concatenate %179, %183 in 0 : vector<2x8x16xf32>, vector<2x8x16xf32> -> vector<4x8x16xf32>
    %c32 = arith.constant 32 : index
    %c0_109 = arith.constant 0 : index
    %c0_110 = arith.constant 0 : index
    %185 = vector.load %arg4[%c32, %c0_109, %c0_110] : memref<36x32x16xf32, #tpu.memory_space<vmem>>, vector<1x32x16xf32>
    %186 = vector.shape_cast %185 : vector<1x32x16xf32> to vector<32x16xf32>
    %cst_111 = arith.constant dense<0.000000e+00> : vector<16x16xf32>
    %187 = tpu.matmul %175, %186, %cst_111 {dimension_numbers = #tpu.dot_dimension_numbers<[1], [0], [0], [1], [0, 0, 1, 1], [], []>} : vector<16x32xf32>, vector<32x16xf32>, vector<16x16xf32> -> vector<16x16xf32>
    %188 = vector.shape_cast %187 : vector<16x16xf32> to vector<2x8x16xf32>
    %c33 = arith.constant 33 : index
    %c0_112 = arith.constant 0 : index
    %c0_113 = arith.constant 0 : index
    %189 = vector.load %arg4[%c33, %c0_112, %c0_113] : memref<36x32x16xf32, #tpu.memory_space<vmem>>, vector<1x32x16xf32>
    %190 = vector.shape_cast %189 : vector<1x32x16xf32> to vector<32x16xf32>
    %cst_114 = arith.constant dense<0.000000e+00> : vector<16x16xf32>
    %191 = tpu.matmul %175, %190, %cst_114 {dimension_numbers = #tpu.dot_dimension_numbers<[1], [0], [0], [1], [0, 0, 1, 1], [], []>} : vector<16x32xf32>, vector<32x16xf32>, vector<16x16xf32> -> vector<16x16xf32>
    %192 = vector.shape_cast %191 : vector<16x16xf32> to vector<2x8x16xf32>
    %193 = tpu.concatenate %188, %192 in 0 : vector<2x8x16xf32>, vector<2x8x16xf32> -> vector<4x8x16xf32>
    %c30 = arith.constant 30 : index
    %c0_115 = arith.constant 0 : index
    %c0_116 = arith.constant 0 : index
    %194 = vector.load %arg4[%c30, %c0_115, %c0_116] : memref<36x32x16xf32, #tpu.memory_space<vmem>>, vector<1x32x16xf32>
    %195 = vector.shape_cast %194 : vector<1x32x16xf32> to vector<32x16xf32>
    %cst_117 = arith.constant dense<0.000000e+00> : vector<16x16xf32>
    %196 = tpu.matmul %175, %195, %cst_117 {dimension_numbers = #tpu.dot_dimension_numbers<[1], [0], [0], [1], [0, 0, 1, 1], [], []>} : vector<16x32xf32>, vector<32x16xf32>, vector<16x16xf32> -> vector<16x16xf32>
    %197 = vector.shape_cast %196 : vector<16x16xf32> to vector<2x8x16xf32>
    %c31 = arith.constant 31 : index
    %c0_118 = arith.constant 0 : index
    %c0_119 = arith.constant 0 : index
    %198 = vector.load %arg4[%c31, %c0_118, %c0_119] : memref<36x32x16xf32, #tpu.memory_space<vmem>>, vector<1x32x16xf32>
    %199 = vector.shape_cast %198 : vector<1x32x16xf32> to vector<32x16xf32>
    %cst_120 = arith.constant dense<0.000000e+00> : vector<16x16xf32>
    %200 = tpu.matmul %175, %199, %cst_120 {dimension_numbers = #tpu.dot_dimension_numbers<[1], [0], [0], [1], [0, 0, 1, 1], [], []>} : vector<16x32xf32>, vector<32x16xf32>, vector<16x16xf32> -> vector<16x16xf32>
    %201 = vector.shape_cast %200 : vector<16x16xf32> to vector<2x8x16xf32>
    %202 = tpu.concatenate %197, %201 in 0 : vector<2x8x16xf32>, vector<2x8x16xf32> -> vector<4x8x16xf32>
    %c34 = arith.constant 34 : index
    %c0_121 = arith.constant 0 : index
    %c0_122 = arith.constant 0 : index
    %203 = vector.load %arg4[%c34, %c0_121, %c0_122] : memref<36x32x16xf32, #tpu.memory_space<vmem>>, vector<1x32x16xf32>
    %204 = vector.shape_cast %203 : vector<1x32x16xf32> to vector<32x16xf32>
    %cst_123 = arith.constant dense<0.000000e+00> : vector<16x16xf32>
    %205 = tpu.matmul %175, %204, %cst_123 {dimension_numbers = #tpu.dot_dimension_numbers<[1], [0], [0], [1], [0, 0, 1, 1], [], []>} : vector<16x32xf32>, vector<32x16xf32>, vector<16x16xf32> -> vector<16x16xf32>
    %206 = vector.shape_cast %205 : vector<16x16xf32> to vector<2x8x16xf32>
    %c35 = arith.constant 35 : index
    %c0_124 = arith.constant 0 : index
    %c0_125 = arith.constant 0 : index
    %207 = vector.load %arg4[%c35, %c0_124, %c0_125] : memref<36x32x16xf32, #tpu.memory_space<vmem>>, vector<1x32x16xf32>
    %208 = vector.shape_cast %207 : vector<1x32x16xf32> to vector<32x16xf32>
    %cst_126 = arith.constant dense<0.000000e+00> : vector<16x16xf32>
    %209 = tpu.matmul %175, %208, %cst_126 {dimension_numbers = #tpu.dot_dimension_numbers<[1], [0], [0], [1], [0, 0, 1, 1], [], []>} : vector<16x32xf32>, vector<32x16xf32>, vector<16x16xf32> -> vector<16x16xf32>
    %210 = vector.shape_cast %209 : vector<16x16xf32> to vector<2x8x16xf32>
    %211 = tpu.concatenate %206, %210 in 0 : vector<2x8x16xf32>, vector<2x8x16xf32> -> vector<4x8x16xf32>
    %c16 = arith.constant 16 : index
    %c0_127 = arith.constant 0 : index
    %212 = vector.load %arg0[%c16, %c0_127] : memref<32x32xf32, #tpu.memory_space<vmem>>, vector<16x32xf32>
    %213 = arith.mulf %212, %212 : vector<16x32xf32>
    %cst_128 = arith.constant dense<0.000000e+00> : vector<16xf32>
    %214 = vector.multi_reduction <add>, %213, %cst_128 [1] : vector<16x32xf32> to vector<16xf32>
    %215 = vector.shape_cast %214 : vector<16xf32> to vector<16x1xf32>
    %cst_129 = arith.constant 3.200000e+01 : f32
    %216 = vector.broadcast %cst_129 : f32 to vector<16x1xf32>
    %217 = arith.divf %215, %216 : vector<16x1xf32>
    %cst_130 = arith.constant 9.99999997E-7 : f32
    %218 = vector.broadcast %cst_130 : f32 to vector<16x1xf32>
    %219 = arith.addf %217, %218 : vector<16x1xf32>
    %220 = math.rsqrt %219 : vector<16x1xf32>
    %221 = vector.broadcast %220 : vector<16x1xf32> to vector<16x32xf32>
    %222 = arith.mulf %212, %221 : vector<16x32xf32>
    %c12 = arith.constant 12 : index
    %c0_131 = arith.constant 0 : index
    %c0_132 = arith.constant 0 : index
    %223 = vector.load %arg4[%c12, %c0_131, %c0_132] : memref<36x32x16xf32, #tpu.memory_space<vmem>>, vector<1x32x16xf32>
    %224 = vector.shape_cast %223 : vector<1x32x16xf32> to vector<32x16xf32>
    %cst_133 = arith.constant dense<0.000000e+00> : vector<16x16xf32>
    %225 = tpu.matmul %222, %224, %cst_133 {dimension_numbers = #tpu.dot_dimension_numbers<[1], [0], [0], [1], [0, 0, 1, 1], [], []>} : vector<16x32xf32>, vector<32x16xf32>, vector<16x16xf32> -> vector<16x16xf32>
    %226 = vector.shape_cast %225 : vector<16x16xf32> to vector<2x8x16xf32>
    %c13 = arith.constant 13 : index
    %c0_134 = arith.constant 0 : index
    %c0_135 = arith.constant 0 : index
    %227 = vector.load %arg4[%c13, %c0_134, %c0_135] : memref<36x32x16xf32, #tpu.memory_space<vmem>>, vector<1x32x16xf32>
    %228 = vector.shape_cast %227 : vector<1x32x16xf32> to vector<32x16xf32>
    %cst_136 = arith.constant dense<0.000000e+00> : vector<16x16xf32>
    %229 = tpu.matmul %222, %228, %cst_136 {dimension_numbers = #tpu.dot_dimension_numbers<[1], [0], [0], [1], [0, 0, 1, 1], [], []>} : vector<16x32xf32>, vector<32x16xf32>, vector<16x16xf32> -> vector<16x16xf32>
    %230 = vector.shape_cast %229 : vector<16x16xf32> to vector<2x8x16xf32>
    %231 = tpu.concatenate %226, %230 in 0 : vector<2x8x16xf32>, vector<2x8x16xf32> -> vector<4x8x16xf32>
    %c14 = arith.constant 14 : index
    %c0_137 = arith.constant 0 : index
    %c0_138 = arith.constant 0 : index
    %232 = vector.load %arg4[%c14, %c0_137, %c0_138] : memref<36x32x16xf32, #tpu.memory_space<vmem>>, vector<1x32x16xf32>
    %233 = vector.shape_cast %232 : vector<1x32x16xf32> to vector<32x16xf32>
    %cst_139 = arith.constant dense<0.000000e+00> : vector<16x16xf32>
    %234 = tpu.matmul %222, %233, %cst_139 {dimension_numbers = #tpu.dot_dimension_numbers<[1], [0], [0], [1], [0, 0, 1, 1], [], []>} : vector<16x32xf32>, vector<32x16xf32>, vector<16x16xf32> -> vector<16x16xf32>
    %235 = vector.shape_cast %234 : vector<16x16xf32> to vector<2x8x16xf32>
    %c15 = arith.constant 15 : index
    %c0_140 = arith.constant 0 : index
    %c0_141 = arith.constant 0 : index
    %236 = vector.load %arg4[%c15, %c0_140, %c0_141] : memref<36x32x16xf32, #tpu.memory_space<vmem>>, vector<1x32x16xf32>
    %237 = vector.shape_cast %236 : vector<1x32x16xf32> to vector<32x16xf32>
    %cst_142 = arith.constant dense<0.000000e+00> : vector<16x16xf32>
    %238 = tpu.matmul %222, %237, %cst_142 {dimension_numbers = #tpu.dot_dimension_numbers<[1], [0], [0], [1], [0, 0, 1, 1], [], []>} : vector<16x32xf32>, vector<32x16xf32>, vector<16x16xf32> -> vector<16x16xf32>
    %239 = vector.shape_cast %238 : vector<16x16xf32> to vector<2x8x16xf32>
    %240 = tpu.concatenate %235, %239 in 0 : vector<2x8x16xf32>, vector<2x8x16xf32> -> vector<4x8x16xf32>
    %c16_143 = arith.constant 16 : index
    %c0_144 = arith.constant 0 : index
    %c0_145 = arith.constant 0 : index
    %241 = vector.load %arg4[%c16_143, %c0_144, %c0_145] : memref<36x32x16xf32, #tpu.memory_space<vmem>>, vector<1x32x16xf32>
    %242 = vector.shape_cast %241 : vector<1x32x16xf32> to vector<32x16xf32>
    %cst_146 = arith.constant dense<0.000000e+00> : vector<16x16xf32>
    %243 = tpu.matmul %222, %242, %cst_146 {dimension_numbers = #tpu.dot_dimension_numbers<[1], [0], [0], [1], [0, 0, 1, 1], [], []>} : vector<16x32xf32>, vector<32x16xf32>, vector<16x16xf32> -> vector<16x16xf32>
    %244 = vector.shape_cast %243 : vector<16x16xf32> to vector<2x8x16xf32>
    %c17 = arith.constant 17 : index
    %c0_147 = arith.constant 0 : index
    %c0_148 = arith.constant 0 : index
    %245 = vector.load %arg4[%c17, %c0_147, %c0_148] : memref<36x32x16xf32, #tpu.memory_space<vmem>>, vector<1x32x16xf32>
    %246 = vector.shape_cast %245 : vector<1x32x16xf32> to vector<32x16xf32>
    %cst_149 = arith.constant dense<0.000000e+00> : vector<16x16xf32>
    %247 = tpu.matmul %222, %246, %cst_149 {dimension_numbers = #tpu.dot_dimension_numbers<[1], [0], [0], [1], [0, 0, 1, 1], [], []>} : vector<16x32xf32>, vector<32x16xf32>, vector<16x16xf32> -> vector<16x16xf32>
    %248 = vector.shape_cast %247 : vector<16x16xf32> to vector<2x8x16xf32>
    %249 = tpu.concatenate %244, %248 in 0 : vector<2x8x16xf32>, vector<2x8x16xf32> -> vector<4x8x16xf32>
    "tpu.trace_start"() <{level = 10 : i32, message = "bqd,bkd->bqk"}> : () -> ()
    %cst_150 = arith.constant dense<0.000000e+00> : vector<4x8x8xf32>
    %250 = tpu.matmul %231, %240, %cst_150 {dimension_numbers = #tpu.dot_dimension_numbers<[2], [2], [1], [1], [0, 0, 0, 1, 1, 1], [0], [0]>} : vector<4x8x16xf32>, vector<4x8x16xf32>, vector<4x8x8xf32> -> vector<4x8x8xf32>
    "tpu.trace_stop"() : () -> ()
    %251 = arith.addf %250, %1 : vector<4x8x8xf32>
    %cst_151 = arith.constant dense<0xFF800000> : vector<4x8xf32>
    %252 = vector.multi_reduction <maximumf>, %251, %cst_151 [2] : vector<4x8x8xf32> to vector<4x8xf32>
    %253 = vector.shape_cast %252 : vector<4x8xf32> to vector<4x8x1xf32>
    %254 = vector.broadcast %253 : vector<4x8x1xf32> to vector<4x8x8xf32>
    %255 = arith.subf %251, %254 : vector<4x8x8xf32>
    %256 = math.exp %255 : vector<4x8x8xf32>
    %cst_152 = arith.constant dense<0.000000e+00> : vector<4x8xf32>
    %257 = vector.multi_reduction <add>, %256, %cst_152 [2] : vector<4x8x8xf32> to vector<4x8xf32>
    %258 = vector.shape_cast %257 : vector<4x8xf32> to vector<4x8x1xf32>
    %259 = tpu.reciprocal %258 {approx = true} : vector<4x8x1xf32> -> vector<4x8x1xf32>
    %260 = vector.broadcast %259 : vector<4x8x1xf32> to vector<4x8x8xf32>
    %261 = arith.mulf %256, %260 : vector<4x8x8xf32>
    "tpu.trace_start"() <{level = 10 : i32, message = "bqk,bkd->bqd"}> : () -> ()
    %cst_153 = arith.constant dense<0.000000e+00> : vector<4x8x16xf32>
    %262 = tpu.matmul %261, %249, %cst_153 {dimension_numbers = #tpu.dot_dimension_numbers<[2], [1], [1], [2], [0, 0, 0, 1, 1, 2], [0], [0]>} : vector<4x8x8xf32>, vector<4x8x16xf32>, vector<4x8x16xf32> -> vector<4x8x16xf32>
    "tpu.trace_stop"() : () -> ()
    %263 = vector.extract_strided_slice %262 {offsets = [0, 0, 0], sizes = [2, 8, 16], strides = [1, 1, 1]} : vector<4x8x16xf32> to vector<2x8x16xf32>
    %264 = vector.shape_cast %263 : vector<2x8x16xf32> to vector<16x16xf32>
    %c4_154 = arith.constant 4 : index
    %c0_155 = arith.constant 0 : index
    %c0_156 = arith.constant 0 : index
    %265 = vector.load %arg5[%c4_154, %c0_155, %c0_156] : memref<12x16x32xf32, #tpu.memory_space<vmem>>, vector<1x16x32xf32>
    %266 = vector.shape_cast %265 : vector<1x16x32xf32> to vector<16x32xf32>
    %cst_157 = arith.constant dense<0.000000e+00> : vector<16x32xf32>
    %267 = tpu.matmul %264, %266, %cst_157 {dimension_numbers = #tpu.dot_dimension_numbers<[1], [0], [0], [1], [0, 0, 1, 1], [], []>} : vector<16x16xf32>, vector<16x32xf32>, vector<16x32xf32> -> vector<16x32xf32>
    %268 = vector.extract_strided_slice %262 {offsets = [2, 0, 0], sizes = [2, 8, 16], strides = [1, 1, 1]} : vector<4x8x16xf32> to vector<2x8x16xf32>
    %269 = vector.shape_cast %268 : vector<2x8x16xf32> to vector<16x16xf32>
    %c5_158 = arith.constant 5 : index
    %c0_159 = arith.constant 0 : index
    %c0_160 = arith.constant 0 : index
    %270 = vector.load %arg5[%c5_158, %c0_159, %c0_160] : memref<12x16x32xf32, #tpu.memory_space<vmem>>, vector<1x16x32xf32>
    %271 = vector.shape_cast %270 : vector<1x16x32xf32> to vector<16x32xf32>
    %cst_161 = arith.constant dense<0.000000e+00> : vector<16x32xf32>
    %272 = tpu.matmul %269, %271, %cst_161 {dimension_numbers = #tpu.dot_dimension_numbers<[1], [0], [0], [1], [0, 0, 1, 1], [], []>} : vector<16x16xf32>, vector<16x32xf32>, vector<16x32xf32> -> vector<16x32xf32>
    %273 = arith.addf %267, %272 : vector<16x32xf32>
    %274 = arith.addf %212, %273 : vector<16x32xf32>
    %275 = arith.mulf %274, %274 : vector<16x32xf32>
    %cst_162 = arith.constant dense<0.000000e+00> : vector<16xf32>
    %276 = vector.multi_reduction <add>, %275, %cst_162 [1] : vector<16x32xf32> to vector<16xf32>
    %277 = vector.shape_cast %276 : vector<16xf32> to vector<16x1xf32>
    %cst_163 = arith.constant 3.200000e+01 : f32
    %278 = vector.broadcast %cst_163 : f32 to vector<16x1xf32>
    %279 = arith.divf %277, %278 : vector<16x1xf32>
    %cst_164 = arith.constant 9.99999997E-7 : f32
    %280 = vector.broadcast %cst_164 : f32 to vector<16x1xf32>
    %281 = arith.addf %279, %280 : vector<16x1xf32>
    %282 = math.rsqrt %281 : vector<16x1xf32>
    %283 = vector.broadcast %282 : vector<16x1xf32> to vector<16x32xf32>
    %284 = arith.mulf %274, %283 : vector<16x32xf32>
    %c24 = arith.constant 24 : index
    %c0_165 = arith.constant 0 : index
    %c0_166 = arith.constant 0 : index
    %285 = vector.load %arg4[%c24, %c0_165, %c0_166] : memref<36x32x16xf32, #tpu.memory_space<vmem>>, vector<1x32x16xf32>
    %286 = vector.shape_cast %285 : vector<1x32x16xf32> to vector<32x16xf32>
    %cst_167 = arith.constant dense<0.000000e+00> : vector<16x16xf32>
    %287 = tpu.matmul %284, %286, %cst_167 {dimension_numbers = #tpu.dot_dimension_numbers<[1], [0], [0], [1], [0, 0, 1, 1], [], []>} : vector<16x32xf32>, vector<32x16xf32>, vector<16x16xf32> -> vector<16x16xf32>
    %288 = vector.shape_cast %287 : vector<16x16xf32> to vector<2x8x16xf32>
    %c25 = arith.constant 25 : index
    %c0_168 = arith.constant 0 : index
    %c0_169 = arith.constant 0 : index
    %289 = vector.load %arg4[%c25, %c0_168, %c0_169] : memref<36x32x16xf32, #tpu.memory_space<vmem>>, vector<1x32x16xf32>
    %290 = vector.shape_cast %289 : vector<1x32x16xf32> to vector<32x16xf32>
    %cst_170 = arith.constant dense<0.000000e+00> : vector<16x16xf32>
    %291 = tpu.matmul %284, %290, %cst_170 {dimension_numbers = #tpu.dot_dimension_numbers<[1], [0], [0], [1], [0, 0, 1, 1], [], []>} : vector<16x32xf32>, vector<32x16xf32>, vector<16x16xf32> -> vector<16x16xf32>
    %292 = vector.shape_cast %291 : vector<16x16xf32> to vector<2x8x16xf32>
    %293 = tpu.concatenate %288, %292 in 0 : vector<2x8x16xf32>, vector<2x8x16xf32> -> vector<4x8x16xf32>
    "tpu.trace_start"() <{level = 10 : i32, message = "bqd,bkd->bqk"}> : () -> ()
    %cst_171 = arith.constant dense<0.000000e+00> : vector<4x8x8xf32>
    %294 = tpu.matmul %293, %184, %cst_171 {dimension_numbers = #tpu.dot_dimension_numbers<[2], [2], [1], [1], [0, 0, 0, 1, 1, 1], [0], [0]>} : vector<4x8x16xf32>, vector<4x8x16xf32>, vector<4x8x8xf32> -> vector<4x8x8xf32>
    "tpu.trace_stop"() : () -> ()
    %295 = arith.addf %294, %2 : vector<4x8x8xf32>
    %cst_172 = arith.constant dense<0xFF800000> : vector<4x8xf32>
    %296 = vector.multi_reduction <maximumf>, %295, %cst_172 [2] : vector<4x8x8xf32> to vector<4x8xf32>
    %297 = vector.shape_cast %296 : vector<4x8xf32> to vector<4x8x1xf32>
    %298 = vector.broadcast %297 : vector<4x8x1xf32> to vector<4x8x8xf32>
    %299 = arith.subf %295, %298 : vector<4x8x8xf32>
    %300 = math.exp %299 : vector<4x8x8xf32>
    %cst_173 = arith.constant dense<0.000000e+00> : vector<4x8xf32>
    %301 = vector.multi_reduction <add>, %300, %cst_173 [2] : vector<4x8x8xf32> to vector<4x8xf32>
    %302 = vector.shape_cast %301 : vector<4x8xf32> to vector<4x8x1xf32>
    %303 = tpu.reciprocal %302 {approx = true} : vector<4x8x1xf32> -> vector<4x8x1xf32>
    %304 = vector.broadcast %303 : vector<4x8x1xf32> to vector<4x8x8xf32>
    %305 = arith.mulf %300, %304 : vector<4x8x8xf32>
    "tpu.trace_start"() <{level = 10 : i32, message = "bqk,bkd->bqd"}> : () -> ()
    %cst_174 = arith.constant dense<0.000000e+00> : vector<4x8x16xf32>
    %306 = tpu.matmul %305, %202, %cst_174 {dimension_numbers = #tpu.dot_dimension_numbers<[2], [1], [1], [2], [0, 0, 0, 1, 1, 2], [0], [0]>} : vector<4x8x8xf32>, vector<4x8x16xf32>, vector<4x8x16xf32> -> vector<4x8x16xf32>
    "tpu.trace_stop"() : () -> ()
    %307 = vector.extract_strided_slice %306 {offsets = [0, 0, 0], sizes = [2, 8, 16], strides = [1, 1, 1]} : vector<4x8x16xf32> to vector<2x8x16xf32>
    %308 = vector.shape_cast %307 : vector<2x8x16xf32> to vector<16x16xf32>
    %c8_175 = arith.constant 8 : index
    %c0_176 = arith.constant 0 : index
    %c0_177 = arith.constant 0 : index
    %309 = vector.load %arg5[%c8_175, %c0_176, %c0_177] : memref<12x16x32xf32, #tpu.memory_space<vmem>>, vector<1x16x32xf32>
    %310 = vector.shape_cast %309 : vector<1x16x32xf32> to vector<16x32xf32>
    %cst_178 = arith.constant dense<0.000000e+00> : vector<16x32xf32>
    %311 = tpu.matmul %308, %310, %cst_178 {dimension_numbers = #tpu.dot_dimension_numbers<[1], [0], [0], [1], [0, 0, 1, 1], [], []>} : vector<16x16xf32>, vector<16x32xf32>, vector<16x32xf32> -> vector<16x32xf32>
    %312 = vector.extract_strided_slice %306 {offsets = [2, 0, 0], sizes = [2, 8, 16], strides = [1, 1, 1]} : vector<4x8x16xf32> to vector<2x8x16xf32>
    %313 = vector.shape_cast %312 : vector<2x8x16xf32> to vector<16x16xf32>
    %c9_179 = arith.constant 9 : index
    %c0_180 = arith.constant 0 : index
    %c0_181 = arith.constant 0 : index
    %314 = vector.load %arg5[%c9_179, %c0_180, %c0_181] : memref<12x16x32xf32, #tpu.memory_space<vmem>>, vector<1x16x32xf32>
    %315 = vector.shape_cast %314 : vector<1x16x32xf32> to vector<16x32xf32>
    %cst_182 = arith.constant dense<0.000000e+00> : vector<16x32xf32>
    %316 = tpu.matmul %313, %315, %cst_182 {dimension_numbers = #tpu.dot_dimension_numbers<[1], [0], [0], [1], [0, 0, 1, 1], [], []>} : vector<16x16xf32>, vector<16x32xf32>, vector<16x32xf32> -> vector<16x32xf32>
    %317 = arith.addf %311, %316 : vector<16x32xf32>
    %318 = arith.addf %274, %317 : vector<16x32xf32>
    %319 = arith.mulf %318, %318 : vector<16x32xf32>
    %cst_183 = arith.constant dense<0.000000e+00> : vector<16xf32>
    %320 = vector.multi_reduction <add>, %319, %cst_183 [1] : vector<16x32xf32> to vector<16xf32>
    %321 = vector.shape_cast %320 : vector<16xf32> to vector<16x1xf32>
    %cst_184 = arith.constant 3.200000e+01 : f32
    %322 = vector.broadcast %cst_184 : f32 to vector<16x1xf32>
    %323 = arith.divf %321, %322 : vector<16x1xf32>
    %cst_185 = arith.constant 9.99999997E-7 : f32
    %324 = vector.broadcast %cst_185 : f32 to vector<16x1xf32>
    %325 = arith.addf %323, %324 : vector<16x1xf32>
    %326 = math.rsqrt %325 : vector<16x1xf32>
    %327 = vector.broadcast %326 : vector<16x1xf32> to vector<16x32xf32>
    %328 = arith.mulf %318, %327 : vector<16x32xf32>
    %c2_186 = arith.constant 2 : index
    %c0_187 = arith.constant 0 : index
    %c0_188 = arith.constant 0 : index
    %329 = vector.load %arg6[%c2_186, %c0_187, %c0_188] : memref<4x32x64xf32, #tpu.memory_space<vmem>>, vector<1x32x64xf32>
    %330 = vector.shape_cast %329 : vector<1x32x64xf32> to vector<32x64xf32>
    %cst_189 = arith.constant dense<0.000000e+00> : vector<16x64xf32>
    %331 = tpu.matmul %328, %330, %cst_189 {dimension_numbers = #tpu.dot_dimension_numbers<[1], [0], [0], [1], [0, 0, 1, 1], [], []>} : vector<16x32xf32>, vector<32x64xf32>, vector<16x64xf32> -> vector<16x64xf32>
    %cst_190 = arith.constant 0.000000e+00 : f32
    %332 = vector.broadcast %cst_190 : f32 to vector<16x64xf32>
    %333 = arith.maximumf %331, %332 : vector<16x64xf32>
    %c2_191 = arith.constant 2 : index
    %c0_192 = arith.constant 0 : index
    %c0_193 = arith.constant 0 : index
    %334 = vector.load %arg7[%c2_191, %c0_192, %c0_193] : memref<4x64x32xf32, #tpu.memory_space<vmem>>, vector<1x64x32xf32>
    %335 = vector.shape_cast %334 : vector<1x64x32xf32> to vector<64x32xf32>
    %cst_194 = arith.constant dense<0.000000e+00> : vector<16x32xf32>
    %336 = tpu.matmul %333, %335, %cst_194 {dimension_numbers = #tpu.dot_dimension_numbers<[1], [0], [0], [1], [0, 0, 1, 1], [], []>} : vector<16x64xf32>, vector<64x32xf32>, vector<16x32xf32> -> vector<16x32xf32>
    %337 = arith.addf %318, %336 : vector<16x32xf32>
    %338 = arith.mulf %337, %337 : vector<16x32xf32>
    %cst_195 = arith.constant dense<0.000000e+00> : vector<16xf32>
    %339 = vector.multi_reduction <add>, %338, %cst_195 [1] : vector<16x32xf32> to vector<16xf32>
    %340 = vector.shape_cast %339 : vector<16xf32> to vector<16x1xf32>
    %cst_196 = arith.constant 3.200000e+01 : f32
    %341 = vector.broadcast %cst_196 : f32 to vector<16x1xf32>
    %342 = arith.divf %340, %341 : vector<16x1xf32>
    %cst_197 = arith.constant 9.99999997E-7 : f32
    %343 = vector.broadcast %cst_197 : f32 to vector<16x1xf32>
    %344 = arith.addf %342, %343 : vector<16x1xf32>
    %345 = math.rsqrt %344 : vector<16x1xf32>
    %346 = vector.broadcast %345 : vector<16x1xf32> to vector<16x32xf32>
    %347 = arith.mulf %337, %346 : vector<16x32xf32>
    %c18 = arith.constant 18 : index
    %c0_198 = arith.constant 0 : index
    %c0_199 = arith.constant 0 : index
    %348 = vector.load %arg4[%c18, %c0_198, %c0_199] : memref<36x32x16xf32, #tpu.memory_space<vmem>>, vector<1x32x16xf32>
    %349 = vector.shape_cast %348 : vector<1x32x16xf32> to vector<32x16xf32>
    %cst_200 = arith.constant dense<0.000000e+00> : vector<16x16xf32>
    %350 = tpu.matmul %347, %349, %cst_200 {dimension_numbers = #tpu.dot_dimension_numbers<[1], [0], [0], [1], [0, 0, 1, 1], [], []>} : vector<16x32xf32>, vector<32x16xf32>, vector<16x16xf32> -> vector<16x16xf32>
    %351 = vector.shape_cast %350 : vector<16x16xf32> to vector<2x8x16xf32>
    %c19 = arith.constant 19 : index
    %c0_201 = arith.constant 0 : index
    %c0_202 = arith.constant 0 : index
    %352 = vector.load %arg4[%c19, %c0_201, %c0_202] : memref<36x32x16xf32, #tpu.memory_space<vmem>>, vector<1x32x16xf32>
    %353 = vector.shape_cast %352 : vector<1x32x16xf32> to vector<32x16xf32>
    %cst_203 = arith.constant dense<0.000000e+00> : vector<16x16xf32>
    %354 = tpu.matmul %347, %353, %cst_203 {dimension_numbers = #tpu.dot_dimension_numbers<[1], [0], [0], [1], [0, 0, 1, 1], [], []>} : vector<16x32xf32>, vector<32x16xf32>, vector<16x16xf32> -> vector<16x16xf32>
    %355 = vector.shape_cast %354 : vector<16x16xf32> to vector<2x8x16xf32>
    %356 = tpu.concatenate %351, %355 in 0 : vector<2x8x16xf32>, vector<2x8x16xf32> -> vector<4x8x16xf32>
    %c20 = arith.constant 20 : index
    %c0_204 = arith.constant 0 : index
    %c0_205 = arith.constant 0 : index
    %357 = vector.load %arg4[%c20, %c0_204, %c0_205] : memref<36x32x16xf32, #tpu.memory_space<vmem>>, vector<1x32x16xf32>
    %358 = vector.shape_cast %357 : vector<1x32x16xf32> to vector<32x16xf32>
    %cst_206 = arith.constant dense<0.000000e+00> : vector<16x16xf32>
    %359 = tpu.matmul %347, %358, %cst_206 {dimension_numbers = #tpu.dot_dimension_numbers<[1], [0], [0], [1], [0, 0, 1, 1], [], []>} : vector<16x32xf32>, vector<32x16xf32>, vector<16x16xf32> -> vector<16x16xf32>
    %360 = vector.shape_cast %359 : vector<16x16xf32> to vector<2x8x16xf32>
    %c21 = arith.constant 21 : index
    %c0_207 = arith.constant 0 : index
    %c0_208 = arith.constant 0 : index
    %361 = vector.load %arg4[%c21, %c0_207, %c0_208] : memref<36x32x16xf32, #tpu.memory_space<vmem>>, vector<1x32x16xf32>
    %362 = vector.shape_cast %361 : vector<1x32x16xf32> to vector<32x16xf32>
    %cst_209 = arith.constant dense<0.000000e+00> : vector<16x16xf32>
    %363 = tpu.matmul %347, %362, %cst_209 {dimension_numbers = #tpu.dot_dimension_numbers<[1], [0], [0], [1], [0, 0, 1, 1], [], []>} : vector<16x32xf32>, vector<32x16xf32>, vector<16x16xf32> -> vector<16x16xf32>
    %364 = vector.shape_cast %363 : vector<16x16xf32> to vector<2x8x16xf32>
    %365 = tpu.concatenate %360, %364 in 0 : vector<2x8x16xf32>, vector<2x8x16xf32> -> vector<4x8x16xf32>
    %c22 = arith.constant 22 : index
    %c0_210 = arith.constant 0 : index
    %c0_211 = arith.constant 0 : index
    %366 = vector.load %arg4[%c22, %c0_210, %c0_211] : memref<36x32x16xf32, #tpu.memory_space<vmem>>, vector<1x32x16xf32>
    %367 = vector.shape_cast %366 : vector<1x32x16xf32> to vector<32x16xf32>
    %cst_212 = arith.constant dense<0.000000e+00> : vector<16x16xf32>
    %368 = tpu.matmul %347, %367, %cst_212 {dimension_numbers = #tpu.dot_dimension_numbers<[1], [0], [0], [1], [0, 0, 1, 1], [], []>} : vector<16x32xf32>, vector<32x16xf32>, vector<16x16xf32> -> vector<16x16xf32>
    %369 = vector.shape_cast %368 : vector<16x16xf32> to vector<2x8x16xf32>
    %c23 = arith.constant 23 : index
    %c0_213 = arith.constant 0 : index
    %c0_214 = arith.constant 0 : index
    %370 = vector.load %arg4[%c23, %c0_213, %c0_214] : memref<36x32x16xf32, #tpu.memory_space<vmem>>, vector<1x32x16xf32>
    %371 = vector.shape_cast %370 : vector<1x32x16xf32> to vector<32x16xf32>
    %cst_215 = arith.constant dense<0.000000e+00> : vector<16x16xf32>
    %372 = tpu.matmul %347, %371, %cst_215 {dimension_numbers = #tpu.dot_dimension_numbers<[1], [0], [0], [1], [0, 0, 1, 1], [], []>} : vector<16x32xf32>, vector<32x16xf32>, vector<16x16xf32> -> vector<16x16xf32>
    %373 = vector.shape_cast %372 : vector<16x16xf32> to vector<2x8x16xf32>
    %374 = tpu.concatenate %369, %373 in 0 : vector<2x8x16xf32>, vector<2x8x16xf32> -> vector<4x8x16xf32>
    "tpu.trace_start"() <{level = 10 : i32, message = "bqd,bkd->bqk"}> : () -> ()
    %cst_216 = arith.constant dense<0.000000e+00> : vector<4x8x8xf32>
    %375 = tpu.matmul %356, %365, %cst_216 {dimension_numbers = #tpu.dot_dimension_numbers<[2], [2], [1], [1], [0, 0, 0, 1, 1, 1], [0], [0]>} : vector<4x8x16xf32>, vector<4x8x16xf32>, vector<4x8x8xf32> -> vector<4x8x8xf32>
    "tpu.trace_stop"() : () -> ()
    %376 = arith.addf %375, %1 : vector<4x8x8xf32>
    %cst_217 = arith.constant dense<0xFF800000> : vector<4x8xf32>
    %377 = vector.multi_reduction <maximumf>, %376, %cst_217 [2] : vector<4x8x8xf32> to vector<4x8xf32>
    %378 = vector.shape_cast %377 : vector<4x8xf32> to vector<4x8x1xf32>
    %379 = vector.broadcast %378 : vector<4x8x1xf32> to vector<4x8x8xf32>
    %380 = arith.subf %376, %379 : vector<4x8x8xf32>
    %381 = math.exp %380 : vector<4x8x8xf32>
    %cst_218 = arith.constant dense<0.000000e+00> : vector<4x8xf32>
    %382 = vector.multi_reduction <add>, %381, %cst_218 [2] : vector<4x8x8xf32> to vector<4x8xf32>
    %383 = vector.shape_cast %382 : vector<4x8xf32> to vector<4x8x1xf32>
    %384 = tpu.reciprocal %383 {approx = true} : vector<4x8x1xf32> -> vector<4x8x1xf32>
    %385 = vector.broadcast %384 : vector<4x8x1xf32> to vector<4x8x8xf32>
    %386 = arith.mulf %381, %385 : vector<4x8x8xf32>
    "tpu.trace_start"() <{level = 10 : i32, message = "bqk,bkd->bqd"}> : () -> ()
    %cst_219 = arith.constant dense<0.000000e+00> : vector<4x8x16xf32>
    %387 = tpu.matmul %386, %374, %cst_219 {dimension_numbers = #tpu.dot_dimension_numbers<[2], [1], [1], [2], [0, 0, 0, 1, 1, 2], [0], [0]>} : vector<4x8x8xf32>, vector<4x8x16xf32>, vector<4x8x16xf32> -> vector<4x8x16xf32>
    "tpu.trace_stop"() : () -> ()
    %388 = vector.extract_strided_slice %387 {offsets = [0, 0, 0], sizes = [2, 8, 16], strides = [1, 1, 1]} : vector<4x8x16xf32> to vector<2x8x16xf32>
    %389 = vector.shape_cast %388 : vector<2x8x16xf32> to vector<16x16xf32>
    %c6_220 = arith.constant 6 : index
    %c0_221 = arith.constant 0 : index
    %c0_222 = arith.constant 0 : index
    %390 = vector.load %arg5[%c6_220, %c0_221, %c0_222] : memref<12x16x32xf32, #tpu.memory_space<vmem>>, vector<1x16x32xf32>
    %391 = vector.shape_cast %390 : vector<1x16x32xf32> to vector<16x32xf32>
    %cst_223 = arith.constant dense<0.000000e+00> : vector<16x32xf32>
    %392 = tpu.matmul %389, %391, %cst_223 {dimension_numbers = #tpu.dot_dimension_numbers<[1], [0], [0], [1], [0, 0, 1, 1], [], []>} : vector<16x16xf32>, vector<16x32xf32>, vector<16x32xf32> -> vector<16x32xf32>
    %393 = vector.extract_strided_slice %387 {offsets = [2, 0, 0], sizes = [2, 8, 16], strides = [1, 1, 1]} : vector<4x8x16xf32> to vector<2x8x16xf32>
    %394 = vector.shape_cast %393 : vector<2x8x16xf32> to vector<16x16xf32>
    %c7_224 = arith.constant 7 : index
    %c0_225 = arith.constant 0 : index
    %c0_226 = arith.constant 0 : index
    %395 = vector.load %arg5[%c7_224, %c0_225, %c0_226] : memref<12x16x32xf32, #tpu.memory_space<vmem>>, vector<1x16x32xf32>
    %396 = vector.shape_cast %395 : vector<1x16x32xf32> to vector<16x32xf32>
    %cst_227 = arith.constant dense<0.000000e+00> : vector<16x32xf32>
    %397 = tpu.matmul %394, %396, %cst_227 {dimension_numbers = #tpu.dot_dimension_numbers<[1], [0], [0], [1], [0, 0, 1, 1], [], []>} : vector<16x16xf32>, vector<16x32xf32>, vector<16x32xf32> -> vector<16x32xf32>
    %398 = arith.addf %392, %397 : vector<16x32xf32>
    %399 = arith.addf %337, %398 : vector<16x32xf32>
    %400 = arith.mulf %399, %399 : vector<16x32xf32>
    %cst_228 = arith.constant dense<0.000000e+00> : vector<16xf32>
    %401 = vector.multi_reduction <add>, %400, %cst_228 [1] : vector<16x32xf32> to vector<16xf32>
    %402 = vector.shape_cast %401 : vector<16xf32> to vector<16x1xf32>
    %cst_229 = arith.constant 3.200000e+01 : f32
    %403 = vector.broadcast %cst_229 : f32 to vector<16x1xf32>
    %404 = arith.divf %402, %403 : vector<16x1xf32>
    %cst_230 = arith.constant 9.99999997E-7 : f32
    %405 = vector.broadcast %cst_230 : f32 to vector<16x1xf32>
    %406 = arith.addf %404, %405 : vector<16x1xf32>
    %407 = math.rsqrt %406 : vector<16x1xf32>
    %408 = vector.broadcast %407 : vector<16x1xf32> to vector<16x32xf32>
    %409 = arith.mulf %399, %408 : vector<16x32xf32>
    %c26 = arith.constant 26 : index
    %c0_231 = arith.constant 0 : index
    %c0_232 = arith.constant 0 : index
    %410 = vector.load %arg4[%c26, %c0_231, %c0_232] : memref<36x32x16xf32, #tpu.memory_space<vmem>>, vector<1x32x16xf32>
    %411 = vector.shape_cast %410 : vector<1x32x16xf32> to vector<32x16xf32>
    %cst_233 = arith.constant dense<0.000000e+00> : vector<16x16xf32>
    %412 = tpu.matmul %409, %411, %cst_233 {dimension_numbers = #tpu.dot_dimension_numbers<[1], [0], [0], [1], [0, 0, 1, 1], [], []>} : vector<16x32xf32>, vector<32x16xf32>, vector<16x16xf32> -> vector<16x16xf32>
    %413 = vector.shape_cast %412 : vector<16x16xf32> to vector<2x8x16xf32>
    %c27 = arith.constant 27 : index
    %c0_234 = arith.constant 0 : index
    %c0_235 = arith.constant 0 : index
    %414 = vector.load %arg4[%c27, %c0_234, %c0_235] : memref<36x32x16xf32, #tpu.memory_space<vmem>>, vector<1x32x16xf32>
    %415 = vector.shape_cast %414 : vector<1x32x16xf32> to vector<32x16xf32>
    %cst_236 = arith.constant dense<0.000000e+00> : vector<16x16xf32>
    %416 = tpu.matmul %409, %415, %cst_236 {dimension_numbers = #tpu.dot_dimension_numbers<[1], [0], [0], [1], [0, 0, 1, 1], [], []>} : vector<16x32xf32>, vector<32x16xf32>, vector<16x16xf32> -> vector<16x16xf32>
    %417 = vector.shape_cast %416 : vector<16x16xf32> to vector<2x8x16xf32>
    %418 = tpu.concatenate %413, %417 in 0 : vector<2x8x16xf32>, vector<2x8x16xf32> -> vector<4x8x16xf32>
    "tpu.trace_start"() <{level = 10 : i32, message = "bqd,bkd->bqk"}> : () -> ()
    %cst_237 = arith.constant dense<0.000000e+00> : vector<4x8x8xf32>
    %419 = tpu.matmul %418, %193, %cst_237 {dimension_numbers = #tpu.dot_dimension_numbers<[2], [2], [1], [1], [0, 0, 0, 1, 1, 1], [0], [0]>} : vector<4x8x16xf32>, vector<4x8x16xf32>, vector<4x8x8xf32> -> vector<4x8x8xf32>
    "tpu.trace_stop"() : () -> ()
    %420 = arith.addf %419, %2 : vector<4x8x8xf32>
    %cst_238 = arith.constant dense<0xFF800000> : vector<4x8xf32>
    %421 = vector.multi_reduction <maximumf>, %420, %cst_238 [2] : vector<4x8x8xf32> to vector<4x8xf32>
    %422 = vector.shape_cast %421 : vector<4x8xf32> to vector<4x8x1xf32>
    %423 = vector.broadcast %422 : vector<4x8x1xf32> to vector<4x8x8xf32>
    %424 = arith.subf %420, %423 : vector<4x8x8xf32>
    %425 = math.exp %424 : vector<4x8x8xf32>
    %cst_239 = arith.constant dense<0.000000e+00> : vector<4x8xf32>
    %426 = vector.multi_reduction <add>, %425, %cst_239 [2] : vector<4x8x8xf32> to vector<4x8xf32>
    %427 = vector.shape_cast %426 : vector<4x8xf32> to vector<4x8x1xf32>
    %428 = tpu.reciprocal %427 {approx = true} : vector<4x8x1xf32> -> vector<4x8x1xf32>
    %429 = vector.broadcast %428 : vector<4x8x1xf32> to vector<4x8x8xf32>
    %430 = arith.mulf %425, %429 : vector<4x8x8xf32>
    "tpu.trace_start"() <{level = 10 : i32, message = "bqk,bkd->bqd"}> : () -> ()
    %cst_240 = arith.constant dense<0.000000e+00> : vector<4x8x16xf32>
    %431 = tpu.matmul %430, %211, %cst_240 {dimension_numbers = #tpu.dot_dimension_numbers<[2], [1], [1], [2], [0, 0, 0, 1, 1, 2], [0], [0]>} : vector<4x8x8xf32>, vector<4x8x16xf32>, vector<4x8x16xf32> -> vector<4x8x16xf32>
    "tpu.trace_stop"() : () -> ()
    %432 = vector.extract_strided_slice %431 {offsets = [0, 0, 0], sizes = [2, 8, 16], strides = [1, 1, 1]} : vector<4x8x16xf32> to vector<2x8x16xf32>
    %433 = vector.shape_cast %432 : vector<2x8x16xf32> to vector<16x16xf32>
    %c10_241 = arith.constant 10 : index
    %c0_242 = arith.constant 0 : index
    %c0_243 = arith.constant 0 : index
    %434 = vector.load %arg5[%c10_241, %c0_242, %c0_243] : memref<12x16x32xf32, #tpu.memory_space<vmem>>, vector<1x16x32xf32>
    %435 = vector.shape_cast %434 : vector<1x16x32xf32> to vector<16x32xf32>
    %cst_244 = arith.constant dense<0.000000e+00> : vector<16x32xf32>
    %436 = tpu.matmul %433, %435, %cst_244 {dimension_numbers = #tpu.dot_dimension_numbers<[1], [0], [0], [1], [0, 0, 1, 1], [], []>} : vector<16x16xf32>, vector<16x32xf32>, vector<16x32xf32> -> vector<16x32xf32>
    %437 = vector.extract_strided_slice %431 {offsets = [2, 0, 0], sizes = [2, 8, 16], strides = [1, 1, 1]} : vector<4x8x16xf32> to vector<2x8x16xf32>
    %438 = vector.shape_cast %437 : vector<2x8x16xf32> to vector<16x16xf32>
    %c11_245 = arith.constant 11 : index
    %c0_246 = arith.constant 0 : index
    %c0_247 = arith.constant 0 : index
    %439 = vector.load %arg5[%c11_245, %c0_246, %c0_247] : memref<12x16x32xf32, #tpu.memory_space<vmem>>, vector<1x16x32xf32>
    %440 = vector.shape_cast %439 : vector<1x16x32xf32> to vector<16x32xf32>
    %cst_248 = arith.constant dense<0.000000e+00> : vector<16x32xf32>
    %441 = tpu.matmul %438, %440, %cst_248 {dimension_numbers = #tpu.dot_dimension_numbers<[1], [0], [0], [1], [0, 0, 1, 1], [], []>} : vector<16x16xf32>, vector<16x32xf32>, vector<16x32xf32> -> vector<16x32xf32>
    %442 = arith.addf %436, %441 : vector<16x32xf32>
    %443 = arith.addf %399, %442 : vector<16x32xf32>
    %444 = arith.mulf %443, %443 : vector<16x32xf32>
    %cst_249 = arith.constant dense<0.000000e+00> : vector<16xf32>
    %445 = vector.multi_reduction <add>, %444, %cst_249 [1] : vector<16x32xf32> to vector<16xf32>
    %446 = vector.shape_cast %445 : vector<16xf32> to vector<16x1xf32>
    %cst_250 = arith.constant 3.200000e+01 : f32
    %447 = vector.broadcast %cst_250 : f32 to vector<16x1xf32>
    %448 = arith.divf %446, %447 : vector<16x1xf32>
    %cst_251 = arith.constant 9.99999997E-7 : f32
    %449 = vector.broadcast %cst_251 : f32 to vector<16x1xf32>
    %450 = arith.addf %448, %449 : vector<16x1xf32>
    %451 = math.rsqrt %450 : vector<16x1xf32>
    %452 = vector.broadcast %451 : vector<16x1xf32> to vector<16x32xf32>
    %453 = arith.mulf %443, %452 : vector<16x32xf32>
    %c3_252 = arith.constant 3 : index
    %c0_253 = arith.constant 0 : index
    %c0_254 = arith.constant 0 : index
    %454 = vector.load %arg6[%c3_252, %c0_253, %c0_254] : memref<4x32x64xf32, #tpu.memory_space<vmem>>, vector<1x32x64xf32>
    %455 = vector.shape_cast %454 : vector<1x32x64xf32> to vector<32x64xf32>
    %cst_255 = arith.constant dense<0.000000e+00> : vector<16x64xf32>
    %456 = tpu.matmul %453, %455, %cst_255 {dimension_numbers = #tpu.dot_dimension_numbers<[1], [0], [0], [1], [0, 0, 1, 1], [], []>} : vector<16x32xf32>, vector<32x64xf32>, vector<16x64xf32> -> vector<16x64xf32>
    %cst_256 = arith.constant 0.000000e+00 : f32
    %457 = vector.broadcast %cst_256 : f32 to vector<16x64xf32>
    %458 = arith.maximumf %456, %457 : vector<16x64xf32>
    %c3_257 = arith.constant 3 : index
    %c0_258 = arith.constant 0 : index
    %c0_259 = arith.constant 0 : index
    %459 = vector.load %arg7[%c3_257, %c0_258, %c0_259] : memref<4x64x32xf32, #tpu.memory_space<vmem>>, vector<1x64x32xf32>
    %460 = vector.shape_cast %459 : vector<1x64x32xf32> to vector<64x32xf32>
    %cst_260 = arith.constant dense<0.000000e+00> : vector<16x32xf32>
    %461 = tpu.matmul %458, %460, %cst_260 {dimension_numbers = #tpu.dot_dimension_numbers<[1], [0], [0], [1], [0, 0, 1, 1], [], []>} : vector<16x64xf32>, vector<64x32xf32>, vector<16x32xf32> -> vector<16x32xf32>
    %462 = arith.addf %443, %461 : vector<16x32xf32>
    %463 = arith.mulf %462, %462 : vector<16x32xf32>
    %cst_261 = arith.constant dense<0.000000e+00> : vector<16xf32>
    %464 = vector.multi_reduction <add>, %463, %cst_261 [1] : vector<16x32xf32> to vector<16xf32>
    %465 = vector.shape_cast %464 : vector<16xf32> to vector<16x1xf32>
    %cst_262 = arith.constant 3.200000e+01 : f32
    %466 = vector.broadcast %cst_262 : f32 to vector<16x1xf32>
    %467 = arith.divf %465, %466 : vector<16x1xf32>
    %cst_263 = arith.constant 9.99999997E-7 : f32
    %468 = vector.broadcast %cst_263 : f32 to vector<16x1xf32>
    %469 = arith.addf %467, %468 : vector<16x1xf32>
    %470 = math.rsqrt %469 : vector<16x1xf32>
    %471 = vector.broadcast %470 : vector<16x1xf32> to vector<16x32xf32>
    %472 = arith.mulf %462, %471 : vector<16x32xf32>
    %c0_264 = arith.constant 0 : index
    %c0_265 = arith.constant 0 : index
    %473 = vector.load %arg8[%c0_264, %c0_265] : memref<64x32xf32, #tpu.memory_space<vmem>>, vector<64x32xf32>
    %cst_266 = arith.constant dense<0.000000e+00> : vector<16x64xf32>
    %474 = tpu.matmul %472, %473, %cst_266 {dimension_numbers = #tpu.dot_dimension_numbers<[1], [1], [0], [0], [0, 0, 1, 0], [], []>} : vector<16x32xf32>, vector<64x32xf32>, vector<16x64xf32> -> vector<16x64xf32>
    %cst_267 = arith.constant dense<0xFF800000> : vector<16xf32>
    %475 = vector.multi_reduction <maximumf>, %474, %cst_267 [1] : vector<16x64xf32> to vector<16xf32>
    %476 = vector.shape_cast %475 : vector<16xf32> to vector<16x1xf32>
    %477 = vector.broadcast %476 : vector<16x1xf32> to vector<16x64xf32>
    %478 = arith.subf %474, %477 : vector<16x64xf32>
    %479 = math.exp %478 : vector<16x64xf32>
    %cst_268 = arith.constant dense<0.000000e+00> : vector<16xf32>
    %480 = vector.multi_reduction <add>, %479, %cst_268 [1] : vector<16x64xf32> to vector<16xf32>
    %481 = vector.shape_cast %480 : vector<16xf32> to vector<16x1xf32>
    %482 = math.log %481 : vector<16x1xf32>
    %483 = arith.addf %482, %476 : vector<16x1xf32>
    %c0_269 = arith.constant 0 : index
    %c0_270 = arith.constant 0 : index
    %484 = vector.load %arg9[%c0_269, %c0_270] : memref<16x64xf32, #tpu.memory_space<vmem>>, vector<16x64xf32>
    %485 = arith.mulf %474, %484 : vector<16x64xf32>
    %cst_271 = arith.constant dense<0.000000e+00> : vector<16xf32>
    %486 = vector.multi_reduction <add>, %485, %cst_271 [1] : vector<16x64xf32> to vector<16xf32>
    %487 = vector.shape_cast %486 : vector<16xf32> to vector<16x1xf32>
    %cst_272 = arith.constant dense<0.000000e+00> : vector<16xf32>
    %488 = vector.multi_reduction <add>, %484, %cst_272 [1] : vector<16x64xf32> to vector<16xf32>
    %489 = vector.shape_cast %488 : vector<16xf32> to vector<16x1xf32>
    %490 = arith.mulf %483, %489 : vector<16x1xf32>
    %491 = arith.subf %490, %487 : vector<16x1xf32>
    %492 = vector.shape_cast %491 : vector<16x1xf32> to vector<1x16x1xf32>
    %cst_273 = arith.constant dense<0.000000e+00> : vector<1xf32>
    %493 = vector.multi_reduction <add>, %492, %cst_273 [1, 2] : vector<1x16x1xf32> to vector<1xf32>
    %494 = vector.shape_cast %493 : vector<1xf32> to vector<1x1x1xf32>
    %495 = vector.extract %494[0, 0, 0] : f32 from vector<1x1x1xf32>
    %496 = vector.shape_cast %489 : vector<16x1xf32> to vector<1x16x1xf32>
    %cst_274 = arith.constant dense<0.000000e+00> : vector<1xf32>
    %497 = vector.multi_reduction <add>, %496, %cst_274 [1, 2] : vector<1x16x1xf32> to vector<1xf32>
    %498 = vector.shape_cast %497 : vector<1xf32> to vector<1x1x1xf32>
    %499 = vector.extract %498[0, 0, 0] : f32 from vector<1x1x1xf32>
    %cst_275 = arith.constant 1.000000e+00 : f32
    %500 = arith.maximumf %499, %cst_275 : f32
    %501 = arith.divf %495, %500 : f32
    %c0_276 = arith.constant 0 : index
    %c0_277 = arith.constant 0 : index
    %502 = memref.load %arg10[%c0_276, %c0_277] : memref<1x1xf32, #tpu.memory_space<smem>>
    memref.store %501, %arg10[%c0_276, %c0_277] : memref<1x1xf32, #tpu.memory_space<smem>>
    return
  }
}

</mosaic_0001>

<bundles_post_ra>
// kernel: myt5_forward.1
= control target key start
LH: loop header
LB: loop body
LE: loop exit
PB: predicated region body
PF: predicated region fallthrough
CT: control target
= control target key end

     0   :  { %vm52_vm0 = vcmask 261120   ;;  %s12739_s0 = inlined_call_operand.vmem [shape: f32[32,32], index: 0, kind: input, shape index: {}]   ;;  %s12740_s1 = inlined_call_operand.vmem [shape: f32[4,8,8], index: 1, kind: input, shape index: {}]   ;;  %s12741_s2 = inlined_call_operand.vmem [shape: f32[4,8,8], index: 2, kind: input, shape index: {}]   ;;  %s12742_s3 = inlined_call_operand.vmem [shape: f32[4,8,8], index: 3, kind: input, shape index: {}]   ;;  %s12743_s4 = inlined_call_operand.vmem [shape: f32[36,32,16], index: 4, kind: input, shape index: {}]   ;;  %s12744_s5 = inlined_call_operand.vmem [shape: f32[12,16,32], index: 5, kind: input, shape index: {}]   ;;  %s12745_s6 = inlined_call_operand.vmem [shape: f32[4,32,64], index: 6, kind: input, shape index: {}]   ;;  %s12746_s7 = inlined_call_operand.vmem [shape: f32[4,64,32], index: 7, kind: input, shape index: {}]   ;;  %s12747_s8 = inlined_call_operand.vmem [shape: f32[64,32], index: 8, kind: input, shape index: {}]   ;;  %s12748_s9 = inlined_call_operand.vmem [shape: f32[16,64], index: 9, kind: input, shape index: {}]   ;;  %s12749_s10 = inlined_call_operand.hbm [shape: f32[1,1], index: 10, kind: output, shape index: {}]  }
   0x1   :  { %v11340_v0 = vld [vmem:[%s12739_s0] sm:$0xff]  ;;  %v11345_v1 = vld [vmem:[%s12739_s0 + $0x8] sm:$0xff] }
   0x2   :  { %15 = vsyncpa [#allocation3], 0  ;;  %v50_v2 = vmul.f32 %v11340_v0, %v11340_v0  ;;  %v51_v3 = vmul.f32 %v11345_v1, %v11345_v1  ;;  %v68_v6 = vld [vmem:[%s12743_s4] sm:$0xff]  ;;  %v69_v7 = vld [vmem:[%s12743_s4 + $0x8] sm:$0xff]  ;;  %v11278_v52 = vmov 0.0   ;;  %vm11279_vm1 = vmmov 0  }
   0x3   :  { %v8963_v8 = vld [vmem:[%s12743_s4 + $0x60] sm:$0xff]  ;;  %v10634_v9 = vpack.c.bf16 %v69_v7, %v68_v6  ;;  %v8964_v10 = vld [vmem:[%s12743_s4 + $0x68] sm:$0xff]  ;;  %v70_v12 = vld [vmem:[%s12743_s4 + $0x10] sm:$0xff]  ;;  %vm553_vm2 = vcmask 130048   ;;  %vm858_vm3 = vcmask 64512   ;;  %vm1475_vm4 = vcmask 523264  }
   0x4   :  { %v53_v4 = vsel %vm52_vm0, %v50_v2, 0.0  ;;  %v56_v5 = vsel %vm52_vm0, %v51_v3, 0.0  ;;  %v10658_v11 = vpack.c.bf16 %v8964_v10, %v8963_v8  ;;  %v71_v13 = vld [vmem:[%s12743_s4 + $0x18] sm:$0xff]  ;;  %v8965_v14 = vld [vmem:[%s12743_s4 + $0x70] sm:$0xff]  ;;  %v8951_v18 = vld [vmem:[%s12743_s4 + $0x20] sm:$0xff]  ;;  %vm8904_vm6 = vcmask 7168  }
   0x5   :  { %54 = vadd.xlane.f32.xlu0 %v53_v4  ;;  %10635 = vmatprep.subr.bf16.mxu0 %v10634_v9  ;;  %v10638_v15 = vpack.c.bf16 %v71_v13, %v70_v12  ;;  %v8966_v16 = vld [vmem:[%s12743_s4 + $0x78] sm:$0xff]  ;;  %v8952_v19 = vld [vmem:[%s12743_s4 + $0x28] sm:$0xff]  ;;  %v8975_v20 = vld [vmem:[%s12743_s4 + $0xa0] sm:$0xff]  ;;  %s11266_s27 = scalar_lea.hbm %s12749_s10, 16 }
   0x6   :  { %10659 = vmatprep.subr.bf16.mxu1 %v10658_v11  ;;  %10637 = vmatpush3.bf16.msra.mxu0 %v10634_v9  ;;  %v10662_v17 = vpack.c.bf16 %v8966_v16, %v8965_v14  ;;  %v10642_v21 = vpack.c.bf16 %v8952_v19, %v8951_v18  ;;  %v8976_v22 = vld [vmem:[%s12743_s4 + $0xa8] sm:$0xff]  ;;  %v8953_v32 = vld [vmem:[%s12743_s4 + $0x30] sm:$0xff]  ;;  %v8954_v33 = vld [vmem:[%s12743_s4 + $0x38] sm:$0xff]  ;;  %p11267_p0 = scmp.ne.s32.totalorder %s12749_s10, %s11266_s27  ;;  %p11270_p1 = scmp.lt.u32.totalorder %s11266_s27, %s12749_s10 }
   0x7   :  { %10661 = vmatpush3.bf16.msra.mxu1 %v10658_v11  ;;  %10639 = vmatprep.subr.bf16.mxu0 %v10638_v15  ;;  %v10674_v23 = vpack.c.bf16 %v8976_v22, %v8975_v20  ;;  %v8977_v34 = vld [vmem:[%s12743_s4 + $0xb0] sm:$0xff]  ;;  %v8978_v35 = vld [vmem:[%s12743_s4 + $0xb8] sm:$0xff]  ;;  %v10646_v38 = vpack.c.bf16 %v8954_v33, %v8953_v32  ;;  %v8957_v40 = vld [vmem:[%s12743_s4 + $0x40] sm:$0xff] }
   0x8   :  { %10663 = vmatprep.subr.bf16.mxu1 %v10662_v17  ;;  %v10678_v39 = vpack.c.bf16 %v8978_v35, %v8977_v34  ;;  %v8958_v41 = vld [vmem:[%s12743_s4 + $0x48] sm:$0xff]  ;;  %v8959_v43 = vld [vmem:[%s12743_s4 + $0x50] sm:$0xff]  ;;  %v8960_v44 = vld [vmem:[%s12743_s4 + $0x58] sm:$0xff]  ;;  %p11272_p2 = pnand %p11270_p1, %p11267_p0 }
   0x9   :  { %57 = vadd.xlane.f32.xlu0 %v56_v5  ;;  %v10650_v42 = vpack.c.bf16 %v8958_v41, %v8957_v40  ;;  %v10654_v45 = vpack.c.bf16 %v8960_v44, %v8959_v43  ;;  %v8969_v46 = vld [vmem:[%s12743_s4 + $0x80] sm:$0xff]  ;;  %v8970_v47 = vld [vmem:[%s12743_s4 + $0x88] sm:$0xff]  ;;  %v8971_v49 = vld [vmem:[%s12743_s4 + $0x90] sm:$0xff] }
   0xa   :  { %10641 = vmatpush3.bf16.msra.mxu0 %v10638_v15  ;;  %v10666_v48 = vpack.c.bf16 %v8970_v47, %v8969_v46  ;;  %v8972_v50 = vld [vmem:[%s12743_s4 + $0x98] sm:$0xff]  ;;  %v11474_v3 = vld [vmem:[%s12740_s1] sm:$0xff]  ;;  %v11479_v5 = vld [vmem:[%s12740_s1 + $0x8] sm:$0xff] }
   0xb   :  { %10665 = vmatpush3.bf16.msra.mxu1 %v10662_v17  ;;  %10643 = vmatprep.subr.bf16.mxu0 %v10642_v21  ;;  %v10670_v51 = vpack.c.bf16 %v8972_v50, %v8971_v49  ;;  %v11485_v10 = vld [vmem:[%s12740_s1 + $0x10] sm:$0xff]  ;;  %v11492_v14 = vld [vmem:[%s12740_s1 + $0x18] sm:$0xff]  ;;  %vm12665_vm5 = vmpackc.low %vm52_vm0, %vm52_vm0 }
   0xc   :  { %10675 = vmatprep.subr.bf16.mxu1 %v10674_v23 }
  0x92   :  { %v55_v24 = vpop.xlane.xlu0 %54 }
  0x93   :  { %v60_v25 = vmul.f32 0.03125, %v55_v24 }
  0x95   :  { %v62_v26 = vadd.f32 1e-06, %v60_v25 }
  0x96   :  { %v58_v27 = vpop.xlane.xlu0 %57 }
  0x97   :  { %11112 = vrsqrt.f32 %v62_v26  ;;  %v61_v28 = vmul.f32 0.03125, %v58_v27 }
  0x99   :  { %v63_v29 = vadd.f32 1e-06, %v61_v28 }
  0x9b   :  { %11114 = vrsqrt.f32 %v63_v29 }
  0xa1   :  { %v11113_v30 = vpop.eup %11112 }
  0xa2   :  { %v66_v31 = vmul.f32 %v11113_v30, %v11340_v0 }
  0xa4   :  { %9783 = vmatprep.mubr.msk.f32.mxu0 %vm52_vm0, %v66_v31  ;;  %9816 = vmatprep.mubr.msk.f32.mxu1 %vm52_vm0, %v66_v31 }
  0xa5   :  { %v11115_v36 = vpop.eup %11114 }
  0xa6   :  { %v67_v37 = vmul.f32 %v11115_v36, %v11345_v1 }
  0xa8   :  { %9784 = vmatmul.mubr.msk.f32.vlgmr.msra.gmra.mrb[0].mxu0 %vm52_vm0, %v67_v37  ;;  %9817 = vmatmul.mubr.msk.f32.vlgmr.msra.gmra.mrb[0].mxu1 %vm52_vm0, %v67_v37 }
  0xa9   :  { %10645 = vmatpush3.bf16.msra.mxu0 %v10642_v21  ;;  %10677 = vmatpush3.bf16.msra.mxu1 %v10674_v23 }
  0xaa   :  { %9794 = vmatprep.mubr.msk.f32.mxu0 %vm52_vm0, %v66_v31  ;;  %9838 = vmatprep.mubr.msk.f32.mxu1 %vm52_vm0, %v66_v31 }
  0xab   :  { %10647 = vmatprep.subr.bf16.mxu0 %v10646_v38  ;;  %10679 = vmatprep.subr.bf16.mxu1 %v10678_v39 }
  0xad   :  { %10649 = vmatpush3.bf16.msra.mxu0 %v10646_v38  ;;  %10681 = vmatpush3.bf16.msra.mxu1 %v10678_v39 }
  0xae   :  { %10651 = vmatprep.subr.bf16.mxu0 %v10650_v42  ;;  %9846 = vmatprep.subr.mxu1 %v11278_v52 }
  0xb0   :  { %9795 = vmatmul.mubr.msk.f32.vlgmr.msra.gmra.mrb[2].mxu0 %vm52_vm0, %v67_v37  ;;  %9839 = vmatmul.mubr.msk.f32.vlgmr.msra.gmra.mrb[2].mxu1 %vm52_vm0, %v67_v37 }
  0xb1   :  { %10653 = vmatpush3.bf16.msra.mxu0 %v10650_v42  ;;  %9805 = vmatprep.mubr.msk.f32.mxu0 %vm52_vm0, %v66_v31 }
  0xb2   :  { %10655 = vmatprep.subr.bf16.mxu0 %v10654_v45  ;;  %9848 = vmatprep.mubr.msk.f32.mxu1 %vm11279_vm1, %v11278_v52 }
  0xb5   :  { %10657 = vmatpush3.bf16.msra.mxu0 %v10654_v45 }
  0xb6   :  { %10667 = vmatprep.subr.bf16.mxu0 %v10666_v48 }
  0xb8   :  { %9806 = vmatmul.mubr.msk.f32.vlgmr.msra.gmra.mrb[4].mxu0 %vm52_vm0, %v67_v37 }
  0xb9   :  { %10669 = vmatpush3.bf16.msra.mxu0 %v10666_v48  ;;  %9827 = vmatprep.mubr.msk.f32.mxu0 %vm52_vm0, %v66_v31 }
  0xba   :  { %10671 = vmatprep.subr.bf16.mxu0 %v10670_v51 }
  0xbd   :  { %10673 = vmatpush3.bf16.msra.mxu0 %v10670_v51 }
  0xbe   :  { %9841 = vmatprep.subr.mxu0 %v11278_v52 }
  0xc0   :  { %9828 = vmatmul.mubr.msk.f32.vlgmr.msra.gmra.mrb[6].mxu0 %vm52_vm0, %v67_v37 }
  0xc1   :  { %9843 = vmatprep.mubr.msk.f32.mxu0 %vm11279_vm1, %v11278_v52 }
 0x17b   :  { %v9785_v53 = vpop.f32.mrb[0].mxu0  ;;  %v9818_v54 = vpop.f32.mrb[0].mxu1 }
 0x17c   :  { %v144_v55 = vpop.f32.mrb[1].mxu0  ;;  %v384_v56 = vpop.f32.mrb[1].mxu1 }
 0x183   :  { %v9796_v57 = vpop.f32.mrb[2].mxu0  ;;  %v11445_v58 = vpop.f32.mrb[2].mxu1 }
 0x184   :  { %v224_v59 = vpop.f32.mrb[3].mxu0  ;;  %v11447_v60 = vpop.f32.mrb[3].mxu1 }
 0x18b   :  { %v9807_v61 = vpop.f32.mrb[4].mxu0 }
 0x18c   :  { %v304_v62 = vpop.f32.mrb[5].mxu0  ;;  %9847 = vmatpush3.xpose.msk.msra.mxu1 %vm553_vm2, %v9807_v61 }
 0x18d   :  { %9842 = vmatpush3.xpose.msk.msra.mxu0 %vm553_vm2, %v304_v62  ;;  %9856 = vmatprep.subr.mxu1 %v11278_v52 }
 0x18e   :  { %9851 = vmatprep.subr.mxu0 %v11278_v52 }
 0x18f   :  { %9849 = vmatmul.mubr.msk.f32.vlgmr.msra.gmra.mrb[4].mxu1 %vm553_vm2, %v9785_v53 }
 0x190   :  { %9844 = vmatmul.mubr.msk.f32.vlgmr.msra.gmra.mrb[8].mxu0 %vm553_vm2, %v144_v55  ;;  %9857 = vmatpush3.xpose.msk.msra.mxu1 %vm553_vm2, %v9818_v54 }
 0x191   :  { %9852 = vmatpush3.xpose.msk.msra.mxu0 %vm553_vm2, %v384_v56  ;;  %9858 = vmatprep.mubr.msk.f32.mxu1 %vm11279_vm1, %v11278_v52  ;;  %v8993_v56 = vld [vmem:[%s12744_s5 + $0x10] sm:$0xff] }
 0x192   :  { %9853 = vmatprep.mubr.msk.f32.mxu0 %vm11279_vm1, %v11278_v52  ;;  %9866 = vmatprep.subr.mxu1 %v11278_v52 }
 0x193   :  { %v9829_v63 = vpop.f32.mrb[6].mxu0  ;;  %9859 = vmatmul.mubr.msk.f32.vlgmr.msra.gmra.mrb[6].mxu1 %vm553_vm2, %v9796_v57  ;;  %9861 = vmatprep.subr.mxu0 %v11278_v52  ;;  %v8994_v57 = vld [vmem:[%s12744_s5 + $0x18] sm:$0xff] }
 0x194   :  { %v464_v2 = vpop.f32.mrb[7].mxu0  ;;  %9854 = vmatmul.mubr.msk.f32.vlgmr.msra.gmra.mrb[10].mxu0 %vm553_vm2, %v224_v59  ;;  %9867 = vmatpush3.msra.mxu1 %v9829_v63  ;;  %v10682_v59 = vpack.c.bf16 %v8994_v57, %v8993_v56 }
 0x195   :  { %9862 = vmatpush3.msra.mxu0 %v464_v2  ;;  %9863 = vmatprep.mubr.msk.f32.mxu0 %vm11279_vm1, %v11278_v52 }
 0x196   :  { %9871 = vmatprep.subr.mxu0 %v11278_v52  ;;  %9868 = vmatprep.mubr.msk.f32.mxu1 %vm11279_vm1, %v11278_v52 }
 0x197   :  { %9876 = vmatprep.subr.mxu1 %v11278_v52 }
 0x262   :  { %v702_v4 = vpop.f32.mrb[4].mxu1 }
 0x263   :  { %v626_v6 = vpop.f32.mrb[8].mxu0  ;;  %v9850_v7 = vpop.f32.mrb[5].mxu1  ;;  %v703_v11 = vadd.f32 %v702_v4, %v11479_v5 }
 0x264   :  { %v627_v8 = vadd.f32 %v626_v6, %v11474_v3  ;;  %v9845_v9 = vpop.f32.mrb[9].mxu0 }
 0x265   :  { %v862_v21 = vsel %vm858_vm3, %v703_v11, -inf }
 0x266   :  { %v854_v12 = vpop.f32.mrb[6].mxu1  ;;  %v859_v13 = vsel %vm858_vm3, %v627_v8, -inf }
 0x267   :  { %v778_v15 = vpop.f32.mrb[10].mxu0  ;;  %v9860_v16 = vpop.f32.mrb[7].mxu1  ;;  %860 = vmax.xlane.f32.xlu1 %v859_v13  ;;  %v855_v19 = vadd.f32 %v854_v12, %v11492_v14 }
 0x268   :  { %v779_v17 = vadd.f32 %v778_v15, %v11485_v10  ;;  %v9855_v18 = vpop.f32.mrb[11].mxu0 }
 0x269   :  { %v868_v22 = vsel %vm858_vm3, %v855_v19, -inf }
 0x26a   :  { %v865_v20 = vsel %vm858_vm3, %v779_v17, -inf }
 0x26b   :  { %866 = vmax.xlane.f32.xlu0 %v865_v20  ;;  %863 = vmax.xlane.f32.xlu1 %v862_v21  ;;  %v1380_v20 = vld [vmem:[%s12745_s6] sm:$0xff]  ;;  %v1381_v21 = vld [vmem:[%s12745_s6 + $0x8] sm:$0xff] }
 0x26f   :  { %869 = vmax.xlane.f32.xlu1 %v868_v22  ;;  %v1383_v22 = vld [vmem:[%s12745_s6 + $0x18] sm:$0xff] }
 0x2f4   :  { %v861_v23 = vpop.xlane.xlu1 %860 }
 0x2f5   :  { %v871_v24 = vsub.f32 %v627_v8, %v861_v23 }
 0x2f7   :  { %v875_v25 = vmul.f32 1.442695, %v871_v24  ;;  %v1467_v24 = vld [vmem:[%s12746_s7] sm:$0xff] }
 0x2f8   :  { %v867_v26 = vpop.xlane.xlu0 %866  ;;  %v864_v27 = vpop.xlane.xlu1 %863 }
 0x2f9   :  { %11116 = vpow2.f32 %v875_v25  ;;  %v873_v28 = vsub.f32 %v779_v17, %v867_v26  ;;  %v872_v29 = vsub.f32 %v703_v11, %v864_v27  ;;  %v1468_v25 = vld [vmem:[%s12746_s7 + $0x8] sm:$0xff]  ;;  %v1469_v26 = vld [vmem:[%s12746_s7 + $0x10] sm:$0xff] }
 0x2fa   :  { %v10698_v27 = vpack.c.bf16 %v1468_v25, %v1467_v24  ;;  %v9011_v24 = vld [vmem:[%s12743_s4 + $0xf0] sm:$0xff] }
 0x2fb   :  { %v879_v30 = vmul.f32 1.442695, %v873_v28  ;;  %v877_v31 = vmul.f32 1.442695, %v872_v29  ;;  %v1470_v28 = vld [vmem:[%s12746_s7 + $0x18] sm:$0xff] }
 0x2fc   :  { %v870_v32 = vpop.xlane.xlu1 %869  ;;  %v10702_v29 = vpack.c.bf16 %v1470_v28, %v1469_v26  ;;  %v9012_v26 = vld [vmem:[%s12743_s4 + $0xf8] sm:$0xff] }
 0x2fd   :  { %11118 = vpow2.f32 %v879_v30  ;;  %v874_v33 = vsub.f32 %v855_v19, %v870_v32  ;;  %v1471_v30 = vld [vmem:[%s12746_s7 + $0x20] sm:$0xff]  ;;  %v9030_v28 = vld [vmem:[%s12743_s4 + $0x158] sm:$0xff] }
 0x2fe   :  { %11120 = vpow2.f32 %v877_v31  ;;  %v1472_v31 = vld [vmem:[%s12746_s7 + $0x28] sm:$0xff] }
 0x2ff   :  { %v881_v34 = vmul.f32 1.442695, %v874_v33  ;;  %v10706_v32 = vpack.c.bf16 %v1472_v31, %v1471_v30  ;;  %v10726_v31 = vpack.c.bf16 %v9012_v26, %v9011_v24 }
 0x301   :  { %11122 = vpow2.f32 %v881_v34 }
 0x303   :  { %v11117_v35 = vpop.eup %11116 }
 0x304   :  { %v883_v36 = vsel %vm858_vm3, %v11117_v35, 0.0 }
 0x305   :  { %884 = vadd.xlane.f32.xlu0 %v883_v36 }
 0x307   :  { %v11119_v37 = vpop.eup %11118 }
 0x308   :  { %v11121_v38 = vpop.eup %11120  ;;  %v889_v39 = vsel %vm858_vm3, %v11119_v37, 0.0 }
 0x309   :  { %890 = vadd.xlane.f32.xlu0 %v889_v39  ;;  %v886_v40 = vsel %vm858_vm3, %v11121_v38, 0.0 }
 0x30a   :  { %887 = vadd.xlane.f32.xlu1 %v886_v40 }
 0x30b   :  { %v11123_v41 = vpop.eup %11122 }
 0x30c   :  { %v892_v42 = vsel %vm858_vm3, %v11123_v41, 0.0 }
 0x30e   :  { %893 = vadd.xlane.f32.xlu1 %v892_v42 }
 0x392   :  { %v885_v43 = vpop.xlane.xlu0 %884 }
 0x393   :  { %11124 = vrcp.f32 %v885_v43  ;;  %v1473_v43 = vld [vmem:[%s12746_s7 + $0x30] sm:$0xff] }
 0x396   :  { %v891_v44 = vpop.xlane.xlu0 %890 }
 0x397   :  { %11126 = vrcp.f32 %v891_v44  ;;  %v888_v45 = vpop.xlane.xlu1 %887  ;;  %v1474_v44 = vld [vmem:[%s12746_s7 + $0x38] sm:$0xff] }
 0x398   :  { %11128 = vrcp.f32 %v888_v45  ;;  %v10710_v45 = vpack.c.bf16 %v1474_v44, %v1473_v43  ;;  %v9036_v43 = vld [vmem:[%s12743_s4 + $0x178] sm:$0xff] }
 0x39b   :  { %v894_v46 = vpop.xlane.xlu1 %893 }
 0x39c   :  { %11130 = vrcp.f32 %v894_v46 }
 0x39d   :  { %v11125_v47 = vpop.eup %11124 }
 0x39e   :  { %v899_v48 = vmul.f32 %v11125_v47, %v11117_v35 }
 0x3a0   :  { %9864 = vmatmul.mubr.msk.f32.vlgmr.msra.gmra.mrb[12].mxu0 %vm858_vm3, %v899_v48 }
 0x3a1   :  { %v11127_v49 = vpop.eup %11126  ;;  %9872 = vmatpush3.msra.mxu0 %v11447_v60  ;;  %9873 = vmatprep.mubr.msk.f32.mxu0 %vm11279_vm1, %v11278_v52  ;;  %v1196_v60 = vld [vmem:[%s12744_s5 + $0x8] sm:$0xff] }
 0x3a2   :  { %v11129_v50 = vpop.eup %11128  ;;  %v901_v51 = vmul.f32 %v11127_v49, %v11119_v37  ;;  %10683 = vmatprep.subr.bf16.mxu0 %v10682_v59 }
 0x3a3   :  { %v900_v53 = vmul.f32 %v11129_v50, %v11121_v38 }
 0x3a4   :  { %9874 = vmatmul.mubr.msk.f32.vlgmr.msra.gmra.mrb[14].mxu0 %vm858_vm3, %v901_v51 }
 0x3a5   :  { %9869 = vmatmul.mubr.msk.f32.vlgmr.msra.gmra.mrb[8].mxu1 %vm858_vm3, %v900_v53  ;;  %10685 = vmatpush3.bf16.msra.mxu0 %v10682_v59 }
 0x3a6   :  { %v11131_v54 = vpop.eup %11130  ;;  %9877 = vmatpush3.msra.mxu1 %v11445_v58  ;;  %9878 = vmatprep.mubr.msk.f32.mxu1 %vm11279_vm1, %v11278_v52  ;;  %v1195_v58 = vld [vmem:[%s12744_s5] sm:$0xff] }
 0x3a7   :  { %v902_v55 = vmul.f32 %v11131_v54, %v11123_v41  ;;  %v10686_v61 = vpack.c.bf16 %v1196_v60, %v1195_v58  ;;  %v9003_v58 = vld [vmem:[%s12743_s4 + $0xc0] sm:$0xff]  ;;  %v9004_v60 = vld [vmem:[%s12743_s4 + $0xc8] sm:$0xff] }
 0x3a9   :  { %9879 = vmatmul.mubr.msk.f32.vlgmr.msra.gmra.mrb[10].mxu1 %vm858_vm3, %v902_v55  ;;  %10687 = vmatprep.subr.bf16.mxu0 %v10686_v61 }
 0x473   :  { %v972_v62 = vpop.f32.mrb[12].mxu0 }
 0x474   :  { %v9865_v63 = vpop.f32.mrb[13].mxu0 }
 0x475   :  { %v9016_v63 = vld [vmem:[%s12743_s4 + $0x108] sm:$0xff] }
 0x477   :  { %v1118_v2 = vpop.f32.mrb[14].mxu0 }
 0x478   :  { %v1045_v4 = vpop.f32.mrb[8].mxu1  ;;  %v9875_v6 = vpop.f32.mrb[15].mxu0  ;;  %9885 = vmatprep.mubr.msk.f32.mxu0 %vm553_vm2, %v1118_v2 }
 0x479   :  { %v9870_v7 = vpop.f32.mrb[9].mxu1  ;;  %v9006_v6 = vld [vmem:[%s12743_s4 + $0xd8] sm:$0xff] }
 0x47a   :  { %v9017_v7 = vld [vmem:[%s12743_s4 + $0x110] sm:$0xff] }
 0x47c   :  { %v1191_v8 = vpop.f32.mrb[10].mxu1 }
 0x47d   :  { %v9880_v9 = vpop.f32.mrb[11].mxu1  ;;  %9886 = vmatmul.mubr.msk.f32.vlgmr.msra.gmra.mrb[16].mxu0 %vm553_vm2, %v1191_v8 }
 0x47e   :  { %10689 = vmatpush3.bf16.msra.mxu0 %v10686_v61  ;;  %9892 = vmatprep.mubr.msk.f32.mxu0 %vm553_vm2, %v972_v62  ;;  %v9015_v61 = vld [vmem:[%s12743_s4 + $0x100] sm:$0xff]  ;;  %v10714_v62 = vpack.c.bf16 %v9004_v60, %v9003_v58  ;;  %v9018_v9 = vld [vmem:[%s12743_s4 + $0x118] sm:$0xff] }
 0x47f   :  { %10699 = vmatprep.subr.bf16.mxu0 %v10698_v27  ;;  %v10730_v2 = vpack.c.bf16 %v9016_v63, %v9015_v61 }
 0x485   :  { %9893 = vmatmul.mubr.msk.f32.vlgmr.msra.gmra.mrb[16].mxu0 %vm553_vm2, %v1045_v4  ;;  %v9005_v4 = vld [vmem:[%s12743_s4 + $0xd0] sm:$0xff] }
 0x486   :  { %10701 = vmatpush3.bf16.msra.mxu0 %v10698_v27  ;;  %v10718_v8 = vpack.c.bf16 %v9006_v6, %v9005_v4  ;;  %v9029_v27 = vld [vmem:[%s12743_s4 + $0x150] sm:$0xff] }
 0x487   :  { %10703 = vmatprep.subr.bf16.mxu0 %v10702_v29 }
 0x48a   :  { %10705 = vmatpush3.bf16.msra.mxu0 %v10702_v29 }
 0x48b   :  { %10707 = vmatprep.subr.bf16.mxu0 %v10706_v32 }
 0x48e   :  { %10709 = vmatpush3.bf16.msra.mxu0 %v10706_v32  ;;  %v10750_v32 = vpack.c.bf16 %v9030_v28, %v9029_v27 }
 0x48f   :  { %10711 = vmatprep.subr.bf16.mxu0 %v10710_v45 }
 0x492   :  { %10713 = vmatpush3.bf16.msra.mxu0 %v10710_v45 }
 0x493   :  { %10731 = vmatprep.subr.bf16.mxu0 %v10730_v2 }
 0x558   :  { %v9894_v11 = vpop.f32.mrb[16].mxu0 }
 0x559   :  { %v1363_v12 = vadd.f32 %v9894_v11, %v11345_v1  ;;  %v1353_v13 = vpop.f32.mrb[17].mxu0  ;;  %v10690_v1 = vpack.c.bf16 %v1381_v21, %v1380_v20  ;;  %v10734_v11 = vpack.c.bf16 %v9018_v9, %v9017_v7 }
 0x55a   :  { %v1362_v15 = vadd.f32 %v1353_v13, %v11340_v0  ;;  %v1382_v0 = vld [vmem:[%s12745_s6 + $0x10] sm:$0xff]  ;;  %v9010_v13 = vld [vmem:[%s12743_s4 + $0xe8] sm:$0xff] }
 0x55b   :  { %v1365_v16 = vmul.f32 %v1363_v12, %v1363_v12  ;;  %v10694_v23 = vpack.c.bf16 %v1383_v22, %v1382_v0  ;;  %10691 = vmatprep.subr.bf16.mxu1 %v10690_v1 }
 0x55c   :  { %v1364_v17 = vmul.f32 %v1362_v15, %v1362_v15  ;;  %10693 = vmatpush3.bf16.msra.mxu1 %v10690_v1 }
 0x55d   :  { %v1369_v18 = vsel %vm52_vm0, %v1365_v16, 0.0  ;;  %10695 = vmatprep.subr.bf16.mxu1 %v10694_v23 }
 0x55e   :  { %1370 = vadd.xlane.f32.xlu1 %v1369_v18  ;;  %v1366_v19 = vsel %vm52_vm0, %v1364_v17, 0.0  ;;  %v9028_v17 = vld [vmem:[%s12743_s4 + $0x148] sm:$0xff] }
 0x55f   :  { %1367 = vadd.xlane.f32.xlu0 %v1366_v19 }
 0x560   :  { %10697 = vmatpush3.bf16.msra.mxu1 %v10694_v23 }
 0x561   :  { %10715 = vmatprep.subr.bf16.mxu1 %v10714_v62 }
 0x5eb   :  { %v1371_v33 = vpop.xlane.xlu1 %1370 }
 0x5ec   :  { %v1373_v34 = vmul.f32 0.03125, %v1371_v33  ;;  %v1368_v35 = vpop.xlane.xlu0 %1367  ;;  %v9021_v33 = vld [vmem:[%s12743_s4 + $0x120] sm:$0xff] }
 0x5ed   :  { %v1372_v36 = vmul.f32 0.03125, %v1368_v35 }
 0x5ee   :  { %v1375_v37 = vadd.f32 1e-06, %v1373_v34  ;;  %v9022_v34 = vld [vmem:[%s12743_s4 + $0x128] sm:$0xff] }
 0x5ef   :  { %v1374_v38 = vadd.f32 1e-06, %v1372_v36  ;;  %v10738_v35 = vpack.c.bf16 %v9022_v34, %v9021_v33  ;;  %v9023_v36 = vld [vmem:[%s12743_s4 + $0x130] sm:$0xff] }
 0x5f0   :  { %11132 = vrsqrt.f32 %v1375_v37  ;;  %v9024_v37 = vld [vmem:[%s12743_s4 + $0x138] sm:$0xff] }
 0x5f1   :  { %11134 = vrsqrt.f32 %v1374_v38  ;;  %v10742_v38 = vpack.c.bf16 %v9024_v37, %v9023_v36 }
 0x5fa   :  { %v11133_v39 = vpop.eup %11132 }
 0x5fb   :  { %v11135_v40 = vpop.eup %11134  ;;  %v1379_v42 = vmul.f32 %v11133_v39, %v1363_v12  ;;  %v9033_v39 = vld [vmem:[%s12743_s4 + $0x160] sm:$0xff] }
 0x5fc   :  { %v1378_v41 = vmul.f32 %v11135_v40, %v1362_v15  ;;  %v9034_v40 = vld [vmem:[%s12743_s4 + $0x168] sm:$0xff] }
 0x5fe   :  { %9903 = vmatprep.mubr.msk.f32.mxu1 %vm52_vm0, %v1378_v41  ;;  %v10754_v41 = vpack.c.bf16 %v9034_v40, %v9033_v39 }
 0x5ff   :  { %9904 = vmatmul.mubr.msk.f32.vlgmr.msra.gmra.mrb[12].mxu1 %vm52_vm0, %v1379_v42  ;;  %v9035_v42 = vld [vmem:[%s12743_s4 + $0x170] sm:$0xff] }
 0x600   :  { %10717 = vmatpush3.bf16.msra.mxu1 %v10714_v62  ;;  %v10758_v44 = vpack.c.bf16 %v9036_v43, %v9035_v42 }
 0x601   :  { %10719 = vmatprep.subr.bf16.mxu1 %v10718_v8 }
 0x604   :  { %10721 = vmatpush3.bf16.msra.mxu1 %v10718_v8 }
 0x6d2   :  { %v9905_v46 = vpop.f32.mrb[12].mxu1 }
 0x6d3   :  { %v1456_v47 = vpop.f32.mrb[13].mxu1  ;;  %v1466_v49 = vmax.f32 %v9905_v46, 0.0 }
 0x6d4   :  { %v1465_v48 = vmax.f32 %v1456_v47, 0.0 }
 0x6d6   :  { %9922 = vmatprep.mubr.msk.f32.mxu0 %vm1475_vm4, %v1465_v48 }
 0x6d7   :  { %9923 = vmatmul.mubr.msk.f32.vlgmr.msra.gmra.mrb[18].mxu0 %vm1475_vm4, %v1466_v49 }
 0x6d8   :  { %10733 = vmatpush3.bf16.msra.mxu0 %v10730_v2 }
 0x6d9   :  { %10735 = vmatprep.subr.bf16.mxu0 %v10734_v11 }
 0x6dc   :  { %10737 = vmatpush3.bf16.msra.mxu0 %v10734_v11 }
 0x7aa   :  { %v9924_v50 = vpop.f32.mrb[18].mxu0 }
 0x7ab   :  { %v11573_v51 = vadd.f32 %v9924_v50, %v1363_v12  ;;  %v1548_v53 = vpop.f32.mrb[19].mxu0  ;;  %v9009_v12 = vld [vmem:[%s12743_s4 + $0xe0] sm:$0xff] }
 0x7ac   :  { %v11575_v54 = vadd.f32 %v1548_v53, %v1362_v15  ;;  %v9027_v15 = vld [vmem:[%s12743_s4 + $0x140] sm:$0xff]  ;;  %v10722_v16 = vpack.c.bf16 %v9010_v13, %v9009_v12 }
 0x7ad   :  { %v1560_v55 = vmul.f32 %v11573_v51, %v11573_v51  ;;  %v10746_v18 = vpack.c.bf16 %v9028_v17, %v9027_v15 }
 0x7ae   :  { %v1559_v56 = vmul.f32 %v11575_v54, %v11575_v54  ;;  %10723 = vmatprep.subr.bf16.mxu1 %v10722_v16 }
 0x7af   :  { %v1564_v57 = vsel %vm52_vm0, %v1560_v55, 0.0  ;;  %10747 = vmatprep.subr.bf16.mxu0 %v10746_v18 }
 0x7b0   :  { %1565 = vadd.xlane.f32.xlu1 %v1564_v57  ;;  %v1561_v59 = vsel %vm52_vm0, %v1559_v56, 0.0 }
 0x7b1   :  { %1562 = vadd.xlane.f32.xlu0 %v1561_v59 }
 0x83d   :  { %v1566_v19 = vpop.xlane.xlu1 %1565 }
 0x83e   :  { %v1568_v20 = vmul.f32 0.03125, %v1566_v19  ;;  %v1563_v21 = vpop.xlane.xlu0 %1562 }
 0x83f   :  { %v1567_v0 = vmul.f32 0.03125, %v1563_v21 }
 0x840   :  { %v1570_v1 = vadd.f32 1e-06, %v1568_v20 }
 0x841   :  { %v1569_v22 = vadd.f32 1e-06, %v1567_v0 }
 0x842   :  { %11136 = vrsqrt.f32 %v1570_v1 }
 0x843   :  { %11138 = vrsqrt.f32 %v1569_v22 }
 0x84c   :  { %v11137_v23 = vpop.eup %11136 }
 0x84d   :  { %v11139_v25 = vpop.eup %11138  ;;  %v1574_v30 = vmul.f32 %v11137_v23, %v11573_v51 }
 0x84e   :  { %v1573_v29 = vmul.f32 %v11139_v25, %v11575_v54 }
 0x850   :  { %9933 = vmatprep.mubr.msk.f32.mxu1 %vm52_vm0, %v1573_v29  ;;  %9955 = vmatprep.mubr.msk.f32.mxu0 %vm52_vm0, %v1573_v29 }
 0x851   :  { %9934 = vmatmul.mubr.msk.f32.vlgmr.msra.gmra.mrb[14].mxu1 %vm52_vm0, %v1574_v30  ;;  %9956 = vmatmul.mubr.msk.f32.vlgmr.msra.gmra.mrb[20].mxu0 %vm52_vm0, %v1574_v30 }
 0x852   :  { %10725 = vmatpush3.bf16.msra.mxu1 %v10722_v16  ;;  %10749 = vmatpush3.bf16.msra.mxu0 %v10746_v18 }
 0x853   :  { %9944 = vmatprep.mubr.msk.f32.mxu1 %vm52_vm0, %v1573_v29  ;;  %9977 = vmatprep.mubr.msk.f32.mxu0 %vm52_vm0, %v1573_v29 }
 0x854   :  { %10727 = vmatprep.subr.bf16.mxu1 %v10726_v31  ;;  %10751 = vmatprep.subr.bf16.mxu0 %v10750_v32 }
 0x856   :  { %10729 = vmatpush3.bf16.msra.mxu1 %v10726_v31  ;;  %10753 = vmatpush3.bf16.msra.mxu0 %v10750_v32 }
 0x857   :  { %10739 = vmatprep.subr.bf16.mxu1 %v10738_v35  ;;  %9991 = vmatprep.subr.mxu0 %v11278_v52 }
 0x859   :  { %9945 = vmatmul.mubr.msk.f32.vlgmr.msra.gmra.mrb[16].mxu1 %vm52_vm0, %v1574_v30  ;;  %9978 = vmatmul.mubr.msk.f32.vlgmr.msra.gmra.mrb[22].mxu0 %vm52_vm0, %v1574_v30 }
 0x85a   :  { %10741 = vmatpush3.bf16.msra.mxu1 %v10738_v35  ;;  %9966 = vmatprep.mubr.msk.f32.mxu1 %vm52_vm0, %v1573_v29 }
 0x85b   :  { %10743 = vmatprep.subr.bf16.mxu1 %v10742_v38  ;;  %9993 = vmatprep.mubr.msk.f32.mxu0 %vm11279_vm1, %v11278_v52 }
 0x85e   :  { %10745 = vmatpush3.bf16.msra.mxu1 %v10742_v38 }
 0x85f   :  { %10755 = vmatprep.subr.bf16.mxu1 %v10754_v41 }
 0x861   :  { %9967 = vmatmul.mubr.msk.f32.vlgmr.msra.gmra.mrb[18].mxu1 %vm52_vm0, %v1574_v30 }
 0x862   :  { %10757 = vmatpush3.bf16.msra.mxu1 %v10754_v41  ;;  %9988 = vmatprep.mubr.msk.f32.mxu1 %vm52_vm0, %v1573_v29 }
 0x863   :  { %10759 = vmatprep.subr.bf16.mxu1 %v10758_v44 }
 0x866   :  { %10761 = vmatpush3.bf16.msra.mxu1 %v10758_v44  ;;  %v9053_v44 = vld [vmem:[%s12744_s5 + $0x30] sm:$0xff] }
 0x867   :  { %9996 = vmatprep.subr.mxu1 %v11278_v52 }
 0x869   :  { %9989 = vmatmul.mubr.msk.f32.vlgmr.msra.gmra.mrb[20].mxu1 %vm52_vm0, %v1574_v30 }
 0x86a   :  { %9998 = vmatprep.mubr.msk.f32.mxu1 %vm11279_vm1, %v11278_v52 }
 0x924   :  { %v9935_v45 = vpop.f32.mrb[14].mxu1  ;;  %v9957_v46 = vpop.f32.mrb[20].mxu0 }
 0x925   :  { %v1652_v47 = vpop.f32.mrb[15].mxu1  ;;  %v1812_v48 = vpop.f32.mrb[21].mxu0  ;;  %9997 = vmatpush3.xpose.msk.msra.mxu1 %vm553_vm2, %v9957_v46 }
 0x926   :  { %9992 = vmatpush3.xpose.msk.msra.mxu0 %vm553_vm2, %v1812_v48  ;;  %10006 = vmatprep.subr.mxu1 %v11278_v52  ;;  %v9052_v48 = vld [vmem:[%s12744_s5 + $0x28] sm:$0xff] }
 0x927   :  { %10001 = vmatprep.subr.mxu0 %v11278_v52 }
 0x928   :  { %9999 = vmatmul.mubr.msk.f32.vlgmr.msra.gmra.mrb[22].mxu1 %vm553_vm2, %v9935_v45  ;;  %v9054_v45 = vld [vmem:[%s12744_s5 + $0x38] sm:$0xff] }
 0x929   :  { %9994 = vmatmul.mubr.msk.f32.vlgmr.msra.gmra.mrb[24].mxu0 %vm553_vm2, %v1652_v47  ;;  %10008 = vmatprep.mubr.msk.f32.mxu1 %vm11279_vm1, %v11278_v52  ;;  %v10762_v46 = vpack.c.bf16 %v9054_v45, %v9053_v44  ;;  %v9051_v47 = vld [vmem:[%s12744_s5 + $0x20] sm:$0xff] }
 0x92a   :  { %10003 = vmatprep.mubr.msk.f32.mxu0 %vm11279_vm1, %v11278_v52 }
 0x92c   :  { %v9946_v49 = vpop.f32.mrb[16].mxu1  ;;  %v9979_v50 = vpop.f32.mrb[22].mxu0 }
 0x92d   :  { %v1732_v53 = vpop.f32.mrb[17].mxu1  ;;  %v1972_v55 = vpop.f32.mrb[23].mxu0 }
 0x934   :  { %v9968_v56 = vpop.f32.mrb[18].mxu1 }
 0x935   :  { %v1892_v57 = vpop.f32.mrb[19].mxu1  ;;  %10007 = vmatpush3.xpose.msk.msra.mxu1 %vm553_vm2, %v9968_v56 }
 0x936   :  { %10002 = vmatpush3.xpose.msk.msra.mxu0 %vm553_vm2, %v1892_v57  ;;  %10016 = vmatprep.subr.mxu1 %v11278_v52 }
 0x937   :  { %10011 = vmatprep.subr.mxu0 %v11278_v52 }
 0x938   :  { %10009 = vmatmul.mubr.msk.f32.vlgmr.msra.gmra.mrb[24].mxu1 %vm553_vm2, %v9946_v49  ;;  %v10766_v49 = vpack.c.bf16 %v9052_v48, %v9051_v47 }
 0x939   :  { %10004 = vmatmul.mubr.msk.f32.vlgmr.msra.gmra.mrb[26].mxu0 %vm553_vm2, %v1732_v53  ;;  %10017 = vmatpush3.msra.mxu1 %v9979_v50 }
 0x93a   :  { %10012 = vmatpush3.msra.mxu0 %v1972_v55  ;;  %10018 = vmatprep.mubr.msk.f32.mxu1 %vm11279_vm1, %v11278_v52 }
 0x93b   :  { %10026 = vmatprep.subr.mxu1 %v11278_v52  ;;  %10013 = vmatprep.mubr.msk.f32.mxu0 %vm11279_vm1, %v11278_v52 }
 0x93c   :  { %v9990_v59 = vpop.f32.mrb[20].mxu1  ;;  %10021 = vmatprep.subr.mxu0 %v11278_v52 }
 0x93d   :  { %v2052_v58 = vpop.f32.mrb[21].mxu1 }
 0x9fb   :  { %v2209_v60 = vpop.f32.mrb[22].mxu1 }
 0x9fc   :  { %v2210_v61 = vadd.f32 %v2209_v60, %v11479_v5  ;;  %v2133_v62 = vpop.f32.mrb[24].mxu0  ;;  %v10000_v63 = vpop.f32.mrb[23].mxu1 }
 0x9fd   :  { %v2134_v2 = vadd.f32 %v2133_v62, %v11474_v3  ;;  %v9995_v4 = vpop.f32.mrb[25].mxu0 }
 0x9fe   :  { %v2368_v6 = vsel %vm858_vm3, %v2210_v61, -inf }
 0x9ff   :  { %2369 = vmax.xlane.f32.xlu1 %v2368_v6  ;;  %v2365_v7 = vsel %vm858_vm3, %v2134_v2, -inf }
 0xa00   :  { %2366 = vmax.xlane.f32.xlu0 %v2365_v7 }
 0xa0b   :  { %v2361_v8 = vpop.f32.mrb[24].mxu1 }
 0xa0c   :  { %v2362_v9 = vadd.f32 %v2361_v8, %v11492_v14  ;;  %v2285_v11 = vpop.f32.mrb[26].mxu0  ;;  %v10010_v12 = vpop.f32.mrb[25].mxu1 }
 0xa0d   :  { %v2286_v13 = vadd.f32 %v2285_v11, %v11485_v10  ;;  %v10005_v15 = vpop.f32.mrb[27].mxu0  ;;  %v9060_v11 = vld [vmem:[%s12745_s6 + $0x28] sm:$0xff]  ;;  %v9062_v12 = vld [vmem:[%s12745_s6 + $0x38] sm:$0xff] }
 0xa0e   :  { %v2374_v5 = vsel %vm858_vm3, %v2362_v9, -inf  ;;  %v9065_v15 = vld [vmem:[%s12746_s7 + $0x40] sm:$0xff] }
 0xa0f   :  { %2375 = vmax.xlane.f32.xlu1 %v2374_v5  ;;  %v2371_v3 = vsel %vm858_vm3, %v2286_v13, -inf  ;;  %v9066_v5 = vld [vmem:[%s12746_s7 + $0x48] sm:$0xff] }
 0xa10   :  { %2372 = vmax.xlane.f32.xlu0 %v2371_v3  ;;  %v9067_v3 = vld [vmem:[%s12746_s7 + $0x50] sm:$0xff] }
 0xa8c   :  { %v2370_v16 = vpop.xlane.xlu1 %2369 }
 0xa8d   :  { %v2378_v17 = vsub.f32 %v2210_v61, %v2370_v16  ;;  %v2367_v18 = vpop.xlane.xlu0 %2366  ;;  %v10778_v16 = vpack.c.bf16 %v9066_v5, %v9065_v15 }
 0xa8e   :  { %v2377_v19 = vsub.f32 %v2134_v2, %v2367_v18 }
 0xa8f   :  { %v2383_v20 = vmul.f32 1.442695, %v2378_v17  ;;  %v9068_v17 = vld [vmem:[%s12746_s7 + $0x58] sm:$0xff] }
 0xa90   :  { %v2381_v21 = vmul.f32 1.442695, %v2377_v19  ;;  %v10782_v18 = vpack.c.bf16 %v9068_v17, %v9067_v3  ;;  %v9069_v19 = vld [vmem:[%s12746_s7 + $0x60] sm:$0xff] }
 0xa91   :  { %11140 = vpow2.f32 %v2383_v20  ;;  %v9070_v20 = vld [vmem:[%s12746_s7 + $0x68] sm:$0xff] }
 0xa92   :  { %11142 = vpow2.f32 %v2381_v21  ;;  %v10786_v21 = vpack.c.bf16 %v9070_v20, %v9069_v19  ;;  %v9084_v19 = vld [vmem:[%s12743_s4 + $0x3b8] sm:$0xff]  ;;  %v9101_v20 = vld [vmem:[%s12743_s4 + $0x3d0] sm:$0xff] }
 0xa9b   :  { %v11141_v14 = vpop.eup %11140 }
 0xa9c   :  { %v11143_v0 = vpop.eup %11142  ;;  %v2376_v1 = vpop.xlane.xlu1 %2375  ;;  %v2392_v10 = vsel %vm858_vm3, %v11141_v14, 0.0 }
 0xa9d   :  { %v2380_v22 = vsub.f32 %v2362_v9, %v2376_v1  ;;  %v2373_v23 = vpop.xlane.xlu0 %2372  ;;  %2393 = vadd.xlane.f32.xlu1 %v2392_v10  ;;  %v2389_v24 = vsel %vm858_vm3, %v11143_v0, 0.0  ;;  %v9059_v9 = vld [vmem:[%s12745_s6 + $0x20] sm:$0xff] }
 0xa9e   :  { %v2379_v25 = vsub.f32 %v2286_v13, %v2373_v23  ;;  %2390 = vadd.xlane.f32.xlu0 %v2389_v24 }
 0xa9f   :  { %v2387_v26 = vmul.f32 1.442695, %v2380_v22 }
 0xaa0   :  { %v2385_v27 = vmul.f32 1.442695, %v2379_v25 }
 0xaa1   :  { %11144 = vpow2.f32 %v2387_v26 }
 0xaa2   :  { %11146 = vpow2.f32 %v2385_v27 }
 0xaab   :  { %v11145_v28 = vpop.eup %11144 }
 0xaac   :  { %v11147_v29 = vpop.eup %11146  ;;  %v2398_v30 = vsel %vm858_vm3, %v11145_v28, 0.0 }
 0xaad   :  { %2399 = vadd.xlane.f32.xlu1 %v2398_v30  ;;  %v2395_v31 = vsel %vm858_vm3, %v11147_v29, 0.0 }
 0xaae   :  { %2396 = vadd.xlane.f32.xlu0 %v2395_v31 }
 0xb2a   :  { %v2394_v32 = vpop.xlane.xlu1 %2393 }
 0xb2b   :  { %11148 = vrcp.f32 %v2394_v32  ;;  %v2391_v33 = vpop.xlane.xlu0 %2390 }
 0xb2c   :  { %11150 = vrcp.f32 %v2391_v33 }
 0xb35   :  { %v11149_v34 = vpop.eup %11148 }
 0xb36   :  { %v11151_v35 = vpop.eup %11150  ;;  %v2406_v36 = vmul.f32 %v11149_v34, %v11141_v14 }
 0xb37   :  { %v2405_v37 = vmul.f32 %v11151_v35, %v11143_v0 }
 0xb38   :  { %10019 = vmatmul.mubr.msk.f32.vlgmr.msra.gmra.mrb[26].mxu1 %vm858_vm3, %v2406_v36  ;;  %v11780_v36 = vld [vmem:[%s12739_s0 + $0x18] sm:$0xff] }
 0xb39   :  { %10027 = vmatpush3.msra.mxu1 %v9990_v59  ;;  %10014 = vmatmul.mubr.msk.f32.vlgmr.msra.gmra.mrb[28].mxu0 %vm858_vm3, %v2405_v37 }
 0xb3a   :  { %10022 = vmatpush3.msra.mxu0 %v2052_v58  ;;  %v2400_v38 = vpop.xlane.xlu1 %2399  ;;  %10028 = vmatprep.mubr.msk.f32.mxu1 %vm11279_vm1, %v11278_v52 }
 0xb3b   :  { %11152 = vrcp.f32 %v2400_v38  ;;  %v2397_v39 = vpop.xlane.xlu0 %2396  ;;  %10023 = vmatprep.mubr.msk.f32.mxu0 %vm11279_vm1, %v11278_v52  ;;  %10763 = vmatprep.subr.bf16.mxu0 %v10762_v46 }
 0xb3c   :  { %11154 = vrcp.f32 %v2397_v39  ;;  %v11785_v39 = vld [vmem:[%s12739_s0 + $0x10] sm:$0xff]  ;;  %s11280_s0 = smov 1.0  }
 0xb3d   :  { %v3731_v44 = vmul.f32 %v11785_v39, %v11785_v39 }
 0xb3f   :  { %v3733_v48 = vsel %vm52_vm0, %v3731_v44, 0.0 }
 0xb45   :  { %v11153_v40 = vpop.eup %11152 }
 0xb46   :  { %v11155_v41 = vpop.eup %11154  ;;  %v2408_v42 = vmul.f32 %v11153_v40, %v11145_v28  ;;  %v9071_v28 = vld [vmem:[%s12746_s7 + $0x70] sm:$0xff] }
 0xb47   :  { %v2407_v43 = vmul.f32 %v11155_v41, %v11147_v29  ;;  %v9072_v29 = vld [vmem:[%s12746_s7 + $0x78] sm:$0xff] }
 0xb48   :  { %10029 = vmatmul.mubr.msk.f32.vlgmr.msra.gmra.mrb[28].mxu1 %vm858_vm3, %v2408_v42  ;;  %v10790_v30 = vpack.c.bf16 %v9072_v29, %v9071_v28  ;;  %v3732_v42 = vmul.f32 %v11780_v36, %v11780_v36 }
 0xb49   :  { %10024 = vmatmul.mubr.msk.f32.vlgmr.msra.gmra.mrb[30].mxu0 %vm858_vm3, %v2407_v43 }
 0xb4a   :  { %10765 = vmatpush3.bf16.msra.mxu0 %v10762_v46  ;;  %v3736_v47 = vsel %vm52_vm0, %v3732_v42, 0.0  ;;  %v9123_v42 = vld [vmem:[%s12743_s4 + $0x180] sm:$0xff] }
 0xb4b   :  { %10767 = vmatprep.subr.bf16.mxu0 %v10766_v49 }
 0xc0b   :  { %v2551_v50 = vpop.f32.mrb[26].mxu1 }
 0xc0c   :  { %v2478_v53 = vpop.f32.mrb[28].mxu0  ;;  %v10020_v55 = vpop.f32.mrb[27].mxu1 }
 0xc0d   :  { %v10015_v56 = vpop.f32.mrb[29].mxu0 }
 0xc0e   :  { %v9088_v56 = vld [vmem:[%s12743_s4 + $0x408] sm:$0xff] }
 0xc1b   :  { %v2697_v57 = vpop.f32.mrb[28].mxu1 }
 0xc1c   :  { %v2624_v59 = vpop.f32.mrb[30].mxu0  ;;  %v10030_v58 = vpop.f32.mrb[29].mxu1 }
 0xc1d   :  { %v10025_v60 = vpop.f32.mrb[31].mxu0  ;;  %10035 = vmatprep.mubr.msk.f32.mxu0 %vm553_vm2, %v2624_v59  ;;  %v9077_v59 = vld [vmem:[%s12743_s4 + $0x390] sm:$0xff]  ;;  %v9078_v58 = vld [vmem:[%s12743_s4 + $0x398] sm:$0xff] }
 0xc1e   :  { %10036 = vmatmul.mubr.msk.f32.vlgmr.msra.gmra.mrb[32].mxu0 %vm553_vm2, %v2697_v57  ;;  %v9089_v60 = vld [vmem:[%s12743_s4 + $0x410] sm:$0xff] }
 0xc1f   :  { %10769 = vmatpush3.bf16.msra.mxu0 %v10766_v49  ;;  %10042 = vmatprep.mubr.msk.f32.mxu0 %vm553_vm2, %v2478_v53  ;;  %v9075_v49 = vld [vmem:[%s12743_s4 + $0x380] sm:$0xff] }
 0xc20   :  { %10779 = vmatprep.subr.bf16.mxu0 %v10778_v16  ;;  %v9087_v53 = vld [vmem:[%s12743_s4 + $0x400] sm:$0xff] }
 0xc21   :  { %v10810_v57 = vpack.c.bf16 %v9088_v56, %v9087_v53  ;;  %v9117_v56 = vld [vmem:[%s12743_s4 + $0x460] sm:$0xff] }
 0xc26   :  { %10043 = vmatmul.mubr.msk.f32.vlgmr.msra.gmra.mrb[32].mxu0 %vm553_vm2, %v2551_v50  ;;  %v9076_v50 = vld [vmem:[%s12743_s4 + $0x388] sm:$0xff] }
 0xc27   :  { %10781 = vmatpush3.bf16.msra.mxu0 %v10778_v16  ;;  %v10794_v55 = vpack.c.bf16 %v9076_v50, %v9075_v49  ;;  %v9083_v16 = vld [vmem:[%s12743_s4 + $0x3b0] sm:$0xff]  ;;  %v9126_v49 = vld [vmem:[%s12743_s4 + $0x198] sm:$0xff] }
 0xc28   :  { %10783 = vmatprep.subr.bf16.mxu0 %v10782_v18 }
 0xc2b   :  { %10785 = vmatpush3.bf16.msra.mxu0 %v10782_v18 }
 0xc2c   :  { %10787 = vmatprep.subr.bf16.mxu0 %v10786_v21 }
 0xc2f   :  { %10789 = vmatpush3.bf16.msra.mxu0 %v10786_v21  ;;  %v9102_v21 = vld [vmem:[%s12743_s4 + $0x3d8] sm:$0xff] }
 0xc30   :  { %10791 = vmatprep.subr.bf16.mxu0 %v10790_v30 }
 0xc33   :  { %10793 = vmatpush3.bf16.msra.mxu0 %v10790_v30 }
 0xc34   :  { %10811 = vmatprep.subr.bf16.mxu0 %v10810_v57 }
 0xcf9   :  { %v10044_v61 = vpop.f32.mrb[32].mxu0 }
 0xcfa   :  { %v2870_v62 = vadd.f32 %v10044_v61, %v11573_v51  ;;  %v2860_v63 = vpop.f32.mrb[33].mxu0  ;;  %v9061_v51 = vld [vmem:[%s12745_s6 + $0x30] sm:$0xff]  ;;  %v10798_v61 = vpack.c.bf16 %v9078_v58, %v9077_v59  ;;  %v9135_v58 = vld [vmem:[%s12743_s4 + $0x1c0] sm:$0xff] }
 0xcfb   :  { %v2869_v2 = vadd.f32 %v2860_v63, %v11575_v54  ;;  %v10770_v54 = vpack.c.bf16 %v9060_v11, %v9059_v9  ;;  %v10774_v13 = vpack.c.bf16 %v9062_v12, %v9061_v51 }
 0xcfc   :  { %v2872_v4 = vmul.f32 %v2870_v62, %v2870_v62 }
 0xcfd   :  { %v2871_v6 = vmul.f32 %v2869_v2, %v2869_v2  ;;  %10771 = vmatprep.subr.bf16.mxu1 %v10770_v54 }
 0xcfe   :  { %v2876_v7 = vsel %vm52_vm0, %v2872_v4, 0.0  ;;  %10773 = vmatpush3.bf16.msra.mxu1 %v10770_v54  ;;  %v9082_v4 = vld [vmem:[%s12743_s4 + $0x3a8] sm:$0xff] }
 0xcff   :  { %2877 = vadd.xlane.f32.xlu1 %v2876_v7  ;;  %v2873_v8 = vsel %vm52_vm0, %v2871_v6, 0.0  ;;  %10775 = vmatprep.subr.bf16.mxu1 %v10774_v13  ;;  %v9099_v6 = vld [vmem:[%s12743_s4 + $0x3c0] sm:$0xff] }
 0xd00   :  { %2874 = vadd.xlane.f32.xlu0 %v2873_v8  ;;  %v9100_v8 = vld [vmem:[%s12743_s4 + $0x3c8] sm:$0xff] }
 0xd01   :  { %v10826_v9 = vpack.c.bf16 %v9100_v8, %v9099_v6  ;;  %v9137_v6 = vld [vmem:[%s12743_s4 + $0x1d0] sm:$0xff] }
 0xd02   :  { %10777 = vmatpush3.bf16.msra.mxu1 %v10774_v13 }
 0xd03   :  { %10795 = vmatprep.subr.bf16.mxu1 %v10794_v55 }
 0xd8c   :  { %v2878_v14 = vpop.xlane.xlu1 %2877 }
 0xd8d   :  { %v2880_v0 = vmul.f32 0.03125, %v2878_v14  ;;  %v2875_v1 = vpop.xlane.xlu0 %2874 }
 0xd8e   :  { %v2879_v10 = vmul.f32 0.03125, %v2875_v1 }
 0xd8f   :  { %v2882_v22 = vadd.f32 1e-06, %v2880_v0 }
 0xd90   :  { %v2881_v23 = vadd.f32 1e-06, %v2879_v10  ;;  %v9093_v10 = vld [vmem:[%s12743_s4 + $0x420] sm:$0xff] }
 0xd91   :  { %11156 = vrsqrt.f32 %v2882_v22  ;;  %v10806_v22 = vpack.c.bf16 %v9084_v19, %v9083_v16 }
 0xd92   :  { %11158 = vrsqrt.f32 %v2881_v23  ;;  %v10830_v23 = vpack.c.bf16 %v9102_v21, %v9101_v20  ;;  %v9141_v20 = vld [vmem:[%s12743_s4 + $0x1e0] sm:$0xff]  ;;  %v9142_v21 = vld [vmem:[%s12743_s4 + $0x1e8] sm:$0xff] }
 0xd9b   :  { %v11157_v24 = vpop.eup %11156 }
 0xd9c   :  { %v11159_v25 = vpop.eup %11158  ;;  %v2886_v27 = vmul.f32 %v11157_v24, %v2870_v62 }
 0xd9d   :  { %v2885_v26 = vmul.f32 %v11159_v25, %v2869_v2  ;;  %v9094_v25 = vld [vmem:[%s12743_s4 + $0x428] sm:$0xff] }
 0xd9e   :  { %v10818_v29 = vpack.c.bf16 %v9094_v25, %v9093_v10  ;;  %v9143_v10 = vld [vmem:[%s12743_s4 + $0x1f0] sm:$0xff] }
 0xd9f   :  { %10053 = vmatprep.mubr.msk.f32.mxu1 %vm52_vm0, %v2885_v26  ;;  %v9111_v26 = vld [vmem:[%s12743_s4 + $0x440] sm:$0xff] }
 0xda0   :  { %10054 = vmatmul.mubr.msk.f32.vlgmr.msra.gmra.mrb[30].mxu1 %vm52_vm0, %v2886_v27  ;;  %v9112_v27 = vld [vmem:[%s12743_s4 + $0x448] sm:$0xff] }
 0xda1   :  { %10797 = vmatpush3.bf16.msra.mxu1 %v10794_v55  ;;  %v10842_v30 = vpack.c.bf16 %v9112_v27, %v9111_v26  ;;  %v9155_v26 = vld [vmem:[%s12743_s4 + $0x230] sm:$0xff]  ;;  %v9156_v27 = vld [vmem:[%s12743_s4 + $0x238] sm:$0xff] }
 0xda2   :  { %10799 = vmatprep.subr.bf16.mxu1 %v10798_v61 }
 0xda5   :  { %10801 = vmatpush3.bf16.msra.mxu1 %v10798_v61 }
 0xe73   :  { %v10055_v31 = vpop.f32.mrb[30].mxu1 }
 0xe74   :  { %v2964_v32 = vpop.f32.mrb[31].mxu1  ;;  %v2974_v34 = vmax.f32 %v10055_v31, 0.0  ;;  %v9095_v31 = vld [vmem:[%s12743_s4 + $0x430] sm:$0xff] }
 0xe75   :  { %v2973_v33 = vmax.f32 %v2964_v32, 0.0  ;;  %v9096_v32 = vld [vmem:[%s12743_s4 + $0x438] sm:$0xff] }
 0xe77   :  { %10072 = vmatprep.mubr.msk.f32.mxu0 %vm1475_vm4, %v2973_v33  ;;  %v9113_v33 = vld [vmem:[%s12743_s4 + $0x450] sm:$0xff] }
 0xe78   :  { %10073 = vmatmul.mubr.msk.f32.vlgmr.msra.gmra.mrb[34].mxu0 %vm1475_vm4, %v2974_v34  ;;  %v9114_v34 = vld [vmem:[%s12743_s4 + $0x458] sm:$0xff] }
 0xe79   :  { %10813 = vmatpush3.bf16.msra.mxu0 %v10810_v57  ;;  %v9118_v57 = vld [vmem:[%s12743_s4 + $0x468] sm:$0xff] }
 0xe7a   :  { %v10850_v61 = vpack.c.bf16 %v9118_v57, %v9117_v56 }
 0xf4b   :  { %v10074_v35 = vpop.f32.mrb[34].mxu0 }
 0xf4c   :  { %v3066_v37 = vadd.f32 %v10074_v35, %v2870_v62  ;;  %v3056_v38 = vpop.f32.mrb[35].mxu0  ;;  %v9090_v62 = vld [vmem:[%s12743_s4 + $0x418] sm:$0xff] }
 0xf4d   :  { %v3065_v40 = vadd.f32 %v3056_v38, %v2869_v2  ;;  %v10814_v63 = vpack.c.bf16 %v9090_v62, %v9089_v60  ;;  %v9081_v2 = vld [vmem:[%s12743_s4 + $0x3a0] sm:$0xff]  ;;  %v10846_v38 = vpack.c.bf16 %v9114_v34, %v9113_v33  ;;  %v9136_v60 = vld [vmem:[%s12743_s4 + $0x1c8] sm:$0xff] }
 0xf4e   :  { %v3068_v41 = vmul.f32 %v3066_v37, %v3066_v37  ;;  %v10802_v7 = vpack.c.bf16 %v9082_v4, %v9081_v2  ;;  %v9119_v2 = vld [vmem:[%s12743_s4 + $0x470] sm:$0xff]  ;;  %v9120_v4 = vld [vmem:[%s12743_s4 + $0x478] sm:$0xff] }
 0xf4f   :  { %v3067_v43 = vmul.f32 %v3065_v40, %v3065_v40  ;;  %10815 = vmatprep.subr.bf16.mxu0 %v10814_v63 }
 0xf50   :  { %v3072_v45 = vsel %vm52_vm0, %v3068_v41, 0.0  ;;  %10817 = vmatpush3.bf16.msra.mxu0 %v10814_v63  ;;  %10803 = vmatprep.subr.bf16.mxu1 %v10802_v7  ;;  %v9106_v41 = vld [vmem:[%s12743_s4 + $0x3e8] sm:$0xff]  ;;  %v10874_v63 = vpack.c.bf16 %v9136_v60, %v9135_v58 }
 0xf51   :  { %3073 = vadd.xlane.f32.xlu1 %v3072_v45  ;;  %v3069_v46 = vsel %vm52_vm0, %v3067_v43, 0.0  ;;  %10827 = vmatprep.subr.bf16.mxu0 %v10826_v9  ;;  %v9124_v43 = vld [vmem:[%s12743_s4 + $0x188] sm:$0xff] }
 0xf52   :  { %3070 = vadd.xlane.f32.xlu0 %v3069_v46  ;;  %v10858_v45 = vpack.c.bf16 %v9124_v43, %v9123_v42  ;;  %v9107_v46 = vld [vmem:[%s12743_s4 + $0x3f0] sm:$0xff] }
 0xf55   :  { %3737 = vadd.xlane.f32.xlu1 %v3736_v47  ;;  %v9108_v47 = vld [vmem:[%s12743_s4 + $0x3f8] sm:$0xff] }
 0xf56   :  { %3734 = vadd.xlane.f32.xlu0 %v3733_v48  ;;  %v9125_v48 = vld [vmem:[%s12743_s4 + $0x190] sm:$0xff]  ;;  %v10838_v53 = vpack.c.bf16 %v9108_v47, %v9107_v46 }
 0xf57   :  { %v10862_v55 = vpack.c.bf16 %v9126_v49, %v9125_v48 }
 0xfde   :  { %v3074_v11 = vpop.xlane.xlu1 %3073 }
 0xfdf   :  { %v3076_v51 = vmul.f32 0.03125, %v3074_v11  ;;  %v3071_v54 = vpop.xlane.xlu0 %3070  ;;  %v9129_v11 = vld [vmem:[%s12743_s4 + $0x1a0] sm:$0xff] }
 0xfe0   :  { %v3075_v12 = vmul.f32 0.03125, %v3071_v54 }
 0xfe1   :  { %v3078_v13 = vadd.f32 1e-06, %v3076_v51  ;;  %v9130_v51 = vld [vmem:[%s12743_s4 + $0x1a8] sm:$0xff] }
 0xfe2   :  { %v3077_v15 = vadd.f32 1e-06, %v3075_v12  ;;  %v3738_v1 = vpop.xlane.xlu1 %3737  ;;  %v9147_v12 = vld [vmem:[%s12743_s4 + $0x200] sm:$0xff] }
 0xfe3   :  { %11160 = vrsqrt.f32 %v3078_v13  ;;  %v3735_v5 = vpop.xlane.xlu0 %3734  ;;  %v3740_v28 = vmul.f32 0.03125, %v3738_v1  ;;  %v9148_v13 = vld [vmem:[%s12743_s4 + $0x208] sm:$0xff]  ;;  %v10882_v1 = vpack.c.bf16 %v9142_v21, %v9141_v20 }
 0xfe4   :  { %11162 = vrsqrt.f32 %v3077_v15  ;;  %v3739_v17 = vmul.f32 0.03125, %v3735_v5  ;;  %v10866_v15 = vpack.c.bf16 %v9130_v51, %v9129_v11  ;;  %v9131_v5 = vld [vmem:[%s12743_s4 + $0x1b0] sm:$0xff]  ;;  %v10890_v16 = vpack.c.bf16 %v9148_v13, %v9147_v12 }
 0xfe5   :  { %v3742_v35 = vadd.f32 1e-06, %v3740_v28  ;;  %v10902_v28 = vpack.c.bf16 %v9156_v27, %v9155_v26  ;;  %v12115_v12 = vld [vmem:[%s12741_s2 + $0x10] sm:$0xff] }
 0xfe6   :  { %v3741_v24 = vadd.f32 1e-06, %v3739_v17  ;;  %v9149_v17 = vld [vmem:[%s12743_s4 + $0x210] sm:$0xff] }
 0xfe8   :  { %11164 = vrsqrt.f32 %v3741_v24  ;;  %v9154_v24 = vld [vmem:[%s12743_s4 + $0x228] sm:$0xff] }
 0xfe9   :  { %11166 = vrsqrt.f32 %v3742_v35 }
 0xfed   :  { %v11161_v3 = vpop.eup %11160 }
 0xfee   :  { %v11163_v18 = vpop.eup %11162  ;;  %v11845_v0 = vmul.f32 %v11161_v3, %v3066_v37  ;;  %v10822_v37 = vpack.c.bf16 %v9096_v32, %v9095_v31  ;;  %v9132_v3 = vld [vmem:[%s12743_s4 + $0x1b8] sm:$0xff] }
 0xfef   :  { %v11843_v14 = vmul.f32 %v11163_v18, %v3065_v40  ;;  %v9105_v40 = vld [vmem:[%s12743_s4 + $0x3e0] sm:$0xff]  ;;  %v9150_v18 = vld [vmem:[%s12743_s4 + $0x218] sm:$0xff]  ;;  %v10870_v19 = vpack.c.bf16 %v9132_v3, %v9131_v5 }
 0xff0   :  { %v10834_v44 = vpack.c.bf16 %v9106_v41, %v9105_v40 }
 0xff1   :  { %10083 = vmatprep.mubr.msk.f32.mxu1 %vm52_vm0, %v11843_v14  ;;  %10105 = vmatprep.mubr.msk.f32.mxu0 %vm52_vm0, %v11843_v14 }
 0xff2   :  { %10084 = vmatmul.mubr.msk.f32.vlgmr.msra.gmra.mrb[32].mxu1 %vm52_vm0, %v11845_v0  ;;  %10106 = vmatmul.mubr.msk.f32.vlgmr.msra.gmra.mrb[36].mxu0 %vm52_vm0, %v11845_v0  ;;  %v11165_v50 = vpop.eup %11164 }
 0xff3   :  { %10805 = vmatpush3.bf16.msra.mxu1 %v10802_v7  ;;  %10829 = vmatpush3.bf16.msra.mxu0 %v10826_v9  ;;  %v11922_v59 = vmul.f32 %v11165_v50, %v11785_v39  ;;  %v11167_v62 = vpop.eup %11166  ;;  %v9138_v7 = vld [vmem:[%s12743_s4 + $0x1d8] sm:$0xff]  ;;  %v10854_v9 = vpack.c.bf16 %v9120_v4, %v9119_v2 }
 0xff4   :  { %10094 = vmatprep.mubr.msk.f32.mxu1 %vm52_vm0, %v11843_v14  ;;  %10127 = vmatprep.mubr.msk.f32.mxu0 %vm52_vm0, %v11843_v14  ;;  %v11951_v8 = vmul.f32 %v11167_v62, %v11780_v36  ;;  %v10878_v54 = vpack.c.bf16 %v9138_v7, %v9137_v6  ;;  %v12096_v62 = vld [vmem:[%s12741_s2 + $0x8] sm:$0xff] }
 0xff5   :  { %10807 = vmatprep.subr.bf16.mxu1 %v10806_v22  ;;  %10831 = vmatprep.subr.bf16.mxu0 %v10830_v23 }
 0xff7   :  { %10809 = vmatpush3.bf16.msra.mxu1 %v10806_v22  ;;  %10833 = vmatpush3.bf16.msra.mxu0 %v10830_v23  ;;  %v9153_v23 = vld [vmem:[%s12743_s4 + $0x220] sm:$0xff] }
 0xff8   :  { %10819 = vmatprep.subr.bf16.mxu1 %v10818_v29  ;;  %10843 = vmatprep.subr.bf16.mxu0 %v10842_v30  ;;  %v10898_v25 = vpack.c.bf16 %v9154_v24, %v9153_v23 }
 0xffa   :  { %10095 = vmatmul.mubr.msk.f32.vlgmr.msra.gmra.mrb[34].mxu1 %vm52_vm0, %v11845_v0  ;;  %10128 = vmatmul.mubr.msk.f32.vlgmr.msra.gmra.mrb[38].mxu0 %vm52_vm0, %v11845_v0 }
 0xffb   :  { %10821 = vmatpush3.bf16.msra.mxu1 %v10818_v29  ;;  %10116 = vmatprep.mubr.msk.f32.mxu1 %vm52_vm0, %v11843_v14 }
 0xffc   :  { %10845 = vmatpush3.bf16.msra.mxu0 %v10842_v30  ;;  %10149 = vmatprep.mubr.msk.f32.mxu0 %vm52_vm0, %v11843_v14 }
 0xffd   :  { %10823 = vmatprep.subr.bf16.mxu1 %v10822_v37  ;;  %10847 = vmatprep.subr.bf16.mxu0 %v10846_v38 }
 0xfff   :  { %10825 = vmatpush3.bf16.msra.mxu1 %v10822_v37 }
0x1000   :  { %10849 = vmatpush3.bf16.msra.mxu0 %v10846_v38  ;;  %10835 = vmatprep.subr.bf16.mxu1 %v10834_v44 }
0x1001   :  { %10859 = vmatprep.subr.bf16.mxu0 %v10858_v45 }
0x1002   :  { %10117 = vmatmul.mubr.msk.f32.vlgmr.msra.gmra.mrb[36].mxu1 %vm52_vm0, %v11845_v0 }
0x1003   :  { %10150 = vmatmul.mubr.msk.f32.vlgmr.msra.gmra.mrb[40].mxu0 %vm52_vm0, %v11845_v0  ;;  %10837 = vmatpush3.bf16.msra.mxu1 %v10834_v44 }
0x1004   :  { %10138 = vmatprep.mubr.msk.f32.mxu1 %vm52_vm0, %v11843_v14  ;;  %10861 = vmatpush3.bf16.msra.mxu0 %v10858_v45 }
0x1005   :  { %10839 = vmatprep.subr.bf16.mxu1 %v10838_v53  ;;  %10863 = vmatprep.subr.bf16.mxu0 %v10862_v55 }
0x1006   :  { %10171 = vmatprep.mubr.msk.f32.mxu0 %vm52_vm0, %v11922_v59 }
0x1007   :  { %10841 = vmatpush3.bf16.msra.mxu1 %v10838_v53 }
0x1008   :  { %10865 = vmatpush3.bf16.msra.mxu0 %v10862_v55  ;;  %10851 = vmatprep.subr.bf16.mxu1 %v10850_v61 }
0x1009   :  { %10875 = vmatprep.subr.bf16.mxu0 %v10874_v63 }
0x100a   :  { %10139 = vmatmul.mubr.msk.f32.vlgmr.msra.gmra.mrb[38].mxu1 %vm52_vm0, %v11845_v0 }
0x100b   :  { %10853 = vmatpush3.bf16.msra.mxu1 %v10850_v61  ;;  %10160 = vmatprep.mubr.msk.f32.mxu1 %vm52_vm0, %v11843_v14  ;;  %v10894_v14 = vpack.c.bf16 %v9150_v18, %v9149_v17 }
0x100c   :  { %10172 = vmatmul.mubr.msk.f32.vlgmr.msra.gmra.mrb[42].mxu0 %vm52_vm0, %v11951_v8  ;;  %10855 = vmatprep.subr.bf16.mxu1 %v10854_v9 }
0x100d   :  { %10877 = vmatpush3.bf16.msra.mxu0 %v10874_v63  ;;  %10193 = vmatprep.mubr.msk.f32.mxu0 %vm52_vm0, %v11922_v59  ;;  %v12101_v63 = vld [vmem:[%s12741_s2] sm:$0xff] }
0x100e   :  { %10879 = vmatprep.subr.bf16.mxu0 %v10878_v54 }
0x100f   :  { %10857 = vmatpush3.bf16.msra.mxu1 %v10854_v9 }
0x1010   :  { %10867 = vmatprep.subr.bf16.mxu1 %v10866_v15 }
0x1011   :  { %10881 = vmatpush3.bf16.msra.mxu0 %v10878_v54  ;;  %v12110_v54 = vld [vmem:[%s12741_s2 + $0x18] sm:$0xff] }
0x1012   :  { %10161 = vmatmul.mubr.msk.f32.vlgmr.msra.gmra.mrb[40].mxu1 %vm52_vm0, %v11845_v0  ;;  %10891 = vmatprep.subr.bf16.mxu0 %v10890_v16  ;;  %v9144_v0 = vld [vmem:[%s12743_s4 + $0x1f8] sm:$0xff] }
0x1013   :  { %10869 = vmatpush3.bf16.msra.mxu1 %v10866_v15  ;;  %10182 = vmatprep.mubr.msk.f32.mxu1 %vm52_vm0, %v11922_v59  ;;  %v10886_v22 = vpack.c.bf16 %v9144_v0, %v9143_v10 }
0x1014   :  { %10194 = vmatmul.mubr.msk.f32.vlgmr.msra.gmra.mrb[44].mxu0 %vm52_vm0, %v11951_v8  ;;  %10871 = vmatprep.subr.bf16.mxu1 %v10870_v19 }
0x1015   :  { %10893 = vmatpush3.bf16.msra.mxu0 %v10890_v16  ;;  %10215 = vmatprep.mubr.msk.f32.mxu0 %vm52_vm0, %v11922_v59 }
0x1016   :  { %10895 = vmatprep.subr.bf16.mxu0 %v10894_v14 }
0x1017   :  { %10873 = vmatpush3.bf16.msra.mxu1 %v10870_v19 }
0x1018   :  { %10883 = vmatprep.subr.bf16.mxu1 %v10882_v1 }
0x1019   :  { %10897 = vmatpush3.bf16.msra.mxu0 %v10894_v14 }
0x101a   :  { %10183 = vmatmul.mubr.msk.f32.vlgmr.msra.gmra.mrb[42].mxu1 %vm52_vm0, %v11951_v8  ;;  %10229 = vmatprep.subr.mxu0 %v11278_v52 }
0x101b   :  { %10885 = vmatpush3.bf16.msra.mxu1 %v10882_v1  ;;  %10204 = vmatprep.mubr.msk.f32.mxu1 %vm52_vm0, %v11922_v59 }
0x101c   :  { %10216 = vmatmul.mubr.msk.f32.vlgmr.msra.gmra.mrb[46].mxu0 %vm52_vm0, %v11951_v8  ;;  %10887 = vmatprep.subr.bf16.mxu1 %v10886_v22 }
0x101d   :  { %10231 = vmatprep.mubr.msk.f32.mxu0 %vm11279_vm1, %v11278_v52 }
0x101f   :  { %10889 = vmatpush3.bf16.msra.mxu1 %v10886_v22 }
0x1020   :  { %10899 = vmatprep.subr.bf16.mxu1 %v10898_v25 }
0x1022   :  { %10205 = vmatmul.mubr.msk.f32.vlgmr.msra.gmra.mrb[44].mxu1 %vm52_vm0, %v11951_v8 }
0x1023   :  { %10901 = vmatpush3.bf16.msra.mxu1 %v10898_v25  ;;  %10226 = vmatprep.mubr.msk.f32.mxu1 %vm52_vm0, %v11922_v59 }
0x1024   :  { %10903 = vmatprep.subr.bf16.mxu1 %v10902_v28 }
0x1027   :  { %10905 = vmatpush3.bf16.msra.mxu1 %v10902_v28 }
0x1028   :  { %10234 = vmatprep.subr.mxu1 %v11278_v52 }
0x102a   :  { %10227 = vmatmul.mubr.msk.f32.vlgmr.msra.gmra.mrb[46].mxu1 %vm52_vm0, %v11951_v8 }
0x102b   :  { %10236 = vmatprep.mubr.msk.f32.mxu1 %vm11279_vm1, %v11278_v52 }
0x10c5   :  { %v12035_v29 = vpop.f32.mrb[32].mxu1  ;;  %v12037_v30 = vpop.f32.mrb[36].mxu0 }
0x10c6   :  { %v12039_v31 = vpop.f32.mrb[33].mxu1  ;;  %v12041_v32 = vpop.f32.mrb[37].mxu0 }
0x10cd   :  { %v12043_v33 = vpop.f32.mrb[34].mxu1  ;;  %v12045_v34 = vpop.f32.mrb[38].mxu0 }
0x10ce   :  { %v12047_v35 = vpop.f32.mrb[35].mxu1  ;;  %v12049_v37 = vpop.f32.mrb[39].mxu0 }
0x10d5   :  { %v12051_v38 = vpop.f32.mrb[36].mxu1 }
0x10d6   :  { %v12053_v40 = vpop.f32.mrb[40].mxu0  ;;  %v12055_v41 = vpop.f32.mrb[37].mxu1 }
0x10d7   :  { %v12057_v42 = vpop.f32.mrb[41].mxu0 }
0x10dd   :  { %v12059_v43 = vpop.f32.mrb[38].mxu1 }
0x10de   :  { %v12061_v44 = vpop.f32.mrb[39].mxu1 }
0x10df   :  { %v10173_v45 = vpop.f32.mrb[42].mxu0 }
0x10e0   :  { %v3824_v46 = vpop.f32.mrb[43].mxu0 }
0x10e5   :  { %v12063_v47 = vpop.f32.mrb[40].mxu1 }
0x10e6   :  { %v12065_v48 = vpop.f32.mrb[41].mxu1 }
0x10e7   :  { %v10195_v49 = vpop.f32.mrb[44].mxu0 }
0x10e8   :  { %v3984_v50 = vpop.f32.mrb[45].mxu0  ;;  %10235 = vmatpush3.xpose.msk.msra.mxu1 %vm553_vm2, %v10195_v49 }
0x10e9   :  { %10230 = vmatpush3.xpose.msk.msra.mxu0 %vm553_vm2, %v3984_v50  ;;  %10244 = vmatprep.subr.mxu1 %v11278_v52 }
0x10ea   :  { %10239 = vmatprep.subr.mxu0 %v11278_v52 }
0x10eb   :  { %10237 = vmatmul.mubr.msk.f32.vlgmr.msra.gmra.mrb[48].mxu1 %vm553_vm2, %v10173_v45 }
0x10ec   :  { %10232 = vmatmul.mubr.msk.f32.vlgmr.msra.gmra.mrb[48].mxu0 %vm553_vm2, %v3824_v46  ;;  %10246 = vmatprep.mubr.msk.f32.mxu1 %vm11279_vm1, %v11278_v52 }
0x10ed   :  { %v10184_v53 = vpop.f32.mrb[42].mxu1  ;;  %10241 = vmatprep.mubr.msk.f32.mxu0 %vm11279_vm1, %v11278_v52 }
0x10ee   :  { %v3904_v55 = vpop.f32.mrb[43].mxu1 }
0x10ef   :  { %v10217_v56 = vpop.f32.mrb[46].mxu0 }
0x10f0   :  { %v4144_v57 = vpop.f32.mrb[47].mxu0 }
0x10f5   :  { %v10206_v59 = vpop.f32.mrb[44].mxu1 }
0x10f6   :  { %v4064_v58 = vpop.f32.mrb[45].mxu1  ;;  %10245 = vmatpush3.xpose.msk.msra.mxu1 %vm553_vm2, %v10206_v59 }
0x10f7   :  { %10240 = vmatpush3.xpose.msk.msra.mxu0 %vm553_vm2, %v4064_v58  ;;  %10254 = vmatprep.subr.mxu1 %v11278_v52 }
0x10f8   :  { %10249 = vmatprep.subr.mxu0 %v11278_v52 }
0x10f9   :  { %10247 = vmatmul.mubr.msk.f32.vlgmr.msra.gmra.mrb[50].mxu1 %vm553_vm2, %v10184_v53 }
0x10fa   :  { %10242 = vmatmul.mubr.msk.f32.vlgmr.msra.gmra.mrb[50].mxu0 %vm553_vm2, %v3904_v55  ;;  %10255 = vmatpush3.msra.mxu1 %v10217_v56 }
0x10fb   :  { %10250 = vmatpush3.msra.mxu0 %v4144_v57  ;;  %10256 = vmatprep.mubr.msk.f32.mxu1 %vm11279_vm1, %v11278_v52 }
0x10fc   :  { %10264 = vmatprep.subr.mxu1 %v11278_v52  ;;  %10251 = vmatprep.mubr.msk.f32.mxu0 %vm11279_vm1, %v11278_v52 }
0x10fd   :  { %v12088_v60 = vpop.f32.mrb[46].mxu1  ;;  %10259 = vmatprep.subr.mxu0 %v11278_v52 }
0x10fe   :  { %v12091_v61 = vpop.f32.mrb[47].mxu1 }
0x11be   :  { %v4381_v2 = vpop.f32.mrb[48].mxu1 }
0x11bf   :  { %v4382_v4 = vadd.f32 %v4381_v2, %v12096_v62  ;;  %v4305_v6 = vpop.f32.mrb[48].mxu0  ;;  %v10238_v7 = vpop.f32.mrb[49].mxu1 }
0x11c0   :  { %v4306_v8 = vadd.f32 %v4305_v6, %v12101_v63  ;;  %v10233_v9 = vpop.f32.mrb[49].mxu0 }
0x11c1   :  { %v4540_v11 = vsel %vm858_vm3, %v4382_v4, -inf }
0x11c2   :  { %4541 = vmax.xlane.f32.xlu1 %v4540_v11  ;;  %v4537_v51 = vsel %vm858_vm3, %v4306_v8, -inf }
0x11c3   :  { %4538 = vmax.xlane.f32.xlu0 %v4537_v51 }
0x11cc   :  { %v4533_v13 = vpop.f32.mrb[50].mxu1 }
0x11cd   :  { %v4534_v15 = vadd.f32 %v4533_v13, %v12110_v54  ;;  %v4457_v5 = vpop.f32.mrb[50].mxu0  ;;  %v10248_v3 = vpop.f32.mrb[51].mxu1 }
0x11ce   :  { %v4458_v16 = vadd.f32 %v4457_v5, %v12115_v12  ;;  %v10243_v17 = vpop.f32.mrb[51].mxu0  ;;  %v9171_v5 = vld [vmem:[%s12744_s5 + $0x40] sm:$0xff]  ;;  %v9172_v3 = vld [vmem:[%s12744_s5 + $0x48] sm:$0xff] }
0x11cf   :  { %v4546_v18 = vsel %vm858_vm3, %v4534_v15, -inf }
0x11d0   :  { %4547 = vmax.xlane.f32.xlu1 %v4546_v18  ;;  %v4543_v19 = vsel %vm858_vm3, %v4458_v16, -inf }
0x11d1   :  { %4544 = vmax.xlane.f32.xlu0 %v4543_v19 }
0x124f   :  { %v4542_v20 = vpop.xlane.xlu1 %4541 }
0x1250   :  { %v4550_v21 = vsub.f32 %v4382_v4, %v4542_v20  ;;  %v4539_v14 = vpop.xlane.xlu0 %4538 }
0x1251   :  { %v4549_v1 = vsub.f32 %v4306_v8, %v4539_v14 }
0x1252   :  { %v4555_v10 = vmul.f32 1.442695, %v4550_v21 }
0x1253   :  { %v4553_v0 = vmul.f32 1.442695, %v4549_v1 }
0x1254   :  { %11168 = vpow2.f32 %v4555_v10 }
0x1255   :  { %11170 = vpow2.f32 %v4553_v0 }
0x125d   :  { %v4548_v22 = vpop.xlane.xlu1 %4547 }
0x125e   :  { %v11169_v23 = vpop.eup %11168  ;;  %v4552_v24 = vsub.f32 %v4534_v15, %v4548_v22  ;;  %v4545_v25 = vpop.xlane.xlu0 %4544 }
0x125f   :  { %v11171_v26 = vpop.eup %11170  ;;  %v4564_v27 = vsel %vm858_vm3, %v11169_v23, 0.0  ;;  %v4551_v28 = vsub.f32 %v4458_v16, %v4545_v25  ;;  %v10910_v16 = vpack.c.bf16 %v9172_v3, %v9171_v5 }
0x1260   :  { %v4559_v45 = vmul.f32 1.442695, %v4552_v24  ;;  %4565 = vadd.xlane.f32.xlu1 %v4564_v27  ;;  %v4561_v46 = vsel %vm858_vm3, %v11171_v26, 0.0 }
0x1261   :  { %v4557_v49 = vmul.f32 1.442695, %v4551_v28  ;;  %4562 = vadd.xlane.f32.xlu0 %v4561_v46 }
0x1262   :  { %11172 = vpow2.f32 %v4559_v45  ;;  %v9185_v45 = vld [vmem:[%s12743_s4 + $0x320] sm:$0xff] }
0x1263   :  { %11174 = vpow2.f32 %v4557_v49  ;;  %v9186_v49 = vld [vmem:[%s12743_s4 + $0x328] sm:$0xff] }
0x126c   :  { %v11173_v50 = vpop.eup %11172 }
0x126d   :  { %v11175_v53 = vpop.eup %11174  ;;  %v4570_v55 = vsel %vm858_vm3, %v11173_v50, 0.0 }
0x126e   :  { %4571 = vadd.xlane.f32.xlu1 %v4570_v55  ;;  %v4567_v56 = vsel %vm858_vm3, %v11175_v53, 0.0  ;;  %v10922_v55 = vpack.c.bf16 %v9186_v49, %v9185_v45 }
0x126f   :  { %4568 = vadd.xlane.f32.xlu0 %v4567_v56 }
0x12ed   :  { %v4566_v57 = vpop.xlane.xlu1 %4565 }
0x12ee   :  { %11176 = vrcp.f32 %v4566_v57  ;;  %v4563_v59 = vpop.xlane.xlu0 %4562  ;;  %v9187_v57 = vld [vmem:[%s12743_s4 + $0x330] sm:$0xff] }
0x12ef   :  { %11178 = vrcp.f32 %v4563_v59  ;;  %v9188_v59 = vld [vmem:[%s12743_s4 + $0x338] sm:$0xff] }
0x12f8   :  { %v11177_v58 = vpop.eup %11176 }
0x12f9   :  { %v11179_v2 = vpop.eup %11178  ;;  %v4578_v4 = vmul.f32 %v11177_v58, %v11169_v23  ;;  %v10926_v58 = vpack.c.bf16 %v9188_v59, %v9187_v57 }
0x12fa   :  { %v4577_v6 = vmul.f32 %v11179_v2, %v11171_v26 }
0x12fb   :  { %10257 = vmatmul.mubr.msk.f32.vlgmr.msra.gmra.mrb[52].mxu1 %vm858_vm3, %v4578_v4  ;;  %v4572_v7 = vpop.xlane.xlu1 %4571 }
0x12fc   :  { %10265 = vmatpush3.msra.mxu1 %v12088_v60  ;;  %10252 = vmatmul.mubr.msk.f32.vlgmr.msra.gmra.mrb[52].mxu0 %vm858_vm3, %v4577_v6  ;;  %11180 = vrcp.f32 %v4572_v7  ;;  %v4569_v8 = vpop.xlane.xlu0 %4568  ;;  %v9173_v60 = vld [vmem:[%s12744_s5 + $0x50] sm:$0xff] }
0x12fd   :  { %10260 = vmatpush3.msra.mxu0 %v12091_v61  ;;  %11182 = vrcp.f32 %v4569_v8  ;;  %10266 = vmatprep.mubr.msk.f32.mxu1 %vm11279_vm1, %v11278_v52  ;;  %v9174_v61 = vld [vmem:[%s12744_s5 + $0x58] sm:$0xff] }
0x12fe   :  { %10261 = vmatprep.mubr.msk.f32.mxu0 %vm11279_vm1, %v11278_v52  ;;  %v10906_v15 = vpack.c.bf16 %v9174_v61, %v9173_v60 }
0x1300   :  { %10907 = vmatprep.subr.bf16.mxu0 %v10906_v15 }
0x1306   :  { %v11181_v9 = vpop.eup %11180 }
0x1307   :  { %v11183_v11 = vpop.eup %11182  ;;  %v4580_v51 = vmul.f32 %v11181_v9, %v11173_v50  ;;  %v9181_v50 = vld [vmem:[%s12743_s4 + $0x310] sm:$0xff] }
0x1308   :  { %v4579_v13 = vmul.f32 %v11183_v11, %v11175_v53  ;;  %v9182_v53 = vld [vmem:[%s12743_s4 + $0x318] sm:$0xff] }
0x1309   :  { %10267 = vmatmul.mubr.msk.f32.vlgmr.msra.gmra.mrb[54].mxu1 %vm858_vm3, %v4580_v51  ;;  %v10918_v56 = vpack.c.bf16 %v9182_v53, %v9181_v50 }
0x130a   :  { %10262 = vmatmul.mubr.msk.f32.vlgmr.msra.gmra.mrb[54].mxu0 %vm858_vm3, %v4579_v13 }
0x130b   :  { %10909 = vmatpush3.bf16.msra.mxu0 %v10906_v15 }
0x130c   :  { %10911 = vmatprep.subr.bf16.mxu0 %v10910_v16 }
0x13ce   :  { %v4723_v17 = vpop.f32.mrb[52].mxu1 }
0x13cf   :  { %v4650_v18 = vpop.f32.mrb[52].mxu0  ;;  %v10258_v19 = vpop.f32.mrb[53].mxu1 }
0x13d0   :  { %v10253_v20 = vpop.f32.mrb[53].mxu0 }
0x13dc   :  { %v4869_v21 = vpop.f32.mrb[54].mxu1 }
0x13dd   :  { %v4796_v14 = vpop.f32.mrb[54].mxu0  ;;  %v10268_v1 = vpop.f32.mrb[55].mxu1 }
0x13de   :  { %v10263_v10 = vpop.f32.mrb[55].mxu0  ;;  %10273 = vmatprep.mubr.msk.f32.mxu0 %vm553_vm2, %v4796_v14  ;;  %v12249_v1 = vld [vmem:[%s12742_s3 + $0x18] sm:$0xff] }
0x13df   :  { %10274 = vmatmul.mubr.msk.f32.vlgmr.msra.gmra.mrb[56].mxu0 %vm553_vm2, %v4869_v21 }
0x13e0   :  { %10913 = vmatpush3.bf16.msra.mxu0 %v10910_v16  ;;  %10280 = vmatprep.mubr.msk.f32.mxu0 %vm553_vm2, %v4650_v18 }
0x13e1   :  { %10923 = vmatprep.subr.bf16.mxu0 %v10922_v55 }
0x13e7   :  { %10281 = vmatmul.mubr.msk.f32.vlgmr.msra.gmra.mrb[56].mxu0 %vm553_vm2, %v4723_v17  ;;  %v12241_v17 = vld [vmem:[%s12742_s3 + $0x8] sm:$0xff] }
0x13e8   :  { %10925 = vmatpush3.bf16.msra.mxu0 %v10922_v55 }
0x13e9   :  { %10927 = vmatprep.subr.bf16.mxu0 %v10926_v58 }
0x13ec   :  { %10929 = vmatpush3.bf16.msra.mxu0 %v10926_v58 }
0x13ed   :  { %10315 = vmatprep.subr.mxu0 %v11278_v52 }
0x14ba   :  { %v10282_v0 = vpop.f32.mrb[56].mxu0 }
0x14bb   :  { %v12152_v22 = vadd.f32 %v10282_v0, %v11780_v36  ;;  %v5032_v23 = vpop.f32.mrb[57].mxu0  ;;  %v9179_v36 = vld [vmem:[%s12743_s4 + $0x300] sm:$0xff] }
0x14bc   :  { %v12155_v24 = vadd.f32 %v5032_v23, %v11785_v39  ;;  %v9180_v39 = vld [vmem:[%s12743_s4 + $0x308] sm:$0xff] }
0x14bd   :  { %v5044_v25 = vmul.f32 %v12152_v22, %v12152_v22  ;;  %v10914_v46 = vpack.c.bf16 %v9180_v39, %v9179_v36 }
0x14be   :  { %v5043_v26 = vmul.f32 %v12155_v24, %v12155_v24 }
0x14bf   :  { %v5048_v27 = vsel %vm52_vm0, %v5044_v25, 0.0  ;;  %10915 = vmatprep.subr.bf16.mxu1 %v10914_v46 }
0x14c0   :  { %5049 = vadd.xlane.f32.xlu1 %v5048_v27  ;;  %v5045_v28 = vsel %vm52_vm0, %v5043_v26, 0.0  ;;  %10917 = vmatpush3.bf16.msra.mxu1 %v10914_v46 }
0x14c1   :  { %5046 = vadd.xlane.f32.xlu0 %v5045_v28  ;;  %10919 = vmatprep.subr.bf16.mxu1 %v10918_v56 }
0x14c4   :  { %10921 = vmatpush3.bf16.msra.mxu1 %v10918_v56 }
0x14c5   :  { %10305 = vmatprep.subr.mxu1 %v11278_v52 }
0x154d   :  { %v5050_v2 = vpop.xlane.xlu1 %5049 }
0x154e   :  { %v5052_v4 = vmul.f32 0.03125, %v5050_v2  ;;  %v5047_v6 = vpop.xlane.xlu0 %5046 }
0x154f   :  { %v5051_v7 = vmul.f32 0.03125, %v5047_v6 }
0x1550   :  { %v5054_v8 = vadd.f32 1e-06, %v5052_v4 }
0x1551   :  { %v5053_v9 = vadd.f32 1e-06, %v5051_v7 }
0x1552   :  { %11184 = vrsqrt.f32 %v5054_v8 }
0x1553   :  { %11186 = vrsqrt.f32 %v5053_v9 }
0x155c   :  { %v11185_v11 = vpop.eup %11184 }
0x155d   :  { %v11187_v51 = vpop.eup %11186  ;;  %v5058_v60 = vmul.f32 %v11185_v11, %v12152_v22 }
0x155e   :  { %v5057_v13 = vmul.f32 %v11187_v51, %v12155_v24 }
0x1560   :  { %10291 = vmatprep.mubr.msk.f32.mxu1 %vm52_vm0, %v5057_v13  ;;  %10302 = vmatprep.mubr.msk.f32.mxu0 %vm52_vm0, %v5057_v13 }
0x1561   :  { %10292 = vmatmul.mubr.msk.f32.vlgmr.msra.gmra.mrb[56].mxu1 %vm52_vm0, %v5058_v60  ;;  %10303 = vmatmul.mubr.msk.f32.vlgmr.msra.gmra.mrb[58].mxu0 %vm52_vm0, %v5058_v60 }
0x1562   :  { %10306 = vmatpush3.xpose.msk.msra.mxu1 %vm553_vm2, %v12039_v31  ;;  %10316 = vmatpush3.xpose.msk.msra.mxu0 %vm553_vm2, %v12047_v35 }
0x1563   :  { %10307 = vmatprep.mubr.msk.f32.mxu1 %vm11279_vm1, %v11278_v52  ;;  %10310 = vmatprep.subr.mxu1 %v11278_v52 }
0x1564   :  { %10317 = vmatprep.mubr.msk.f32.mxu0 %vm11279_vm1, %v11278_v52  ;;  %10325 = vmatprep.subr.mxu0 %v11278_v52 }
0x1634   :  { %v10293_v61 = vpop.f32.mrb[56].mxu1  ;;  %v10304_v15 = vpop.f32.mrb[58].mxu0 }
0x1635   :  { %v5136_v5 = vpop.f32.mrb[57].mxu1  ;;  %v5216_v3 = vpop.f32.mrb[59].mxu0 }
0x1636   :  { %10308 = vmatmul.mubr.msk.f32.vlgmr.msra.gmra.mrb[58].mxu1 %vm553_vm2, %v5136_v5  ;;  %10318 = vmatmul.mubr.msk.f32.vlgmr.msra.gmra.mrb[60].mxu0 %vm553_vm2, %v5216_v3 }
0x1637   :  { %10311 = vmatpush3.xpose.msk.msra.mxu1 %vm553_vm2, %v12035_v29  ;;  %10326 = vmatpush3.msra.mxu0 %v12049_v37  ;;  %v12230_v29 = vld [vmem:[%s12742_s3] sm:$0xff] }
0x1638   :  { %10312 = vmatprep.mubr.msk.f32.mxu1 %vm11279_vm1, %v11278_v52  ;;  %10320 = vmatprep.subr.mxu1 %v11278_v52 }
0x1639   :  { %10327 = vmatprep.mubr.msk.f32.mxu0 %vm11279_vm1, %v11278_v52  ;;  %10335 = vmatprep.subr.mxu0 %v11278_v52 }
0x163a   :  { %10313 = vmatmul.mubr.msk.f32.vlgmr.msra.gmra.mrb[60].mxu1 %vm553_vm2, %v10293_v61 }
0x163b   :  { %10321 = vmatpush3.xpose.msk.msra.mxu1 %vm553_vm2, %v12043_v33  ;;  %10322 = vmatprep.mubr.msk.f32.mxu1 %vm11279_vm1, %v11278_v52  ;;  %v12235_v33 = vld [vmem:[%s12742_s3 + $0x10] sm:$0xff] }
0x163c   :  { %10330 = vmatprep.subr.mxu1 %v11278_v52 }
0x163e   :  { %10323 = vmatmul.mubr.msk.f32.vlgmr.msra.gmra.mrb[62].mxu1 %vm553_vm2, %v10304_v15 }
0x163f   :  { %10331 = vmatpush3.msra.mxu1 %v12045_v34  ;;  %10332 = vmatprep.mubr.msk.f32.mxu1 %vm11279_vm1, %v11278_v52 }
0x1640   :  { %10340 = vmatprep.subr.mxu1 %v11278_v52 }
0x1709   :  { %v5297_v31 = vpop.f32.mrb[58].mxu1  ;;  %v5449_v35 = vpop.f32.mrb[60].mxu0 }
0x170a   :  { %v5298_v37 = vadd.f32 %v5297_v31, %v12230_v29  ;;  %v10309_v34 = vpop.f32.mrb[59].mxu1  ;;  %v10319_v16 = vpop.f32.mrb[61].mxu0  ;;  %v5450_v18 = vadd.f32 %v5449_v35, %v12235_v33 }
0x170c   :  { %v5529_v19 = vsel %vm858_vm3, %v5298_v37, -inf  ;;  %v5535_v10 = vsel %vm858_vm3, %v5450_v18, -inf }
0x170d   :  { %5530 = vmax.xlane.f32.xlu0 %v5529_v19  ;;  %v5373_v20 = vpop.f32.mrb[60].mxu1 }
0x170e   :  { %v5374_v21 = vadd.f32 %v5373_v20, %v12241_v17  ;;  %v10314_v14 = vpop.f32.mrb[61].mxu1  ;;  %v9204_v20 = vld [vmem:[%s12744_s5 + $0x88] sm:$0xff] }
0x1710   :  { %v5532_v0 = vsel %vm858_vm3, %v5374_v21, -inf }
0x1711   :  { %5536 = vmax.xlane.f32.xlu0 %v5535_v10  ;;  %5533 = vmax.xlane.f32.xlu1 %v5532_v0  ;;  %v5525_v23 = vpop.f32.mrb[62].mxu1 }
0x1712   :  { %v5526_v25 = vadd.f32 %v5525_v23, %v12249_v1  ;;  %v10324_v26 = vpop.f32.mrb[63].mxu1 }
0x1714   :  { %v5538_v27 = vsel %vm858_vm3, %v5526_v25, -inf }
0x1715   :  { %5539 = vmax.xlane.f32.xlu1 %v5538_v27 }
0x179a   :  { %v5531_v28 = vpop.xlane.xlu0 %5530 }
0x179b   :  { %v5541_v36 = vsub.f32 %v5298_v37, %v5531_v28 }
0x179d   :  { %v5545_v39 = vmul.f32 1.442695, %v5541_v36 }
0x179e   :  { %v5537_v45 = vpop.xlane.xlu0 %5536  ;;  %v5534_v46 = vpop.xlane.xlu1 %5533 }
0x179f   :  { %11188 = vpow2.f32 %v5545_v39  ;;  %v5543_v49 = vsub.f32 %v5450_v18, %v5537_v45  ;;  %v5542_v50 = vsub.f32 %v5374_v21, %v5534_v46  ;;  %v9206_v18 = vld [vmem:[%s12744_s5 + $0x98] sm:$0xff] }
0x17a1   :  { %v5549_v53 = vmul.f32 1.442695, %v5543_v49  ;;  %v5547_v55 = vmul.f32 1.442695, %v5542_v50 }
0x17a2   :  { %v5540_v56 = vpop.xlane.xlu1 %5539 }
0x17a3   :  { %11190 = vpow2.f32 %v5549_v53  ;;  %v5544_v57 = vsub.f32 %v5526_v25, %v5540_v56  ;;  %v9211_v56 = vld [vmem:[%s12745_s6 + $0x40] sm:$0xff] }
0x17a4   :  { %11192 = vpow2.f32 %v5547_v55 }
0x17a5   :  { %v5551_v59 = vmul.f32 1.442695, %v5544_v57  ;;  %v9212_v57 = vld [vmem:[%s12745_s6 + $0x48] sm:$0xff] }
0x17a7   :  { %11194 = vpow2.f32 %v5551_v59  ;;  %v9214_v59 = vld [vmem:[%s12745_s6 + $0x58] sm:$0xff] }
0x17a9   :  { %v11189_v58 = vpop.eup %11188 }
0x17aa   :  { %v5553_v2 = vsel %vm858_vm3, %v11189_v58, 0.0 }
0x17ab   :  { %5554 = vadd.xlane.f32.xlu0 %v5553_v2  ;;  %v9217_v2 = vld [vmem:[%s12746_s7 + $0x80] sm:$0xff] }
0x17ad   :  { %v11191_v4 = vpop.eup %11190 }
0x17ae   :  { %v11193_v6 = vpop.eup %11192  ;;  %v5559_v7 = vsel %vm858_vm3, %v11191_v4, 0.0 }
0x17af   :  { %5560 = vadd.xlane.f32.xlu0 %v5559_v7  ;;  %v5556_v8 = vsel %vm858_vm3, %v11193_v6, 0.0 }
0x17b0   :  { %5557 = vadd.xlane.f32.xlu1 %v5556_v8  ;;  %v9220_v8 = vld [vmem:[%s12746_s7 + $0x98] sm:$0xff] }
0x17b1   :  { %v11195_v9 = vpop.eup %11194 }
0x17b2   :  { %v5562_v11 = vsel %vm858_vm3, %v11195_v9, 0.0 }
0x17b4   :  { %5563 = vadd.xlane.f32.xlu1 %v5562_v11  ;;  %v9221_v11 = vld [vmem:[%s12746_s7 + $0xa0] sm:$0xff] }
0x1838   :  { %v5555_v51 = vpop.xlane.xlu0 %5554 }
0x1839   :  { %11196 = vrcp.f32 %v5555_v51  ;;  %v9222_v51 = vld [vmem:[%s12746_s7 + $0xa8] sm:$0xff] }
0x183c   :  { %v5561_v13 = vpop.xlane.xlu0 %5560 }
0x183d   :  { %11198 = vrcp.f32 %v5561_v13  ;;  %v5558_v60 = vpop.xlane.xlu1 %5557  ;;  %v10954_v13 = vpack.c.bf16 %v9222_v51, %v9221_v11 }
0x183e   :  { %11200 = vrcp.f32 %v5558_v60 }
0x1841   :  { %v5564_v61 = vpop.xlane.xlu1 %5563 }
0x1842   :  { %11202 = vrcp.f32 %v5564_v61 }
0x1843   :  { %v11197_v15 = vpop.eup %11196 }
0x1844   :  { %v5569_v5 = vmul.f32 %v11197_v15, %v11189_v58 }
0x1846   :  { %10328 = vmatmul.mubr.msk.f32.vlgmr.msra.gmra.mrb[62].mxu0 %vm858_vm3, %v5569_v5 }
0x1847   :  { %v11199_v3 = vpop.eup %11198  ;;  %10336 = vmatpush3.msra.mxu0 %v12061_v44  ;;  %10337 = vmatprep.mubr.msk.f32.mxu0 %vm11279_vm1, %v11278_v52  ;;  %v9205_v44 = vld [vmem:[%s12744_s5 + $0x90] sm:$0xff] }
0x1848   :  { %v11201_v31 = vpop.eup %11200  ;;  %v5571_v35 = vmul.f32 %v11199_v3, %v11191_v4  ;;  %v10930_v19 = vpack.c.bf16 %v9206_v18, %v9205_v44  ;;  %v9218_v4 = vld [vmem:[%s12746_s7 + $0x88] sm:$0xff]  ;;  %v9223_v44 = vld [vmem:[%s12746_s7 + $0xb0] sm:$0xff]  ;;  %v9224_v18 = vld [vmem:[%s12746_s7 + $0xb8] sm:$0xff] }
0x1849   :  { %v5570_v37 = vmul.f32 %v11201_v31, %v11193_v6  ;;  %v9219_v6 = vld [vmem:[%s12746_s7 + $0x90] sm:$0xff]  ;;  %v10946_v7 = vpack.c.bf16 %v9218_v4, %v9217_v2  ;;  %v9234_v2 = vld [vmem:[%s12743_s4 + $0x268] sm:$0xff]  ;;  %v9251_v4 = vld [vmem:[%s12743_s4 + $0x2c0] sm:$0xff] }
0x184a   :  { %10338 = vmatmul.mubr.msk.f32.vlgmr.msra.gmra.mrb[64].mxu0 %vm858_vm3, %v5571_v35  ;;  %10931 = vmatprep.subr.bf16.mxu0 %v10930_v19 }
0x184b   :  { %10333 = vmatmul.mubr.msk.f32.vlgmr.msra.gmra.mrb[64].mxu1 %vm858_vm3, %v5570_v37  ;;  %10933 = vmatpush3.bf16.msra.mxu0 %v10930_v19  ;;  %v10958_v19 = vpack.c.bf16 %v9224_v18, %v9223_v44 }
0x184c   :  { %v11203_v34 = vpop.eup %11202  ;;  %10341 = vmatpush3.msra.mxu1 %v12059_v43  ;;  %10342 = vmatprep.mubr.msk.f32.mxu1 %vm11279_vm1, %v11278_v52  ;;  %v9203_v43 = vld [vmem:[%s12744_s5 + $0x80] sm:$0xff] }
0x184d   :  { %v5572_v16 = vmul.f32 %v11203_v34, %v11195_v9  ;;  %v10934_v21 = vpack.c.bf16 %v9204_v20, %v9203_v43  ;;  %v10950_v9 = vpack.c.bf16 %v9220_v8, %v9219_v6 }
0x184f   :  { %10343 = vmatmul.mubr.msk.f32.vlgmr.msra.gmra.mrb[66].mxu1 %vm858_vm3, %v5572_v16  ;;  %10935 = vmatprep.subr.bf16.mxu0 %v10934_v21 }
0x1919   :  { %v5642_v14 = vpop.f32.mrb[62].mxu0 }
0x191a   :  { %v10329_v10 = vpop.f32.mrb[63].mxu0 }
0x191d   :  { %v5788_v0 = vpop.f32.mrb[64].mxu0 }
0x191e   :  { %v5715_v23 = vpop.f32.mrb[64].mxu1  ;;  %v10339_v25 = vpop.f32.mrb[65].mxu0  ;;  %10349 = vmatprep.mubr.msk.f32.mxu0 %vm553_vm2, %v5788_v0 }
0x191f   :  { %v10334_v26 = vpop.f32.mrb[65].mxu1 }
0x1922   :  { %v5861_v27 = vpop.f32.mrb[66].mxu1 }
0x1923   :  { %v10344_v28 = vpop.f32.mrb[67].mxu1  ;;  %10350 = vmatmul.mubr.msk.f32.vlgmr.msra.gmra.mrb[66].mxu0 %vm553_vm2, %v5861_v27 }
0x1924   :  { %10937 = vmatpush3.bf16.msra.mxu0 %v10934_v21  ;;  %10356 = vmatprep.mubr.msk.f32.mxu0 %vm553_vm2, %v5642_v14 }
0x1925   :  { %10947 = vmatprep.subr.bf16.mxu0 %v10946_v7 }
0x192b   :  { %10357 = vmatmul.mubr.msk.f32.vlgmr.msra.gmra.mrb[66].mxu0 %vm553_vm2, %v5715_v23 }
0x192c   :  { %10949 = vmatpush3.bf16.msra.mxu0 %v10946_v7  ;;  %v9252_v7 = vld [vmem:[%s12743_s4 + $0x2c8] sm:$0xff] }
0x192d   :  { %10951 = vmatprep.subr.bf16.mxu0 %v10950_v9  ;;  %v10994_v8 = vpack.c.bf16 %v9252_v7, %v9251_v4 }
0x1930   :  { %10953 = vmatpush3.bf16.msra.mxu0 %v10950_v9 }
0x1931   :  { %10955 = vmatprep.subr.bf16.mxu0 %v10954_v13 }
0x1934   :  { %10957 = vmatpush3.bf16.msra.mxu0 %v10954_v13 }
0x1935   :  { %10959 = vmatprep.subr.bf16.mxu0 %v10958_v19 }
0x1938   :  { %10961 = vmatpush3.bf16.msra.mxu0 %v10958_v19  ;;  %v9245_v19 = vld [vmem:[%s12743_s4 + $0x2a0] sm:$0xff] }
0x19fe   :  { %v10358_v36 = vpop.f32.mrb[66].mxu0 }
0x19ff   :  { %v6034_v39 = vadd.f32 %v10358_v36, %v12152_v22  ;;  %v6024_v45 = vpop.f32.mrb[67].mxu0  ;;  %v9213_v22 = vld [vmem:[%s12745_s6 + $0x50] sm:$0xff] }
0x1a00   :  { %v6033_v46 = vadd.f32 %v6024_v45, %v12155_v24  ;;  %v10938_v24 = vpack.c.bf16 %v9212_v57, %v9211_v56  ;;  %v10942_v58 = vpack.c.bf16 %v9214_v59, %v9213_v22  ;;  %v9228_v45 = vld [vmem:[%s12743_s4 + $0x248] sm:$0xff]  ;;  %v9230_v56 = vld [vmem:[%s12743_s4 + $0x258] sm:$0xff]  ;;  %v9241_v57 = vld [vmem:[%s12743_s4 + $0x290] sm:$0xff] }
0x1a01   :  { %v6036_v49 = vmul.f32 %v6034_v39, %v6034_v39 }
0x1a02   :  { %v6035_v50 = vmul.f32 %v6033_v46, %v6033_v46  ;;  %10939 = vmatprep.subr.bf16.mxu1 %v10938_v24 }
0x1a03   :  { %v6040_v53 = vsel %vm52_vm0, %v6036_v49, 0.0  ;;  %10941 = vmatpush3.bf16.msra.mxu1 %v10938_v24  ;;  %v9242_v24 = vld [vmem:[%s12743_s4 + $0x298] sm:$0xff] }
0x1a04   :  { %6041 = vadd.xlane.f32.xlu1 %v6040_v53  ;;  %v6037_v55 = vsel %vm52_vm0, %v6035_v50, 0.0  ;;  %10943 = vmatprep.subr.bf16.mxu1 %v10942_v58  ;;  %v9240_v50 = vld [vmem:[%s12743_s4 + $0x288] sm:$0xff]  ;;  %v10982_v59 = vpack.c.bf16 %v9242_v24, %v9241_v57 }
0x1a05   :  { %6038 = vadd.xlane.f32.xlu0 %v6037_v55  ;;  %v9229_v55 = vld [vmem:[%s12743_s4 + $0x250] sm:$0xff] }
0x1a06   :  { %v10966_v22 = vpack.c.bf16 %v9230_v56, %v9229_v55 }
0x1a07   :  { %10945 = vmatpush3.bf16.msra.mxu1 %v10942_v58  ;;  %v9233_v58 = vld [vmem:[%s12743_s4 + $0x260] sm:$0xff] }
0x1a08   :  { %v10970_v6 = vpack.c.bf16 %v9234_v2, %v9233_v58 }
0x1a91   :  { %v6042_v60 = vpop.xlane.xlu1 %6041 }
0x1a92   :  { %v6044_v61 = vmul.f32 0.03125, %v6042_v60  ;;  %v6039_v15 = vpop.xlane.xlu0 %6038 }
0x1a93   :  { %v6043_v5 = vmul.f32 0.03125, %v6039_v15 }
0x1a94   :  { %v6046_v3 = vadd.f32 1e-06, %v6044_v61 }
0x1a95   :  { %v6045_v31 = vadd.f32 1e-06, %v6043_v5  ;;  %v9235_v5 = vld [vmem:[%s12743_s4 + $0x270] sm:$0xff] }
0x1a96   :  { %11204 = vrsqrt.f32 %v6046_v3 }
0x1a97   :  { %11206 = vrsqrt.f32 %v6045_v31  ;;  %v9236_v31 = vld [vmem:[%s12743_s4 + $0x278] sm:$0xff] }
0x1a98   :  { %v10974_v44 = vpack.c.bf16 %v9236_v31, %v9235_v5 }
0x1aa0   :  { %v11205_v35 = vpop.eup %11204 }
0x1aa1   :  { %v11207_v37 = vpop.eup %11206  ;;  %v6050_v16 = vmul.f32 %v11205_v35, %v6034_v39  ;;  %v9253_v35 = vld [vmem:[%s12743_s4 + $0x2d0] sm:$0xff] }
0x1aa2   :  { %v6049_v34 = vmul.f32 %v11207_v37, %v6033_v46  ;;  %v9254_v37 = vld [vmem:[%s12743_s4 + $0x2d8] sm:$0xff] }
0x1aa3   :  { %v10998_v18 = vpack.c.bf16 %v9254_v37, %v9253_v35 }
0x1aa4   :  { %10367 = vmatprep.mubr.msk.f32.mxu1 %vm52_vm0, %v6049_v34 }
0x1aa5   :  { %10368 = vmatmul.mubr.msk.f32.vlgmr.msra.gmra.mrb[68].mxu1 %vm52_vm0, %v6050_v16 }
0x1b78   :  { %v10369_v43 = vpop.f32.mrb[68].mxu1 }
0x1b79   :  { %v6128_v20 = vpop.f32.mrb[69].mxu1  ;;  %v6138_v14 = vmax.f32 %v10369_v43, 0.0  ;;  %v9246_v43 = vld [vmem:[%s12743_s4 + $0x2a8] sm:$0xff] }
0x1b7a   :  { %v6137_v21 = vmax.f32 %v6128_v20, 0.0  ;;  %v10986_v20 = vpack.c.bf16 %v9246_v43, %v9245_v19 }
0x1b7c   :  { %10386 = vmatprep.mubr.msk.f32.mxu0 %vm1475_vm4, %v6137_v21  ;;  %v9247_v21 = vld [vmem:[%s12743_s4 + $0x2b0] sm:$0xff] }
0x1b7d   :  { %10387 = vmatmul.mubr.msk.f32.vlgmr.msra.gmra.mrb[68].mxu0 %vm1475_vm4, %v6138_v14  ;;  %v9248_v14 = vld [vmem:[%s12743_s4 + $0x2b8] sm:$0xff] }
0x1c50   :  { %v10388_v10 = vpop.f32.mrb[68].mxu0 }
0x1c51   :  { %v12329_v0 = vadd.f32 %v10388_v10, %v6034_v39  ;;  %v6220_v23 = vpop.f32.mrb[69].mxu0  ;;  %v9227_v39 = vld [vmem:[%s12743_s4 + $0x240] sm:$0xff]  ;;  %v10990_v10 = vpack.c.bf16 %v9248_v14, %v9247_v21 }
0x1c52   :  { %v12331_v25 = vadd.f32 %v6220_v23, %v6033_v46  ;;  %v9239_v46 = vld [vmem:[%s12743_s4 + $0x280] sm:$0xff]  ;;  %v10962_v49 = vpack.c.bf16 %v9228_v45, %v9227_v39 }
0x1c53   :  { %v6232_v26 = vmul.f32 %v12329_v0, %v12329_v0  ;;  %v10978_v53 = vpack.c.bf16 %v9240_v50, %v9239_v46  ;;  %v9257_v23 = vld [vmem:[%s12743_s4 + $0x2e0] sm:$0xff] }
0x1c54   :  { %v6231_v27 = vmul.f32 %v12331_v25, %v12331_v25  ;;  %10963 = vmatprep.subr.bf16.mxu1 %v10962_v49 }
0x1c55   :  { %v6236_v28 = vsel %vm52_vm0, %v6232_v26, 0.0  ;;  %10979 = vmatprep.subr.bf16.mxu0 %v10978_v53  ;;  %10965 = vmatpush3.bf16.msra.mxu1 %v10962_v49  ;;  %v9258_v26 = vld [vmem:[%s12743_s4 + $0x2e8] sm:$0xff] }
0x1c56   :  { %6237 = vadd.xlane.f32.xlu1 %v6236_v28  ;;  %v6233_v36 = vsel %vm52_vm0, %v6231_v27, 0.0  ;;  %10981 = vmatpush3.bf16.msra.mxu0 %v10978_v53  ;;  %v11002_v27 = vpack.c.bf16 %v9258_v26, %v9257_v23  ;;  %v9259_v28 = vld [vmem:[%s12743_s4 + $0x2f0] sm:$0xff] }
0x1c57   :  { %6234 = vadd.xlane.f32.xlu0 %v6233_v36  ;;  %10967 = vmatprep.subr.bf16.mxu1 %v10966_v22  ;;  %v9260_v36 = vld [vmem:[%s12743_s4 + $0x2f8] sm:$0xff] }
0x1c58   :  { %10983 = vmatprep.subr.bf16.mxu0 %v10982_v59  ;;  %v11006_v39 = vpack.c.bf16 %v9260_v36, %v9259_v28 }
0x1c59   :  { %10969 = vmatpush3.bf16.msra.mxu1 %v10966_v22 }
0x1c5a   :  { %10985 = vmatpush3.bf16.msra.mxu0 %v10982_v59  ;;  %10971 = vmatprep.subr.bf16.mxu1 %v10970_v6 }
0x1c5b   :  { %10995 = vmatprep.subr.bf16.mxu0 %v10994_v8 }
0x1ce3   :  { %v6238_v9 = vpop.xlane.xlu1 %6237 }
0x1ce4   :  { %v6240_v11 = vmul.f32 0.03125, %v6238_v9  ;;  %v6235_v51 = vpop.xlane.xlu0 %6234 }
0x1ce5   :  { %v6239_v13 = vmul.f32 0.03125, %v6235_v51 }
0x1ce6   :  { %v6242_v60 = vadd.f32 1e-06, %v6240_v11 }
0x1ce7   :  { %v6241_v61 = vadd.f32 1e-06, %v6239_v13 }
0x1ce8   :  { %11208 = vrsqrt.f32 %v6242_v60 }
0x1ce9   :  { %11210 = vrsqrt.f32 %v6241_v61 }
0x1cf2   :  { %v11209_v15 = vpop.eup %11208 }
0x1cf3   :  { %v11211_v3 = vpop.eup %11210  ;;  %v6246_v16 = vmul.f32 %v11209_v15, %v12329_v0 }
0x1cf4   :  { %v6245_v34 = vmul.f32 %v11211_v3, %v12331_v25 }
0x1cf6   :  { %10397 = vmatprep.mubr.msk.f32.mxu1 %vm52_vm0, %v6245_v34  ;;  %10419 = vmatprep.mubr.msk.f32.mxu0 %vm52_vm0, %v6245_v34 }
0x1cf7   :  { %10398 = vmatmul.mubr.msk.f32.vlgmr.msra.gmra.mrb[70].mxu1 %vm52_vm0, %v6246_v16  ;;  %10420 = vmatmul.mubr.msk.f32.vlgmr.msra.gmra.mrb[70].mxu0 %vm52_vm0, %v6246_v16 }
0x1cf8   :  { %10973 = vmatpush3.bf16.msra.mxu1 %v10970_v6  ;;  %10997 = vmatpush3.bf16.msra.mxu0 %v10994_v8 }
0x1cf9   :  { %10408 = vmatprep.mubr.msk.f32.mxu1 %vm52_vm0, %v6245_v34  ;;  %10441 = vmatprep.mubr.msk.f32.mxu0 %vm52_vm0, %v6245_v34 }
0x1cfa   :  { %10975 = vmatprep.subr.bf16.mxu1 %v10974_v44  ;;  %10999 = vmatprep.subr.bf16.mxu0 %v10998_v18 }
0x1cfc   :  { %10977 = vmatpush3.bf16.msra.mxu1 %v10974_v44  ;;  %11001 = vmatpush3.bf16.msra.mxu0 %v10998_v18 }
0x1cfd   :  { %10987 = vmatprep.subr.bf16.mxu1 %v10986_v20  ;;  %10455 = vmatprep.subr.mxu0 %v11278_v52 }
0x1cff   :  { %10409 = vmatmul.mubr.msk.f32.vlgmr.msra.gmra.mrb[72].mxu1 %vm52_vm0, %v6246_v16  ;;  %10442 = vmatmul.mubr.msk.f32.vlgmr.msra.gmra.mrb[72].mxu0 %vm52_vm0, %v6246_v16 }
0x1d00   :  { %10989 = vmatpush3.bf16.msra.mxu1 %v10986_v20  ;;  %10430 = vmatprep.mubr.msk.f32.mxu1 %vm52_vm0, %v6245_v34 }
0x1d01   :  { %10991 = vmatprep.subr.bf16.mxu1 %v10990_v10  ;;  %10457 = vmatprep.mubr.msk.f32.mxu0 %vm11279_vm1, %v11278_v52 }
0x1d04   :  { %10993 = vmatpush3.bf16.msra.mxu1 %v10990_v10 }
0x1d05   :  { %11003 = vmatprep.subr.bf16.mxu1 %v11002_v27 }
0x1d07   :  { %10431 = vmatmul.mubr.msk.f32.vlgmr.msra.gmra.mrb[74].mxu1 %vm52_vm0, %v6246_v16 }
0x1d08   :  { %11005 = vmatpush3.bf16.msra.mxu1 %v11002_v27  ;;  %10452 = vmatprep.mubr.msk.f32.mxu1 %vm52_vm0, %v6245_v34 }
0x1d09   :  { %11007 = vmatprep.subr.bf16.mxu1 %v11006_v39 }
0x1d0c   :  { %11009 = vmatpush3.bf16.msra.mxu1 %v11006_v39 }
0x1d0d   :  { %10460 = vmatprep.subr.mxu1 %v11278_v52 }
0x1d0f   :  { %10453 = vmatmul.mubr.msk.f32.vlgmr.msra.gmra.mrb[76].mxu1 %vm52_vm0, %v6246_v16 }
0x1d10   :  { %10462 = vmatprep.mubr.msk.f32.mxu1 %vm11279_vm1, %v11278_v52 }
0x1dca   :  { %v10399_v45 = vpop.f32.mrb[70].mxu1  ;;  %v10421_v46 = vpop.f32.mrb[70].mxu0 }
0x1dcb   :  { %v6324_v49 = vpop.f32.mrb[71].mxu1  ;;  %v6484_v50 = vpop.f32.mrb[71].mxu0  ;;  %10461 = vmatpush3.xpose.msk.msra.mxu1 %vm553_vm2, %v10421_v46 }
0x1dcc   :  { %10456 = vmatpush3.xpose.msk.msra.mxu0 %vm553_vm2, %v6484_v50  ;;  %10470 = vmatprep.subr.mxu1 %v11278_v52 }
0x1dcd   :  { %10465 = vmatprep.subr.mxu0 %v11278_v52 }
0x1dce   :  { %10463 = vmatmul.mubr.msk.f32.vlgmr.msra.gmra.mrb[78].mxu1 %vm553_vm2, %v10399_v45 }
0x1dcf   :  { %10458 = vmatmul.mubr.msk.f32.vlgmr.msra.gmra.mrb[74].mxu0 %vm553_vm2, %v6324_v49  ;;  %10472 = vmatprep.mubr.msk.f32.mxu1 %vm11279_vm1, %v11278_v52 }
0x1dd0   :  { %10467 = vmatprep.mubr.msk.f32.mxu0 %vm11279_vm1, %v11278_v52 }
0x1dd2   :  { %v10410_v53 = vpop.f32.mrb[72].mxu1  ;;  %v10443_v55 = vpop.f32.mrb[72].mxu0 }
0x1dd3   :  { %v6404_v56 = vpop.f32.mrb[73].mxu1  ;;  %v6644_v57 = vpop.f32.mrb[73].mxu0 }
0x1dda   :  { %v10432_v22 = vpop.f32.mrb[74].mxu1 }
0x1ddb   :  { %v6564_v24 = vpop.f32.mrb[75].mxu1  ;;  %10471 = vmatpush3.xpose.msk.msra.mxu1 %vm553_vm2, %v10432_v22 }
0x1ddc   :  { %10466 = vmatpush3.xpose.msk.msra.mxu0 %vm553_vm2, %v6564_v24  ;;  %10480 = vmatprep.subr.mxu1 %v11278_v52 }
0x1ddd   :  { %10475 = vmatprep.subr.mxu0 %v11278_v52 }
0x1dde   :  { %10473 = vmatmul.mubr.msk.f32.vlgmr.msra.gmra.mrb[80].mxu1 %vm553_vm2, %v10410_v53 }
0x1ddf   :  { %10468 = vmatmul.mubr.msk.f32.vlgmr.msra.gmra.mrb[76].mxu0 %vm553_vm2, %v6404_v56  ;;  %10481 = vmatpush3.msra.mxu1 %v10443_v55 }
0x1de0   :  { %10476 = vmatpush3.msra.mxu0 %v6644_v57  ;;  %10482 = vmatprep.mubr.msk.f32.mxu1 %vm11279_vm1, %v11278_v52 }
0x1de1   :  { %10490 = vmatprep.subr.mxu1 %v11278_v52  ;;  %10477 = vmatprep.mubr.msk.f32.mxu0 %vm11279_vm1, %v11278_v52 }
0x1de2   :  { %v10454_v59 = vpop.f32.mrb[76].mxu1  ;;  %10485 = vmatprep.subr.mxu0 %v11278_v52 }
0x1de3   :  { %v6724_v58 = vpop.f32.mrb[77].mxu1 }
0x1ea1   :  { %v6881_v2 = vpop.f32.mrb[78].mxu1 }
0x1ea2   :  { %v6882_v4 = vadd.f32 %v6881_v2, %v12096_v62  ;;  %v6805_v6 = vpop.f32.mrb[74].mxu0  ;;  %v10464_v7 = vpop.f32.mrb[79].mxu1 }
0x1ea3   :  { %v6806_v8 = vadd.f32 %v6805_v6, %v12101_v63  ;;  %v10459_v9 = vpop.f32.mrb[75].mxu0  ;;  %v9275_v6 = vld [vmem:[%s12744_s5 + $0x60] sm:$0xff]  ;;  %v9276_v7 = vld [vmem:[%s12744_s5 + $0x68] sm:$0xff] }
0x1ea4   :  { %v7040_v11 = vsel %vm858_vm3, %v6882_v4, -inf }
0x1ea5   :  { %7041 = vmax.xlane.f32.xlu1 %v7040_v11  ;;  %v7037_v51 = vsel %vm858_vm3, %v6806_v8, -inf }
0x1ea6   :  { %7038 = vmax.xlane.f32.xlu0 %v7037_v51 }
0x1eb1   :  { %v7033_v13 = vpop.f32.mrb[80].mxu1 }
0x1eb2   :  { %v7034_v60 = vadd.f32 %v7033_v13, %v12110_v54  ;;  %v6957_v61 = vpop.f32.mrb[76].mxu0  ;;  %v10474_v15 = vpop.f32.mrb[81].mxu1 }
0x1eb3   :  { %v6958_v5 = vadd.f32 %v6957_v61, %v12115_v12  ;;  %v10469_v3 = vpop.f32.mrb[77].mxu0 }
0x1eb4   :  { %v7046_v62 = vsel %vm858_vm3, %v7034_v60, -inf }
0x1eb5   :  { %7047 = vmax.xlane.f32.xlu1 %v7046_v62  ;;  %v7043_v63 = vsel %vm858_vm3, %v6958_v5, -inf }
0x1eb6   :  { %7044 = vmax.xlane.f32.xlu0 %v7043_v63 }
0x1f32   :  { %v7042_v31 = vpop.xlane.xlu1 %7041 }
0x1f33   :  { %v7050_v35 = vsub.f32 %v6882_v4, %v7042_v31  ;;  %v7039_v37 = vpop.xlane.xlu0 %7038 }
0x1f34   :  { %v7049_v34 = vsub.f32 %v6806_v8, %v7039_v37  ;;  %v11014_v8 = vpack.c.bf16 %v9276_v7, %v9275_v6 }
0x1f35   :  { %v7055_v16 = vmul.f32 1.442695, %v7050_v35 }
0x1f36   :  { %v7053_v44 = vmul.f32 1.442695, %v7049_v34 }
0x1f37   :  { %11212 = vpow2.f32 %v7055_v16 }
0x1f38   :  { %11214 = vpow2.f32 %v7053_v44  ;;  %v9289_v44 = vld [vmem:[%s12743_s4 + $0x360] sm:$0xff] }
0x1f41   :  { %v11213_v54 = vpop.eup %11212 }
0x1f42   :  { %v11215_v18 = vpop.eup %11214  ;;  %v7048_v19 = vpop.xlane.xlu1 %7047  ;;  %v7064_v12 = vsel %vm858_vm3, %v11213_v54, 0.0 }
0x1f43   :  { %v7052_v43 = vsub.f32 %v7034_v60, %v7048_v19  ;;  %v7045_v20 = vpop.xlane.xlu0 %7044  ;;  %7065 = vadd.xlane.f32.xlu1 %v7064_v12  ;;  %v7061_v21 = vsel %vm858_vm3, %v11215_v18, 0.0  ;;  %v9285_v12 = vld [vmem:[%s12743_s4 + $0x350] sm:$0xff] }
0x1f44   :  { %v7051_v14 = vsub.f32 %v6958_v5, %v7045_v20  ;;  %7062 = vadd.xlane.f32.xlu0 %v7061_v21  ;;  %v9291_v20 = vld [vmem:[%s12743_s4 + $0x370] sm:$0xff] }
0x1f45   :  { %v7059_v10 = vmul.f32 1.442695, %v7052_v43  ;;  %v9286_v43 = vld [vmem:[%s12743_s4 + $0x358] sm:$0xff] }
0x1f46   :  { %v7057_v23 = vmul.f32 1.442695, %v7051_v14  ;;  %v11022_v21 = vpack.c.bf16 %v9286_v43, %v9285_v12  ;;  %v9292_v14 = vld [vmem:[%s12743_s4 + $0x378] sm:$0xff] }
0x1f47   :  { %11216 = vpow2.f32 %v7059_v10  ;;  %v11030_v10 = vpack.c.bf16 %v9292_v14, %v9291_v20 }
0x1f48   :  { %11218 = vpow2.f32 %v7057_v23 }
0x1f51   :  { %v11217_v26 = vpop.eup %11216 }
0x1f52   :  { %v11219_v27 = vpop.eup %11218  ;;  %v7070_v28 = vsel %vm858_vm3, %v11217_v26, 0.0 }
0x1f53   :  { %7071 = vadd.xlane.f32.xlu1 %v7070_v28  ;;  %v7067_v36 = vsel %vm858_vm3, %v11219_v27, 0.0 }
0x1f54   :  { %7068 = vadd.xlane.f32.xlu0 %v7067_v36 }
0x1fd0   :  { %v7066_v39 = vpop.xlane.xlu1 %7065 }
0x1fd1   :  { %11220 = vrcp.f32 %v7066_v39  ;;  %v7063_v45 = vpop.xlane.xlu0 %7062 }
0x1fd2   :  { %11222 = vrcp.f32 %v7063_v45 }
0x1fdb   :  { %v11221_v46 = vpop.eup %11220 }
0x1fdc   :  { %v11223_v49 = vpop.eup %11222  ;;  %v7078_v50 = vmul.f32 %v11221_v46, %v11213_v54 }
0x1fdd   :  { %v7077_v53 = vmul.f32 %v11223_v49, %v11215_v18  ;;  %v9290_v18 = vld [vmem:[%s12743_s4 + $0x368] sm:$0xff] }
0x1fde   :  { %10483 = vmatmul.mubr.msk.f32.vlgmr.msra.gmra.mrb[82].mxu1 %vm858_vm3, %v7078_v50  ;;  %v11026_v19 = vpack.c.bf16 %v9290_v18, %v9289_v44 }
0x1fdf   :  { %10491 = vmatpush3.msra.mxu1 %v10454_v59  ;;  %10478 = vmatmul.mubr.msk.f32.vlgmr.msra.gmra.mrb[78].mxu0 %vm858_vm3, %v7077_v53  ;;  %v9277_v59 = vld [vmem:[%s12744_s5 + $0x70] sm:$0xff] }
0x1fe0   :  { %10486 = vmatpush3.msra.mxu0 %v6724_v58  ;;  %v7072_v55 = vpop.xlane.xlu1 %7071  ;;  %10492 = vmatprep.mubr.msk.f32.mxu1 %vm11279_vm1, %v11278_v52  ;;  %v9278_v58 = vld [vmem:[%s12744_s5 + $0x78] sm:$0xff] }
0x1fe1   :  { %11224 = vrcp.f32 %v7072_v55  ;;  %v7069_v56 = vpop.xlane.xlu0 %7068  ;;  %10487 = vmatprep.mubr.msk.f32.mxu0 %vm11279_vm1, %v11278_v52  ;;  %v11010_v4 = vpack.c.bf16 %v9278_v58, %v9277_v59 }
0x1fe2   :  { %11226 = vrcp.f32 %v7069_v56 }
0x1fe3   :  { %11011 = vmatprep.subr.bf16.mxu0 %v11010_v4 }
0x1feb   :  { %v11225_v57 = vpop.eup %11224 }
0x1fec   :  { %v11227_v22 = vpop.eup %11226  ;;  %v7080_v24 = vmul.f32 %v11225_v57, %v11217_v26 }
0x1fed   :  { %v7079_v2 = vmul.f32 %v11227_v22, %v11219_v27 }
0x1fee   :  { %10493 = vmatmul.mubr.msk.f32.vlgmr.msra.gmra.mrb[84].mxu1 %vm858_vm3, %v7080_v24 }
0x1fef   :  { %10488 = vmatmul.mubr.msk.f32.vlgmr.msra.gmra.mrb[80].mxu0 %vm858_vm3, %v7079_v2 }
0x1ff0   :  { %11013 = vmatpush3.bf16.msra.mxu0 %v11010_v4 }
0x1ff1   :  { %11015 = vmatprep.subr.bf16.mxu0 %v11014_v8 }
0x20b1   :  { %v7223_v9 = vpop.f32.mrb[82].mxu1 }
0x20b2   :  { %v7150_v11 = vpop.f32.mrb[78].mxu0  ;;  %v10484_v51 = vpop.f32.mrb[83].mxu1 }
0x20b3   :  { %v10479_v13 = vpop.f32.mrb[79].mxu0 }
0x20c1   :  { %v7369_v60 = vpop.f32.mrb[84].mxu1 }
0x20c2   :  { %v7296_v61 = vpop.f32.mrb[80].mxu0  ;;  %v10494_v15 = vpop.f32.mrb[85].mxu1 }
0x20c3   :  { %v10489_v5 = vpop.f32.mrb[81].mxu0  ;;  %10499 = vmatprep.mubr.msk.f32.mxu0 %vm553_vm2, %v7296_v61 }
0x20c4   :  { %10500 = vmatmul.mubr.msk.f32.vlgmr.msra.gmra.mrb[82].mxu0 %vm553_vm2, %v7369_v60 }
0x20c5   :  { %11017 = vmatpush3.bf16.msra.mxu0 %v11014_v8  ;;  %10506 = vmatprep.mubr.msk.f32.mxu0 %vm553_vm2, %v7150_v11 }
0x20c6   :  { %11027 = vmatprep.subr.bf16.mxu0 %v11026_v19 }
0x20cc   :  { %10507 = vmatmul.mubr.msk.f32.vlgmr.msra.gmra.mrb[82].mxu0 %vm553_vm2, %v7223_v9 }
0x20cd   :  { %11029 = vmatpush3.bf16.msra.mxu0 %v11026_v19 }
0x20ce   :  { %11031 = vmatprep.subr.bf16.mxu0 %v11030_v10 }
0x20d1   :  { %11033 = vmatpush3.bf16.msra.mxu0 %v11030_v10 }
0x20d2   :  { %10541 = vmatprep.subr.mxu0 %v11278_v52 }
0x219f   :  { %v10508_v3 = vpop.f32.mrb[82].mxu0 }
0x21a0   :  { %v12490_v62 = vadd.f32 %v10508_v3, %v12329_v0  ;;  %v7532_v63 = vpop.f32.mrb[83].mxu0  ;;  %v9283_v0 = vld [vmem:[%s12743_s4 + $0x340] sm:$0xff] }
0x21a1   :  { %v12493_v31 = vadd.f32 %v7532_v63, %v12331_v25  ;;  %v9284_v25 = vld [vmem:[%s12743_s4 + $0x348] sm:$0xff] }
0x21a2   :  { %v7544_v35 = vmul.f32 %v12490_v62, %v12490_v62  ;;  %v11018_v54 = vpack.c.bf16 %v9284_v25, %v9283_v0 }
0x21a3   :  { %v7543_v37 = vmul.f32 %v12493_v31, %v12493_v31 }
0x21a4   :  { %v7548_v34 = vsel %vm52_vm0, %v7544_v35, 0.0  ;;  %11019 = vmatprep.subr.bf16.mxu1 %v11018_v54 }
0x21a5   :  { %7549 = vadd.xlane.f32.xlu1 %v7548_v34  ;;  %v7545_v16 = vsel %vm52_vm0, %v7543_v37, 0.0  ;;  %11021 = vmatpush3.bf16.msra.mxu1 %v11018_v54 }
0x21a6   :  { %7546 = vadd.xlane.f32.xlu0 %v7545_v16  ;;  %11023 = vmatprep.subr.bf16.mxu1 %v11022_v21 }
0x21a9   :  { %11025 = vmatpush3.bf16.msra.mxu1 %v11022_v21 }
0x21aa   :  { %10531 = vmatprep.subr.mxu1 %v11278_v52 }
0x2232   :  { %v7550_v23 = vpop.xlane.xlu1 %7549 }
0x2233   :  { %v7552_v26 = vmul.f32 0.03125, %v7550_v23  ;;  %v7547_v27 = vpop.xlane.xlu0 %7546 }
0x2234   :  { %v7551_v28 = vmul.f32 0.03125, %v7547_v27 }
0x2235   :  { %v7554_v36 = vadd.f32 1e-06, %v7552_v26 }
0x2236   :  { %v7553_v39 = vadd.f32 1e-06, %v7551_v28  ;;  %v9310_v28 = vld [vmem:[%s12744_s5 + $0xb8] sm:$0xff] }
0x2237   :  { %11228 = vrsqrt.f32 %v7554_v36 }
0x2238   :  { %11230 = vrsqrt.f32 %v7553_v39 }
0x2241   :  { %v11229_v45 = vpop.eup %11228 }
0x2242   :  { %v11231_v46 = vpop.eup %11230  ;;  %v7558_v50 = vmul.f32 %v11229_v45, %v12490_v62 }
0x2243   :  { %v7557_v49 = vmul.f32 %v11231_v46, %v12493_v31 }
0x2245   :  { %10517 = vmatprep.mubr.msk.f32.mxu1 %vm52_vm0, %v7557_v49  ;;  %10528 = vmatprep.mubr.msk.f32.mxu0 %vm52_vm0, %v7557_v49 }
0x2246   :  { %10518 = vmatmul.mubr.msk.f32.vlgmr.msra.gmra.mrb[86].mxu1 %vm52_vm0, %v7558_v50  ;;  %10529 = vmatmul.mubr.msk.f32.vlgmr.msra.gmra.mrb[84].mxu0 %vm52_vm0, %v7558_v50 }
0x2247   :  { %10532 = vmatpush3.xpose.msk.msra.mxu1 %vm553_vm2, %v12041_v32  ;;  %10542 = vmatpush3.xpose.msk.msra.mxu0 %vm553_vm2, %v12055_v41 }
0x2248   :  { %10533 = vmatprep.mubr.msk.f32.mxu1 %vm11279_vm1, %v11278_v52  ;;  %10536 = vmatprep.subr.mxu1 %v11278_v52 }
0x2249   :  { %10543 = vmatprep.mubr.msk.f32.mxu0 %vm11279_vm1, %v11278_v52  ;;  %10551 = vmatprep.subr.mxu0 %v11278_v52 }
0x2319   :  { %v10519_v53 = vpop.f32.mrb[86].mxu1  ;;  %v10530_v55 = vpop.f32.mrb[84].mxu0 }
0x231a   :  { %v7636_v56 = vpop.f32.mrb[87].mxu1  ;;  %v7716_v57 = vpop.f32.mrb[85].mxu0 }
0x231b   :  { %10534 = vmatmul.mubr.msk.f32.vlgmr.msra.gmra.mrb[88].mxu1 %vm553_vm2, %v7636_v56  ;;  %10544 = vmatmul.mubr.msk.f32.vlgmr.msra.gmra.mrb[86].mxu0 %vm553_vm2, %v7716_v57 }
0x231c   :  { %10537 = vmatpush3.xpose.msk.msra.mxu1 %vm553_vm2, %v12037_v30  ;;  %10552 = vmatpush3.msra.mxu0 %v12057_v42 }
0x231d   :  { %10538 = vmatprep.mubr.msk.f32.mxu1 %vm11279_vm1, %v11278_v52  ;;  %10546 = vmatprep.subr.mxu1 %v11278_v52 }
0x231e   :  { %10553 = vmatprep.mubr.msk.f32.mxu0 %vm11279_vm1, %v11278_v52  ;;  %10561 = vmatprep.subr.mxu0 %v11278_v52 }
0x231f   :  { %10539 = vmatmul.mubr.msk.f32.vlgmr.msra.gmra.mrb[90].mxu1 %vm553_vm2, %v10519_v53 }
0x2320   :  { %10547 = vmatpush3.xpose.msk.msra.mxu1 %vm553_vm2, %v12051_v38  ;;  %10548 = vmatprep.mubr.msk.f32.mxu1 %vm11279_vm1, %v11278_v52 }
0x2321   :  { %10556 = vmatprep.subr.mxu1 %v11278_v52 }
0x2323   :  { %10549 = vmatmul.mubr.msk.f32.vlgmr.msra.gmra.mrb[92].mxu1 %vm553_vm2, %v10530_v55 }
0x2324   :  { %10557 = vmatpush3.msra.mxu1 %v12053_v40  ;;  %10558 = vmatprep.mubr.msk.f32.mxu1 %vm11279_vm1, %v11278_v52 }
0x2325   :  { %10566 = vmatprep.subr.mxu1 %v11278_v52 }
0x23ee   :  { %v7797_v30 = vpop.f32.mrb[88].mxu1  ;;  %v7949_v32 = vpop.f32.mrb[86].mxu0 }
0x23ef   :  { %v7798_v41 = vadd.f32 %v7797_v30, %v12230_v29  ;;  %v10535_v42 = vpop.f32.mrb[89].mxu1  ;;  %v10545_v38 = vpop.f32.mrb[87].mxu0  ;;  %v7950_v22 = vadd.f32 %v7949_v32, %v12235_v33 }
0x23f1   :  { %v8029_v24 = vsel %vm858_vm3, %v7798_v41, -inf  ;;  %v8035_v58 = vsel %vm858_vm3, %v7950_v22, -inf }
0x23f2   :  { %8030 = vmax.xlane.f32.xlu0 %v8029_v24  ;;  %v7873_v2 = vpop.f32.mrb[90].mxu1 }
0x23f3   :  { %v7874_v59 = vadd.f32 %v7873_v2, %v12241_v17  ;;  %v10540_v40 = vpop.f32.mrb[91].mxu1 }
0x23f5   :  { %v8032_v4 = vsel %vm858_vm3, %v7874_v59, -inf }
0x23f6   :  { %8036 = vmax.xlane.f32.xlu0 %v8035_v58  ;;  %8033 = vmax.xlane.f32.xlu1 %v8032_v4  ;;  %v8025_v6 = vpop.f32.mrb[92].mxu1  ;;  %v9318_v58 = vld [vmem:[%s12745_s6 + $0x78] sm:$0xff] }
0x23f7   :  { %v8026_v29 = vadd.f32 %v8025_v6, %v12249_v1  ;;  %v10550_v7 = vpop.f32.mrb[93].mxu1  ;;  %v9321_v6 = vld [vmem:[%s12746_s7 + $0xc0] sm:$0xff] }
0x23f8   :  { %v9323_v7 = vld [vmem:[%s12746_s7 + $0xd0] sm:$0xff] }
0x23f9   :  { %v8038_v8 = vsel %vm858_vm3, %v8026_v29, -inf }
0x23fa   :  { %8039 = vmax.xlane.f32.xlu1 %v8038_v8 }
0x247f   :  { %v8031_v33 = vpop.xlane.xlu0 %8030 }
0x2480   :  { %v8041_v9 = vsub.f32 %v7798_v41, %v8031_v33  ;;  %v9324_v33 = vld [vmem:[%s12746_s7 + $0xd8] sm:$0xff] }
0x2482   :  { %v8045_v11 = vmul.f32 1.442695, %v8041_v9  ;;  %v11054_v9 = vpack.c.bf16 %v9324_v33, %v9323_v7 }
0x2483   :  { %v8037_v51 = vpop.xlane.xlu0 %8036  ;;  %v8034_v13 = vpop.xlane.xlu1 %8033 }
0x2484   :  { %11232 = vpow2.f32 %v8045_v11  ;;  %v8043_v17 = vsub.f32 %v7950_v22, %v8037_v51  ;;  %v8042_v60 = vsub.f32 %v7874_v59, %v8034_v13  ;;  %v9317_v59 = vld [vmem:[%s12745_s6 + $0x70] sm:$0xff]  ;;  %v9325_v11 = vld [vmem:[%s12746_s7 + $0xe0] sm:$0xff]  ;;  %v9326_v51 = vld [vmem:[%s12746_s7 + $0xe8] sm:$0xff] }
0x2485   :  { %v11046_v4 = vpack.c.bf16 %v9318_v58, %v9317_v59  ;;  %v11058_v13 = vpack.c.bf16 %v9326_v51, %v9325_v11  ;;  %v8885_v51 = vld [vmem:[%s12748_s9 + $0x8] sm:$0xff] }
0x2486   :  { %v8049_v61 = vmul.f32 1.442695, %v8043_v17  ;;  %v8047_v15 = vmul.f32 1.442695, %v8042_v60 }
0x2487   :  { %v8040_v5 = vpop.xlane.xlu1 %8039 }
0x2488   :  { %11234 = vpow2.f32 %v8049_v61  ;;  %v8044_v3 = vsub.f32 %v8026_v29, %v8040_v5  ;;  %v9322_v29 = vld [vmem:[%s12746_s7 + $0xc8] sm:$0xff] }
0x2489   :  { %11236 = vpow2.f32 %v8047_v15  ;;  %v11050_v8 = vpack.c.bf16 %v9322_v29, %v9321_v6 }
0x248a   :  { %v8051_v63 = vmul.f32 1.442695, %v8044_v3 }
0x248c   :  { %11238 = vpow2.f32 %v8051_v63 }
0x248e   :  { %v11233_v1 = vpop.eup %11232 }
0x248f   :  { %v8053_v35 = vsel %vm858_vm3, %v11233_v1, 0.0 }
0x2490   :  { %8054 = vadd.xlane.f32.xlu0 %v8053_v35 }
0x2492   :  { %v11235_v37 = vpop.eup %11234 }
0x2493   :  { %v11237_v34 = vpop.eup %11236  ;;  %v8059_v16 = vsel %vm858_vm3, %v11235_v37, 0.0 }
0x2494   :  { %8060 = vadd.xlane.f32.xlu0 %v8059_v16  ;;  %v8056_v0 = vsel %vm858_vm3, %v11237_v34, 0.0  ;;  %v9328_v16 = vld [vmem:[%s12746_s7 + $0xf8] sm:$0xff] }
0x2495   :  { %8057 = vadd.xlane.f32.xlu1 %v8056_v0 }
0x2496   :  { %v11239_v25 = vpop.eup %11238 }
0x2497   :  { %v8062_v44 = vsel %vm858_vm3, %v11239_v25, 0.0 }
0x2499   :  { %8063 = vadd.xlane.f32.xlu1 %v8062_v44 }
0x251d   :  { %v8055_v54 = vpop.xlane.xlu0 %8054 }
0x251e   :  { %11240 = vrcp.f32 %v8055_v54 }
0x2521   :  { %v8061_v18 = vpop.xlane.xlu0 %8060 }
0x2522   :  { %11242 = vrcp.f32 %v8061_v18  ;;  %v8058_v19 = vpop.xlane.xlu1 %8057 }
0x2523   :  { %11244 = vrcp.f32 %v8058_v19  ;;  %v8747_v19 = vld [vmem:[%s12747_s8] sm:$0xff] }
0x2526   :  { %v8064_v12 = vpop.xlane.xlu1 %8063 }
0x2527   :  { %11246 = vrcp.f32 %v8064_v12  ;;  %v8748_v12 = vld [vmem:[%s12747_s8 + $0x8] sm:$0xff] }
0x2528   :  { %v11241_v43 = vpop.eup %11240 }
0x2529   :  { %v8069_v20 = vmul.f32 %v11241_v43, %v11233_v1 }
0x252b   :  { %10554 = vmatmul.mubr.msk.f32.vlgmr.msra.gmra.mrb[88].mxu0 %vm858_vm3, %v8069_v20  ;;  %v11066_v20 = vpack.c.bf16 %v8748_v12, %v8747_v19 }
0x252c   :  { %v11243_v21 = vpop.eup %11242  ;;  %10562 = vmatpush3.msra.mxu0 %v12065_v48  ;;  %10563 = vmatprep.mubr.msk.f32.mxu0 %vm11279_vm1, %v11278_v52  ;;  %v9309_v48 = vld [vmem:[%s12744_s5 + $0xb0] sm:$0xff] }
0x252d   :  { %v11245_v14 = vpop.eup %11244  ;;  %v8071_v10 = vmul.f32 %v11243_v21, %v11235_v37  ;;  %v11034_v36 = vpack.c.bf16 %v9310_v28, %v9309_v48  ;;  %v8749_v21 = vld [vmem:[%s12747_s8 + $0x10] sm:$0xff] }
0x252e   :  { %v8070_v23 = vmul.f32 %v11245_v14, %v11237_v34  ;;  %v9327_v34 = vld [vmem:[%s12746_s7 + $0xf0] sm:$0xff]  ;;  %v8750_v14 = vld [vmem:[%s12747_s8 + $0x18] sm:$0xff] }
0x252f   :  { %10564 = vmatmul.mubr.msk.f32.vlgmr.msra.gmra.mrb[90].mxu0 %vm858_vm3, %v8071_v10  ;;  %11035 = vmatprep.subr.bf16.mxu0 %v11034_v36  ;;  %v11062_v0 = vpack.c.bf16 %v9328_v16, %v9327_v34  ;;  %v11072_v10 = vpack.c.bf16 %v8750_v14, %v8749_v21 }
0x2530   :  { %10559 = vmatmul.mubr.msk.f32.vlgmr.msra.gmra.mrb[94].mxu1 %vm858_vm3, %v8070_v23  ;;  %11037 = vmatpush3.bf16.msra.mxu0 %v11034_v36 }
0x2531   :  { %v11247_v26 = vpop.eup %11246  ;;  %10567 = vmatpush3.msra.mxu1 %v12063_v47  ;;  %10568 = vmatprep.mubr.msk.f32.mxu1 %vm11279_vm1, %v11278_v52  ;;  %v9307_v47 = vld [vmem:[%s12744_s5 + $0xa0] sm:$0xff]  ;;  %v9308_v52 = vld [vmem:[%s12744_s5 + $0xa8] sm:$0xff] }
0x2532   :  { %v8072_v27 = vmul.f32 %v11247_v26, %v11239_v25  ;;  %v11038_v39 = vpack.c.bf16 %v9308_v52, %v9307_v47 }
0x2534   :  { %10569 = vmatmul.mubr.msk.f32.vlgmr.msra.gmra.mrb[96].mxu1 %vm858_vm3, %v8072_v27  ;;  %11039 = vmatprep.subr.bf16.mxu0 %v11038_v39 }
0x25fe   :  { %v8142_v45 = vpop.f32.mrb[88].mxu0 }
0x25ff   :  { %v10555_v46 = vpop.f32.mrb[89].mxu0 }
0x2602   :  { %v8288_v49 = vpop.f32.mrb[90].mxu0 }
0x2603   :  { %v8215_v50 = vpop.f32.mrb[94].mxu1  ;;  %v10565_v53 = vpop.f32.mrb[91].mxu0  ;;  %10575 = vmatprep.mubr.msk.f32.mxu0 %vm553_vm2, %v8288_v49  ;;  %v8753_v49 = vld [vmem:[%s12747_s8 + $0x30] sm:$0xff] }
0x2604   :  { %v10560_v55 = vpop.f32.mrb[95].mxu1 }
0x2607   :  { %v8361_v56 = vpop.f32.mrb[96].mxu1 }
0x2608   :  { %v10570_v57 = vpop.f32.mrb[97].mxu1  ;;  %10576 = vmatmul.mubr.msk.f32.vlgmr.msra.gmra.mrb[92].mxu0 %vm553_vm2, %v8361_v56 }
0x2609   :  { %11041 = vmatpush3.bf16.msra.mxu0 %v11038_v39  ;;  %10582 = vmatprep.mubr.msk.f32.mxu0 %vm553_vm2, %v8142_v45  ;;  %v8751_v39 = vld [vmem:[%s12747_s8 + $0x20] sm:$0xff]  ;;  %v8752_v45 = vld [vmem:[%s12747_s8 + $0x28] sm:$0xff] }
0x260a   :  { %11051 = vmatprep.subr.bf16.mxu0 %v11050_v8  ;;  %v11078_v46 = vpack.c.bf16 %v8752_v45, %v8751_v39 }
0x2610   :  { %10583 = vmatmul.mubr.msk.f32.vlgmr.msra.gmra.mrb[92].mxu0 %vm553_vm2, %v8215_v50  ;;  %v8754_v50 = vld [vmem:[%s12747_s8 + $0x38] sm:$0xff] }
0x2611   :  { %11053 = vmatpush3.bf16.msra.mxu0 %v11050_v8  ;;  %v11084_v53 = vpack.c.bf16 %v8754_v50, %v8753_v49 }
0x2612   :  { %11055 = vmatprep.subr.bf16.mxu0 %v11054_v9 }
0x2615   :  { %11057 = vmatpush3.bf16.msra.mxu0 %v11054_v9 }
0x2616   :  { %11059 = vmatprep.subr.bf16.mxu0 %v11058_v13 }
0x2619   :  { %11061 = vmatpush3.bf16.msra.mxu0 %v11058_v13  ;;  %v8897_v13 = vsel %vm1475_vm4, %v8885_v51, 0.0 }
0x261a   :  { %11063 = vmatprep.subr.bf16.mxu0 %v11062_v0 }
0x261d   :  { %11065 = vmatpush3.bf16.msra.mxu0 %v11062_v0 }
0x26e3   :  { %v10584_v30 = vpop.f32.mrb[92].mxu0 }
0x26e4   :  { %v12604_v32 = vadd.f32 %v10584_v30, %v12490_v62  ;;  %v8524_v41 = vpop.f32.mrb[93].mxu0  ;;  %v9315_v62 = vld [vmem:[%s12745_s6 + $0x60] sm:$0xff] }
0x26e5   :  { %v12607_v42 = vadd.f32 %v8524_v41, %v12493_v31  ;;  %v9316_v31 = vld [vmem:[%s12745_s6 + $0x68] sm:$0xff] }
0x26e6   :  { %v8536_v38 = vmul.f32 %v12604_v32, %v12604_v32  ;;  %v11042_v40 = vpack.c.bf16 %v9316_v31, %v9315_v62 }
0x26e7   :  { %v8535_v22 = vmul.f32 %v12607_v42, %v12607_v42 }
0x26e8   :  { %v8540_v24 = vsel %vm52_vm0, %v8536_v38, 0.0  ;;  %11043 = vmatprep.subr.bf16.mxu1 %v11042_v40 }
0x26e9   :  { %8541 = vadd.xlane.f32.xlu1 %v8540_v24  ;;  %v8537_v2 = vsel %vm52_vm0, %v8535_v22, 0.0  ;;  %11045 = vmatpush3.bf16.msra.mxu1 %v11042_v40 }
0x26ea   :  { %8538 = vadd.xlane.f32.xlu0 %v8537_v2  ;;  %11047 = vmatprep.subr.bf16.mxu1 %v11046_v4 }
0x26ed   :  { %11049 = vmatpush3.bf16.msra.mxu1 %v11046_v4 }
0x26ee   :  { %11068 = vmatprep.subr.msk.bf16.mxu1 %vm12665_vm5, %v11066_v20 }
0x2776   :  { %v8542_v17 = vpop.xlane.xlu1 %8541 }
0x2777   :  { %v8544_v60 = vmul.f32 0.03125, %v8542_v17  ;;  %v8539_v61 = vpop.xlane.xlu0 %8538  ;;  %v8884_v17 = vld [vmem:[%s12748_s9] sm:$0xff] }
0x2778   :  { %v8543_v15 = vmul.f32 0.03125, %v8539_v61 }
0x2779   :  { %v8546_v5 = vadd.f32 1e-06, %v8544_v60  ;;  %v8894_v60 = vsel %vm1475_vm4, %v8884_v17, 0.0 }
0x277a   :  { %v8545_v3 = vadd.f32 1e-06, %v8543_v15 }
0x277b   :  { %11248 = vrsqrt.f32 %v8546_v5 }
0x277c   :  { %11250 = vrsqrt.f32 %v8545_v3 }
0x2785   :  { %v11249_v63 = vpop.eup %11248 }
0x2786   :  { %v11251_v1 = vpop.eup %11250  ;;  %v8550_v37 = vmul.f32 %v11249_v63, %v12604_v32 }
0x2787   :  { %v8549_v35 = vmul.f32 %v11251_v1, %v12607_v42 }
0x2789   :  { %10593 = vmatprep.mubr.msk.f32.mxu1 %vm52_vm0, %v8549_v35 }
0x278a   :  { %10594 = vmatmul.mubr.msk.f32.vlgmr.msra.gmra.mrb[98].mxu1 %vm52_vm0, %v8550_v37 }
0x278b   :  { %11071 = vmatpush3.bf16.xpose.msk.msra.mxu1 %vm12665_vm5, %v11066_v20 }
0x278c   :  { %11074 = vmatprep.subr.msk.bf16.mxu1 %vm12665_vm5, %v11072_v10 }
0x2793   :  { %11077 = vmatpush3.bf16.xpose.msk.msra.mxu1 %vm12665_vm5, %v11072_v10 }
0x2794   :  { %11080 = vmatprep.subr.msk.bf16.mxu1 %vm12665_vm5, %v11078_v46 }
0x279b   :  { %11083 = vmatpush3.bf16.xpose.msk.msra.mxu1 %vm12665_vm5, %v11078_v46 }
0x279c   :  { %11086 = vmatprep.subr.msk.bf16.mxu1 %vm12665_vm5, %v11084_v53 }
0x27a3   :  { %11089 = vmatpush3.bf16.xpose.msk.msra.mxu1 %vm12665_vm5, %v11084_v53 }
0x285d   :  { %v10595_v25 = vpop.f32.mrb[98].mxu1 }
0x285e   :  { %v8628_v44 = vpop.f32.mrb[99].mxu1  ;;  %v8638_v18 = vmax.f32 %v10595_v25, 0.0 }
0x285f   :  { %v8637_v54 = vmax.f32 %v8628_v44, 0.0 }
0x2861   :  { %10612 = vmatprep.mubr.msk.f32.mxu0 %vm1475_vm4, %v8637_v54 }
0x2862   :  { %10613 = vmatmul.mubr.msk.f32.vlgmr.msra.gmra.mrb[94].mxu0 %vm1475_vm4, %v8638_v18 }
0x2935   :  { %v10614_v23 = vpop.f32.mrb[94].mxu0 }
0x2936   :  { %v8730_v26 = vadd.f32 %v10614_v23, %v12604_v32  ;;  %v8720_v27 = vpop.f32.mrb[95].mxu0 }
0x2937   :  { %v8729_v48 = vadd.f32 %v8720_v27, %v12607_v42 }
0x2938   :  { %v8732_v28 = vmul.f32 %v8730_v26, %v8730_v26 }
0x2939   :  { %v8731_v36 = vmul.f32 %v8729_v48, %v8729_v48 }
0x293a   :  { %v8736_v47 = vsel %vm52_vm0, %v8732_v28, 0.0 }
0x293b   :  { %8737 = vadd.xlane.f32.xlu1 %v8736_v47  ;;  %v8733_v52 = vsel %vm52_vm0, %v8731_v36, 0.0 }
0x293c   :  { %8734 = vadd.xlane.f32.xlu0 %v8733_v52 }
0x29c8   :  { %v8738_v55 = vpop.xlane.xlu1 %8737 }
0x29c9   :  { %v8740_v56 = vmul.f32 0.03125, %v8738_v55  ;;  %v8735_v57 = vpop.xlane.xlu0 %8734 }
0x29ca   :  { %v8739_v30 = vmul.f32 0.03125, %v8735_v57 }
0x29cb   :  { %v8742_v32 = vadd.f32 1e-06, %v8740_v56 }
0x29cc   :  { %v8741_v41 = vadd.f32 1e-06, %v8739_v30 }
0x29cd   :  { %11252 = vrsqrt.f32 %v8742_v32 }
0x29ce   :  { %11254 = vrsqrt.f32 %v8741_v41 }
0x29d7   :  { %v11253_v42 = vpop.eup %11252 }
0x29d8   :  { %v11255_v38 = vpop.eup %11254  ;;  %v8746_v24 = vmul.f32 %v11253_v42, %v8730_v26 }
0x29d9   :  { %v8745_v22 = vmul.f32 %v11255_v38, %v8729_v48 }
0x29db   :  { %10631 = vmatprep.mubr.msk.f32.mxu1 %vm52_vm0, %v8745_v22 }
0x29dc   :  { %10632 = vmatmul.mubr.msk.f32.vlgmr.msra.gmra.mrb[100].mxu1 %vm52_vm0, %v8746_v24 }
0x2aaf   :  { %v10633_v2 = vpop.f32.mrb[100].mxu1 }
0x2ab0   :  { %v8851_v62 = vpop.f32.mrb[101].mxu1  ;;  %v8863_v31 = vsel %vm1475_vm4, %v10633_v2, -inf  ;;  %v8887_v61 = vmul.f32 %v10633_v2, %v8885_v51 }
0x2ab1   :  { %8864 = vmax.xlane.f32.xlu1 %v8863_v31  ;;  %v8860_v59 = vsel %vm1475_vm4, %v8851_v62, -inf  ;;  %v8886_v15 = vmul.f32 %v8884_v17, %v8851_v62 }
0x2ab2   :  { %8861 = vmax.xlane.f32.xlu0 %v8860_v59  ;;  %v8891_v5 = vsel %vm1475_vm4, %v8887_v61, 0.0 }
0x2ab3   :  { %v8888_v3 = vsel %vm1475_vm4, %v8886_v15, 0.0 }
0x2b3e   :  { %v8865_v40 = vpop.xlane.xlu1 %8864 }
0x2b3f   :  { %v8867_v58 = vsub.f32 %v10633_v2, %v8865_v40  ;;  %v8862_v4 = vpop.xlane.xlu0 %8861 }
0x2b40   :  { %v8866_v6 = vsub.f32 %v8851_v62, %v8862_v4 }
0x2b41   :  { %v8870_v29 = vmul.f32 1.442695, %v8867_v58 }
0x2b42   :  { %v8868_v7 = vmul.f32 1.442695, %v8866_v6 }
0x2b43   :  { %11256 = vpow2.f32 %v8870_v29 }
0x2b44   :  { %11258 = vpow2.f32 %v8868_v7 }
0x2b4d   :  { %v11257_v8 = vpop.eup %11256 }
0x2b4e   :  { %v11259_v33 = vpop.eup %11258  ;;  %v8875_v9 = vsel %vm1475_vm4, %v11257_v8, 0.0 }
0x2b4f   :  { %8876 = vadd.xlane.f32.xlu1 %v8875_v9  ;;  %v8872_v11 = vsel %vm1475_vm4, %v11259_v33, 0.0 }
0x2b50   :  { %8873 = vadd.xlane.f32.xlu0 %v8872_v11 }
0x2b53   :  { %8898 = vadd.xlane.f32.xlu1 %v8897_v13 }
0x2b54   :  { %8895 = vadd.xlane.f32.xlu0 %v8894_v60 }
0x2b57   :  { %8892 = vadd.xlane.f32.xlu1 %v8891_v5 }
0x2b58   :  { %8889 = vadd.xlane.f32.xlu0 %v8888_v3 }
0x2bdc   :  { %v8877_v63 = vpop.xlane.xlu1 %8876 }
0x2bdd   :  { %11260 = vlog2.f32 %v8877_v63  ;;  %v8874_v1 = vpop.xlane.xlu0 %8873 }
0x2bde   :  { %11262 = vlog2.f32 %v8874_v1 }
0x2be0   :  { %v8899_v35 = vpop.xlane.xlu1 %8898 }
0x2be1   :  { %v8918_v37 = vsel %vm8904_vm6, %v8899_v35, 0.0  ;;  %v8896_v34 = vpop.xlane.xlu0 %8895 }
0x2be2   :  { %v8917_v16 = vsel %vm8904_vm6, %v8896_v34, 0.0 }
0x2be3   :  { %v8919_v0 = vadd.f32 %v8918_v37, %v8917_v16 }
0x2be4   :  { %v8893_v21 = vpop.xlane.xlu1 %8892 }
0x2be5   :  { %8920 = vadd.xlane.f32.xlu1 %v8919_v0  ;;  %v8890_v10 = vpop.xlane.xlu0 %8889 }
0x2be7   :  { %v11261_v25 = vpop.eup %11260 }
0x2be8   :  { %v11263_v44 = vpop.eup %11262  ;;  %v8881_v54 = vmul.f32 0.6931472, %v11261_v25 }
0x2be9   :  { %v8879_v18 = vmul.f32 0.6931472, %v11263_v44 }
0x2bea   :  { %v8883_v19 = vadd.f32 %v8881_v54, %v8865_v40 }
0x2beb   :  { %v8882_v12 = vadd.f32 %v8879_v18, %v8862_v4 }
0x2bec   :  { %v8901_v43 = vmul.f32 %v8899_v35, %v8883_v19 }
0x2bed   :  { %v8900_v20 = vmul.f32 %v8896_v34, %v8882_v12 }
0x2bee   :  { %v8903_v14 = vsub.f32 %v8901_v43, %v8893_v21 }
0x2bef   :  { %v8902_v23 = vsub.f32 %v8900_v20, %v8890_v10 }
0x2bf0   :  { %v8906_v26 = vsel %vm8904_vm6, %v8903_v14, 0.0 }
0x2bf1   :  { %v8905_v27 = vsel %vm8904_vm6, %v8902_v23, 0.0 }
0x2bf2   :  { %v8907_v48 = vadd.f32 %v8906_v26, %v8905_v27 }
0x2bf4   :  { %8908 = vadd.xlane.f32.xlu0 %v8907_v48 }
0x2c72   :  { %v8921_v28 = vpop.xlane.xlu1 %8920 }
0x2c73   :  { %v8922_v36 = vrot.slane %v8921_v28, 4 }
0x2c75   :  { %v8923_v47 = vadd.f32 %v8922_v36, %v8921_v28 }
0x2c77   :  { %v8924_v52 = vrot.slane %v8923_v47, 2 }
0x2c79   :  { %v8925_v49 = vadd.f32 %v8924_v52, %v8923_v47 }
0x2c7b   :  { %v8926_v55 = vrot.slane %v8925_v49, 1 }
0x2c7d   :  { %v8927_v30 = vadd.f32 %v8926_v55, %v8925_v49 }
0x2c81   :  { %v8909_v39 = vpop.xlane.xlu0 %8908 }
0x2c82   :  { %v8910_v45 = vrot.slane %v8909_v39, 4 }
0x2c84   :  { %v8911_v46 = vadd.f32 %v8910_v45, %v8909_v39 }
0x2c86   :  { %v8912_v50 = vrot.slane %v8911_v46, 2 }
0x2c88   :  { %v8913_v53 = vadd.f32 %v8912_v50, %v8911_v46 }
0x2c8a   :  { %v8914_v56 = vrot.slane %v8913_v53, 1 }
0x2c8c   :  { %v8915_v57 = vadd.f32 %v8914_v56, %v8913_v53 }
0x2c8e   :  { %11102 = vpush %v8915_v57 }
0x2c8f   :  { %11104 = vpush %v8927_v30 }
0x2cbf   :  { %s11103_s9 = spop %11102 }
0x2cc0   :  { %s11105_s6 = spop %11104 }
0x2cc1   :  { %s8929_s23 = smax.f32 %s11280_s0, %s11105_s6 }
0x2cc2   :  { %v8930_v32 = vstv %s8929_s23 }
0x2cc3   :  { %11264 = vrcp.f32 %v8930_v32 }
0x2ccd   :  { %v11265_v41 = vpop.eup %11264 }
0x2cce   :  { %11106 = vpush %v11265_v41 }
0x2cff   :  { %s11107_s24 = spop %11106 }
0x2d00   :  { %s8933_s4 = smul.f32 %s11107_s24, %s11103_s9 }
0x2d02   :  { %8935 = sst [smem:[#allocation2]] %s8933_s4 }
0x2d03   :  { %11275 = shalt.err (!%p11272_p2)
}
0x2d04   :  { %s11281_s5 = smov [#allocation2]  }
0x2d05   :  { %8943 = dma.smem_to_hbm %s11281_s5, 16, %s12749_s10, [#allocation3]  }
0x2d06   :  { %11276 = dma.done.wait [#allocation3], 16  }
0x2d07   :  { %11277 = vsyncadd [#allocation3], 4294967280 }
0x2d08   :  { %8947 = sfence }
0x2d09   :  { %8948 = vsyncpa [#allocation3], 1 }

</bundles_post_ra>
